<compile_context>
chip_gen: v7x
topology: tpu7x:2x2x1
jax: 0.10.0
libtpu: 0.0.40
codegen_flags: <defaults>
</compile_context>

<pallas_src>
import jax
import jax.numpy as jnp
from jax.experimental import pallas as pl
from jax.experimental.pallas import tpu as pltpu

NEG_SLOPE = 0.01  # F.leaky_relu default negative_slope


# --------------------------------- helpers ---------------------------------- #

def _round_up(v, m):
    return ((v + m - 1) // m) * m


def _row_tiling(M, cap=256):
    """Pad M (bf16 sublane packing -> multiple of 16) and pick a row tile
    <= cap so VMEM stays bounded on v7x (64 MiB/TC) at any batch size."""
    if M <= cap:
        Mp = _round_up(M, 16)
        return Mp, Mp
    Mp = _round_up(M, cap)
    return Mp, cap


_VMEM_LIMIT = None


def _vmem_limit_bytes():
    """64 MiB on 128-MiB VMEM parts (v5e/v6e), 32 MiB on 64-MiB parts (v7x)."""
    global _VMEM_LIMIT
    if _VMEM_LIMIT is None:
        try:
            cap = int(pltpu.get_tpu_info().vmem_capacity_bytes)
        except Exception:
            cap = 64 << 20  # conservative fallback (v7x per-TC VMEM)
        _VMEM_LIMIT = min(64 << 20, max(32 << 20, cap // 2))
    return _VMEM_LIMIT


def _leaky(x):
    return jnp.where(x >= 0.0, x, NEG_SLOPE * x)


def _taps_weight(w_iohw):
    """ConvTranspose2d weight (Cin, Cout, kh, kw) -> (Cin, kh*kw*Cout)."""
    Cin, Cout, kh, kw = w_iohw.shape
    return jnp.transpose(w_iohw, (0, 2, 3, 1)).reshape(Cin, kh * kw * Cout)


# ------------------------------ Pallas kernels ------------------------------ #

def _matmul_taps_kernel(a_ref, w_ref, o_ref):
    # A tile (tm, K) bf16  @  W tile (K, tn) bf16  ->  f32 tap tile (tm, tn)
    o_ref[...] = jnp.dot(a_ref[...], w_ref[...],
                         preferred_element_type=jnp.float32)


def _fused_conv1x1_taps_kernel(x_ref, w1_ref, b1_ref, w2_ref, o_ref, y_ref):
    # conv3 (1x1): y = leaky(x @ W1 + b1), computed ONCE per row tile (first
    # N step only) and cached in the VMEM scratch -- no per-step recompute.
    @pl.when(pl.program_id(1) == 0)
    def _():
        y = jnp.dot(x_ref[...], w1_ref[...], preferred_element_type=jnp.float32)
        y = y + b1_ref[...]
        y_ref[...] = jnp.where(y >= 0.0, y, NEG_SLOPE * y).astype(jnp.bfloat16)

    # upconv3 tap matmul against the streamed (K1, tn) weight column tile.
    o_ref[...] = jnp.dot(y_ref[...], w2_ref[...],
                         preferred_element_type=jnp.float32)


# ------------------------------ kernel wrappers ----------------------------- #

def pallas_matmul(a, w, *, tn=512):
    """A[M,K] @ W[K,N] -> f32[M,N].  bf16 MXU inputs, f32 accumulation.

    N is zero-padded to a multiple of the (lane-dense) column tile, M is
    padded to a multiple of 16 and row-tiled at <= 256 rows; padding is
    sliced off before returning.
    """
    M, K = a.shape
    K2, N = w.shape
    assert K == K2
    tn = min(tn, _round_up(max(N, 128), 128))
    Np = _round_up(max(N, 128), tn)
    if Np != N:
        w = jnp.pad(w, ((0, 0), (0, Np - N)))          # zero columns -> zero out
    Mp, tm = _row_tiling(M)
    if Mp != M:
        a = jnp.pad(a, ((0, Mp - M), (0, 0)))

    out = pl.pallas_call(
        _matmul_taps_kernel,
        out_shape=jax.ShapeDtypeStruct((Mp, Np), jnp.float32),
        grid_spec=pltpu.PrefetchScalarGridSpec(
            num_scalar_prefetch=0,
            grid=(Mp // tm, Np // tn),
            in_specs=[
                pl.BlockSpec((tm, K), lambda i, j: (i, 0)),   # A row tile
                pl.BlockSpec((K, tn), lambda i, j: (0, j)),   # streamed W cols
            ],
            out_specs=pl.BlockSpec((tm, tn), lambda i, j: (i, j)),
        ),
        compiler_params=pltpu.CompilerParams(
            dimension_semantics=("parallel", "parallel"),
            vmem_limit_bytes=_vmem_limit_bytes(),
        ),
    )(a.astype(jnp.bfloat16), w.astype(jnp.bfloat16))
    return out[:M, :N]


def fused_conv1x1_upconv_taps(x, w1, b1, w2t, *, tn=1024):
    """leaky(x @ W1 + b1) @ W2t in one pallas_call.

    x: (M, K1), W1: (K1, N1), b1: (N1,), W2t: (N1, N2).  Returns f32 (M, N2).
    conv3 is computed once per row tile into a VMEM scratch (pl.when on the
    first N step); the tap matmul streams W2t in (N1, tn) column tiles.
    Grid: (M tiles 'parallel', N2 tiles 'arbitrary') -> megacore splits M.
    """
    M, K1 = x.shape
    K1b, N1 = w1.shape
    N1b, N2 = w2t.shape
    assert K1 == K1b and N1 == N1b
    assert K1 % 128 == 0 and N1 % 128 == 0 and N2 % tn == 0
    Mp, tm = _row_tiling(M)
    if Mp != M:
        x = jnp.pad(x, ((0, Mp - M), (0, 0)))

    out = pl.pallas_call(
        _fused_conv1x1_taps_kernel,
        out_shape=jax.ShapeDtypeStruct((Mp, N2), jnp.float32),
        grid_spec=pltpu.PrefetchScalarGridSpec(
            num_scalar_prefetch=0,
            grid=(Mp // tm, N2 // tn),
            in_specs=[
                pl.BlockSpec((tm, K1), lambda i, j: (i, 0)),  # activation row tile
                pl.BlockSpec((K1, N1), lambda i, j: (0, 0)),  # conv3 weight, resident
                pl.BlockSpec((1, N1), lambda i, j: (0, 0)),   # conv3 bias
                pl.BlockSpec((N1, tn), lambda i, j: (0, j)),  # streamed upconv3 cols
            ],
            out_specs=pl.BlockSpec((tm, tn), lambda i, j: (i, j)),
            scratch_shapes=[pltpu.VMEM((tm, N1), jnp.bfloat16)],  # cached conv3 out
        ),
        compiler_params=pltpu.CompilerParams(
            dimension_semantics=("parallel", "arbitrary"),
            vmem_limit_bytes=_vmem_limit_bytes(),
        ),
    )(x.astype(jnp.bfloat16), w1.astype(jnp.bfloat16),
      b1.reshape(1, N1).astype(jnp.float32), w2t.astype(jnp.bfloat16))
    return out[:M]


# ------------------------- tap -> spatial combination ----------------------- #
# TODO(synk): the shift-and-add epilogue still runs as small fused XLA pad/add
# ops between pallas_calls; fully folding it into the kernels with an in-VMEM
# spatial scratch would remove the remaining inter-kernel HBM round trips.
# (For very large batches on v5e, emitting bf16 taps would also halve the
# writeback; kept f32 here for accuracy at these shapes.)

def _shift2d(t, dy, dx):
    """result[m, n] = t[m+dy, n+dx] (zero outside); dy, dx in {-1, 0, +1}."""
    B, H, W, C = t.shape
    tp = jnp.pad(t, ((0, 0),
                     (max(0, -dy), max(0, dy)),
                     (max(0, -dx), max(0, dx)),
                     (0, 0)))
    return tp[:, max(0, dy):max(0, dy) + H, max(0, dx):max(0, dx) + W, :]


def combine_taps_s2k4p1(taps):
    """ConvTranspose2d(k=4, s=2, p=1) tap accumulation, phase-grouped.

    taps: (B, Hin, Win, 4, 4, C) with
        taps[b, iy, ix, ky, kx, c] = sum_ci x[b, iy, ix, ci] * w[ci, c, ky, kx]
    out[b, oy, ox, c] sums taps with oy = 2*iy + ky - 1 (same for x).
    Grouped by output phase (oy%2, ox%2): each phase is a sum of 4 shifted
    taps on a quarter-size accumulator, then one depth-to-space interleave.
    """
    B, Hin, Win, kh, kw, C = taps.shape
    assert kh == 4 and kw == 4
    # Phase p contributions: (kernel index k, input shift d) with i = m + d.
    terms = {0: ((1, 0), (3, -1)), 1: ((0, +1), (2, 0))}
    ph = {}
    for py in (0, 1):
        for px in (0, 1):
            acc = None
            for ky, dy in terms[py]:
                for kx, dx in terms[px]:
                    t = _shift2d(taps[:, :, :, ky, kx, :], dy, dx)
                    acc = t if acc is None else acc + t
            ph[(py, px)] = acc
    # out[b, 2m+py, 2n+px, c] = ph[(py,px)][b, m, n, c]
    out = jnp.stack([jnp.stack([ph[(0, 0)], ph[(0, 1)]], axis=3),
                     jnp.stack([ph[(1, 0)], ph[(1, 1)]], axis=3)], axis=2)
    return out.reshape(B, 2 * Hin, 2 * Win, C)


def combine_taps_s1(taps, padding):
    """Stride-1 ConvTranspose tap accumulation (final 3x3 conv, tiny tensors)."""
    B, Hin, Win, kh, kw, C = taps.shape
    Hfull = Hin + kh - 1
    Wfull = Win + kw - 1
    acc = jnp.zeros((B, Hfull, Wfull, C), taps.dtype)
    for ky in range(kh):
        for kx in range(kw):
            acc = acc + jnp.pad(taps[:, :, :, ky, kx, :],
                                ((0, 0), (ky, Hfull - ky - Hin),
                                 (kx, Wfull - kx - Win), (0, 0)))
    return acc[:, padding:Hfull - padding, padding:Wfull - padding, :]


# ------------------------------- decoder model ------------------------------ #

def init_params(key):
    ks = jax.random.split(key, 8)

    def w(k, shape, fan_in):
        return jax.random.normal(k, shape, jnp.float32) / jnp.sqrt(float(fan_in))

    return {
        # nn.Conv2d(2048, 512, 1): weight (512, 2048, 1, 1)
        "conv3_w": w(ks[0], (512, 2048, 1, 1), 2048),
        "conv3_b": 0.01 * jax.random.normal(ks[1], (512,), jnp.float32),
        # nn.ConvTranspose2d(512, 256, 4, 2, 1): weight (512, 256, 4, 4)
        "upconv3_w": w(ks[2], (512, 256, 4, 4), 512 * 16),
        "upconv3_b": 0.01 * jax.random.normal(ks[3], (256,), jnp.float32),
        # nn.ConvTranspose2d(256, 64, 4, 2, 1): weight (256, 64, 4, 4)
        "upconv4_w": w(ks[4], (256, 64, 4, 4), 256 * 16),
        "upconv4_b": 0.01 * jax.random.normal(ks[5], (64,), jnp.float32),
        # nn.ConvTranspose2d(64, 3, 3, 1, 1): weight (64, 3, 3, 3)
        "final_w": w(ks[6], (64, 3, 3, 3), 64 * 9),
        "final_b": 0.01 * jax.random.normal(ks[7], (3,), jnp.float32),
    }


def prepare_params(params):
    """One-time inference prep: tap-layout transpose + bf16 cast of all conv
    weights, done OUTSIDE the per-forward jit so the pallas_calls read bf16
    straight from HBM (no per-call f32 read + bf16 write + re-read)."""
    Cout1, Cin = params["conv3_w"].shape[:2]
    return {
        "conv3_wT": params["conv3_w"].reshape(Cout1, Cin).T.astype(jnp.bfloat16),
        "conv3_b": params["conv3_b"].astype(jnp.float32).reshape(1, -1),
        "upconv3_wt": _taps_weight(params["upconv3_w"]).astype(jnp.bfloat16),
        "upconv3_b": params["upconv3_b"].astype(jnp.float32),
        "upconv4_wt": _taps_weight(params["upconv4_w"]).astype(jnp.bfloat16),
        "upconv4_b": params["upconv4_b"].astype(jnp.float32),
        "final_wt": _taps_weight(params["final_w"]).astype(jnp.float32),
        "final_b": params["final_b"].astype(jnp.float32),
    }


def decoder_forward(iparams, code):
    # code: (B, C1, C2, H, W) with C1*C2 == 2048 (PyTorch convention)
    B, C1, C2, H, W = code.shape
    Cin = C1 * C2
    x = jnp.transpose(code.reshape(B, Cin, H, W), (0, 2, 3, 1))          # NHWC
    x2d = x.reshape(B * H * W, Cin)

    # ---- conv3 (1x1, 2048->512) + leaky, fused with upconv3 tap matmul ----
    taps3 = fused_conv1x1_upconv_taps(
        x2d, iparams["conv3_wT"], iparams["conv3_b"], iparams["upconv3_wt"],
        tn=1024)                                                         # (BHW, 4096) f32
    taps3 = taps3.reshape(B, H, W, 4, 4, 256)
    h3 = combine_taps_s2k4p1(taps3)                                      # (B, 2H, 2W, 256)
    h3 = _leaky(h3 + iparams["upconv3_b"])
    H3, W3 = 2 * H, 2 * W

    # ---- upconv4 (256->64, k4 s2 p1) + leaky ----
    taps4 = pallas_matmul(h3.reshape(B * H3 * W3, 256),
                          iparams["upconv4_wt"], tn=512)                 # (B*H3*W3, 1024)
    taps4 = taps4.reshape(B, H3, W3, 4, 4, 64)
    h4 = combine_taps_s2k4p1(taps4)                                      # (B, 4H, 4W, 64)
    h4 = _leaky(h4 + iparams["upconv4_b"])
    H4, W4 = 2 * H3, 2 * W3

    # ---- upconv_final (64->3, k3 s1 p1), no activation ----
    # K=64 / N=27 is too small for a dedicated MXU kernel; a plain XLA dot
    # fuses with the preceding bias+leaky (review: drop the pallas dispatch).
    taps5 = h4.reshape(B * H4 * W4, 64) @ iparams["final_wt"]            # (., 27) f32
    taps5 = taps5.reshape(B, H4, W4, 3, 3, 3)
    out = combine_taps_s1(taps5, padding=1)                              # (B, 4H, 4W, 3)
    out = out + iparams["final_b"]

    return jnp.transpose(out, (0, 3, 1, 2))                              # NCHW


# --------------------- pure-JAX f32 reference (validation) ------------------ #

def _ref_conv2d(x_nhwc, w_oihw, bias, pad, leaky_flag):
    B, H, W, Cin = x_nhwc.shape
    Cout, _, kh, kw = w_oihw.shape
    xp = jnp.pad(x_nhwc, ((0, 0), (pad, pad), (pad, pad), (0, 0)))
    Ho = H + 2 * pad - kh + 1
    Wo = W + 2 * pad - kw + 1
    patches = [xp[:, di:di + Ho, dj:dj + Wo, :]
               for di in range(kh) for dj in range(kw)]
    a = jnp.concatenate(patches, axis=-1).reshape(B * Ho * Wo, kh * kw * Cin)
    wm = jnp.transpose(w_oihw, (2, 3, 1, 0)).reshape(kh * kw * Cin, Cout)
    o = a @ wm + bias
    if leaky_flag:
        o = jnp.where(o >= 0, o, NEG_SLOPE * o)
    return o.reshape(B, Ho, Wo, Cout)


def _ref_conv_transpose2d(x_nhwc, w_iohw, bias, k, stride, pad, leaky_flag):
    B, H, W, Cin = x_nhwc.shape
    if stride > 1:
        Hu, Wu = (H - 1) * stride + 1, (W - 1) * stride + 1
        xu = jnp.zeros((B, Hu, Wu, Cin), x_nhwc.dtype)
        xu = xu.at[:, ::stride, ::stride, :].set(x_nhwc)
    else:
        xu = x_nhwc
    w_conv = jnp.transpose(jnp.flip(w_iohw, axis=(2, 3)), (1, 0, 2, 3))
    return _ref_conv2d(xu, w_conv, bias, k - 1 - pad, leaky_flag)


def decoder_forward_ref(params, code):
    B, C1, C2, H, W = code.shape
    x = jnp.transpose(code.reshape(B, C1 * C2, H, W), (0, 2, 3, 1))
    x = _ref_conv2d(x, params["conv3_w"], params["conv3_b"], 0, True)
    x = _ref_conv_transpose2d(x, params["upconv3_w"], params["upconv3_b"], 4, 2, 1, True)
    x = _ref_conv_transpose2d(x, params["upconv4_w"], params["upconv4_b"], 4, 2, 1, True)
    x = _ref_conv_transpose2d(x, params["final_w"], params["final_b"], 3, 1, 1, False)
    return jnp.transpose(x, (0, 3, 1, 2))


# ------------------------------------ main ---------------------------------- #

if __name__ == "__main__":
    key = jax.random.PRNGKey(0)
    pk, xk = jax.random.split(key)
    params = init_params(pk)
    iparams = prepare_params(params)   # bf16 + tap layout, once, outside the jit

    # 64*32 = 2048 input channels, 4x4 spatial -> final output (1, 3, 16, 16).
    code = jax.random.normal(xk, (1, 64, 32, 4, 4), jnp.float32)

    out = jax.jit(decoder_forward)(iparams, code)
    out = jax.block_until_ready(out)
    assert out.shape == (1, 3, 16, 16), out.shape
    assert bool(jnp.all(jnp.isfinite(out)))

    # Cross-check against a pure-JAX f32 reference (bf16 MXU inputs => loose tol).
    ref = jax.block_until_ready(jax.jit(decoder_forward_ref)(params, code))
    rel = float(jnp.max(jnp.abs(out - ref)) / (jnp.max(jnp.abs(ref)) + 1e-6))
    assert rel < 8e-2, rel

    print("KERNEL_OK")
</pallas_src>

<mosaic_0001>
module attributes {stable_mosaic.version = 11 : i64} {
  func.func @_fused_conv1x1_taps_kernel(%arg0: i32, %arg1: i32, %arg2: memref<16x2048xbf16, #tpu.memory_space<vmem>>, %arg3: memref<2048x512xbf16, #tpu.memory_space<vmem>>, %arg4: memref<1x512xf32, #tpu.memory_space<vmem>>, %arg5: memref<512x1024xbf16, #tpu.memory_space<vmem>>, %arg6: memref<16x1024xf32, #tpu.memory_space<vmem>>, %arg7: memref<16x512xbf16, #tpu.memory_space<vmem>>) attributes {dimension_semantics = [#tpu.dimension_semantics<parallel>, #tpu.dimension_semantics<arbitrary>], iteration_bounds = array<i64: 1, 4>, scalar_prefetch = 0 : i64, scratch_operands = 1 : i64, tpu.core_type = #tpu.core_type<tc>, window_params = [{transform_indices = @transform_0, window_bounds = array<i64: 16, 2048>}, {pipeline_mode = #tpu.pipeline_mode<synchronous>, transform_indices = @transform_1, window_bounds = array<i64: 2048, 512>}, {pipeline_mode = #tpu.pipeline_mode<synchronous>, transform_indices = @transform_2, window_bounds = array<i64: 1, 512>}, {transform_indices = @transform_3, window_bounds = array<i64: 512, 1024>}, {transform_indices = @transform_4, window_bounds = array<i64: 16, 1024>}]} {
    %c0_i32 = arith.constant 0 : i32
    %0 = arith.cmpi eq, %arg1, %c0_i32 : i32
    %1 = arith.extui %0 : i1 to i32
    %c0_i32_0 = arith.constant 0 : i32
    %2 = arith.cmpi ne, %1, %c0_i32_0 : i32
    scf.if %2 {
      %c0_6 = arith.constant 0 : index
      %c0_7 = arith.constant 0 : index
      %7 = vector.load %arg2[%c0_6, %c0_7] : memref<16x2048xbf16, #tpu.memory_space<vmem>>, vector<16x2048xbf16>
      %c0_8 = arith.constant 0 : index
      %c0_9 = arith.constant 0 : index
      %8 = vector.load %arg3[%c0_8, %c0_9] : memref<2048x512xbf16, #tpu.memory_space<vmem>>, vector<2048x512xbf16>
      %cst_10 = arith.constant dense<0.000000e+00> : vector<16x512xf32>
      %9 = tpu.matmul %7, %8, %cst_10 {dimension_numbers = #tpu.dot_dimension_numbers<[1], [0], [0], [1], [0, 0, 1, 1], [], []>} : vector<16x2048xbf16>, vector<2048x512xbf16>, vector<16x512xf32> -> vector<16x512xf32>
      %c0_11 = arith.constant 0 : index
      %c0_12 = arith.constant 0 : index
      %10 = vector.load %arg4[%c0_11, %c0_12] : memref<1x512xf32, #tpu.memory_space<vmem>>, vector<1x512xf32>
      %11 = vector.broadcast %10 : vector<1x512xf32> to vector<16x512xf32>
      %12 = arith.addf %9, %11 : vector<16x512xf32>
      %cst_13 = arith.constant 0.000000e+00 : f32
      %13 = vector.broadcast %cst_13 : f32 to vector<16x512xf32>
      %14 = arith.cmpf oge, %12, %13 : vector<16x512xf32>
      %cst_14 = arith.constant 0.00999999977 : f32
      %15 = vector.broadcast %cst_14 : f32 to vector<16x512xf32>
      %16 = arith.mulf %15, %12 : vector<16x512xf32>
      %17 = arith.select %14, %12, %16 : vector<16x512xi1>, vector<16x512xf32>
      %18 = arith.truncf %17 : vector<16x512xf32> to vector<16x512xbf16>
      %c0_15 = arith.constant 0 : index
      %c0_16 = arith.constant 0 : index
      %19 = vector.load %arg7[%c0_15, %c0_16] : memref<16x512xbf16, #tpu.memory_space<vmem>>, vector<16x512xbf16>
      tpu.vector_store %arg7[%c0_15, %c0_16], %18 {strides = array<i32>} : memref<16x512xbf16, #tpu.memory_space<vmem>>, vector<16x512xbf16>,
    } else {
    }
    %c0 = arith.constant 0 : index
    %c0_1 = arith.constant 0 : index
    %3 = vector.load %arg7[%c0, %c0_1] : memref<16x512xbf16, #tpu.memory_space<vmem>>, vector<16x512xbf16>
    %c0_2 = arith.constant 0 : index
    %c0_3 = arith.constant 0 : index
    %4 = vector.load %arg5[%c0_2, %c0_3] : memref<512x1024xbf16, #tpu.memory_space<vmem>>, vector<512x1024xbf16>
    %cst = arith.constant dense<0.000000e+00> : vector<16x1024xf32>
    %5 = tpu.matmul %3, %4, %cst {dimension_numbers = #tpu.dot_dimension_numbers<[1], [0], [0], [1], [0, 0, 1, 1], [], []>} : vector<16x512xbf16>, vector<512x1024xbf16>, vector<16x1024xf32> -> vector<16x1024xf32>
    %c0_4 = arith.constant 0 : index
    %c0_5 = arith.constant 0 : index
    %6 = vector.load %arg6[%c0_4, %c0_5] : memref<16x1024xf32, #tpu.memory_space<vmem>>, vector<16x1024xf32>
    tpu.vector_store %arg6[%c0_4, %c0_5], %5 {strides = array<i32>} : memref<16x1024xf32, #tpu.memory_space<vmem>>, vector<16x1024xf32>,
    return
  }
  func.func @transform_0(%arg0: i32, %arg1: i32) -> (i32, i32) {
    %c0_i32 = arith.constant 0 : i32
    %c0_i32_0 = arith.constant 0 : i32
    return %arg0, %c0_i32 : i32, i32
  }
  func.func @transform_1(%arg0: i32, %arg1: i32) -> (i32, i32) {
    %c0_i32 = arith.constant 0 : i32
    %c0_i32_0 = arith.constant 0 : i32
    %c0_i32_1 = arith.constant 0 : i32
    return %c0_i32, %c0_i32_0 : i32, i32
  }
  func.func @transform_2(%arg0: i32, %arg1: i32) -> (i32, i32) {
    %c0_i32 = arith.constant 0 : i32
    %c0_i32_0 = arith.constant 0 : i32
    %c0_i32_1 = arith.constant 0 : i32
    return %c0_i32, %c0_i32_0 : i32, i32
  }
  func.func @transform_3(%arg0: i32, %arg1: i32) -> (i32, i32) {
    %c0_i32 = arith.constant 0 : i32
    %c0_i32_0 = arith.constant 0 : i32
    return %c0_i32, %arg1 : i32, i32
  }
  func.func @transform_4(%arg0: i32, %arg1: i32) -> (i32, i32) {
    %c0_i32 = arith.constant 0 : i32
    return %arg0, %arg1 : i32, i32
  }
}

module attributes {stable_mosaic.version = 11 : i64} {
  func.func @_matmul_taps_kernel(%arg0: i32, %arg1: i32, %arg2: memref<64x256xbf16, #tpu.memory_space<vmem>>, %arg3: memref<256x512xbf16, #tpu.memory_space<vmem>>, %arg4: memref<64x512xf32, #tpu.memory_space<vmem>>) attributes {dimension_semantics = [#tpu.dimension_semantics<parallel>, #tpu.dimension_semantics<parallel>], iteration_bounds = array<i64: 1, 2>, scalar_prefetch = 0 : i64, scratch_operands = 0 : i64, tpu.core_type = #tpu.core_type<tc>, window_params = [{transform_indices = @transform_0, window_bounds = array<i64: 64, 256>}, {transform_indices = @transform_1, window_bounds = array<i64: 256, 512>}, {transform_indices = @transform_2, window_bounds = array<i64: 64, 512>}]} {
    %c0 = arith.constant 0 : index
    %c0_0 = arith.constant 0 : index
    %0 = vector.load %arg2[%c0, %c0_0] : memref<64x256xbf16, #tpu.memory_space<vmem>>, vector<64x256xbf16>
    %c0_1 = arith.constant 0 : index
    %c0_2 = arith.constant 0 : index
    %1 = vector.load %arg3[%c0_1, %c0_2] : memref<256x512xbf16, #tpu.memory_space<vmem>>, vector<256x512xbf16>
    %cst = arith.constant dense<0.000000e+00> : vector<64x512xf32>
    %2 = tpu.matmul %0, %1, %cst {dimension_numbers = #tpu.dot_dimension_numbers<[1], [0], [0], [1], [0, 0, 1, 1], [], []>} : vector<64x256xbf16>, vector<256x512xbf16>, vector<64x512xf32> -> vector<64x512xf32>
    %c0_3 = arith.constant 0 : index
    %c0_4 = arith.constant 0 : index
    %3 = vector.load %arg4[%c0_3, %c0_4] : memref<64x512xf32, #tpu.memory_space<vmem>>, vector<64x512xf32>
    tpu.vector_store %arg4[%c0_3, %c0_4], %2 {strides = array<i32>} : memref<64x512xf32, #tpu.memory_space<vmem>>, vector<64x512xf32>,
    return
  }
  func.func @transform_0(%arg0: i32, %arg1: i32) -> (i32, i32) {
    %c0_i32 = arith.constant 0 : i32
    %c0_i32_0 = arith.constant 0 : i32
    return %arg0, %c0_i32 : i32, i32
  }
  func.func @transform_1(%arg0: i32, %arg1: i32) -> (i32, i32) {
    %c0_i32 = arith.constant 0 : i32
    %c0_i32_0 = arith.constant 0 : i32
    return %c0_i32, %arg1 : i32, i32
  }
  func.func @transform_2(%arg0: i32, %arg1: i32) -> (i32, i32) {
    %c0_i32 = arith.constant 0 : i32
    return %arg0, %arg1 : i32, i32
  }
}

</mosaic_0001>

<bundles_post_ra>
// kernel: decoder_forward.3
= control target key start
LH: loop header
LB: loop body
LE: loop exit
PB: predicated region body
PF: predicated region fallthrough
CT: control target
= control target key end

     0   :  { %s1404_s9 = smov 0   ;;  %s1406_s10 = smov 0   ;;  %s1802_s0 = inlined_call_operand.vmem [shape: bf16[64,256], index: 0, kind: input, shape index: {}]   ;;  %s1803_s1 = inlined_call_operand.vmem [shape: bf16[256,1024], index: 1, kind: input, shape index: {}]   ;;  %s1804_s2 = inlined_call_operand.vmem [shape: f32[64,1024], index: 2, kind: output, shape index: {}]  }
   0x1   :  { %s1408_s11 = smov 0   ;;  %s1410_s12 = smov 0  }
   0x2   :  { %s1412_s13 = smov 0  }
   0x3 LB: > { %s21_s14 = sadd.s32 1, %s1383_s12  ;;  %s1111_s15 = sadd.s32 4294967295, %s1387_s13   ;;  %s1387_s13 = sphi %s1412_s13, %s12_s13   ;;  %s1383_s12 = sphi %s1410_s12, %s1809_s12   ;;  %s1379_s11 = sphi %s1408_s11, %s1808_s11   ;;  %s1375_s10 = sphi %s1406_s10, %s1807_s10   ;;  %s1371_s9 = sphi %s1404_s9, %s1806_s9  }
   0x4   : > { %p22_p0 = scmp.ge.s32.totalorder %s21_s14, 2  ;;  %p64_p1 = scmp.ne.s32.totalorder %s1375_s10, %s1371_s9 }
   0x5   : > { %p65_p2 = scmp.eq.s32.totalorder %s1387_s13, 0  ;;  %p96_p4 = scmp.eq.s32.totalorder %s1111_s15, 1 }
   0x6   : > { %s1811_s14 = smov (%p22_p0, %s21_s14), 0  ;;  %s57_s17 = sadd.s32 1, %s1375_s10 }
   0x7   : > { %p66_p3 = por %p65_p2, %p64_p1  ;;  %s54_s16 = ssub.s32 %s1383_s12, %s1811_s14 }
   0x8   : > { %p55_p5 = scmp.eq.s32.totalorder %s54_s16, 0  ;;  %p1439_p6 = por %p96_p4, %p64_p1 }
   0x9   : > { %p1115_p7 = scmp.ge.s32.totalorder %s1387_s13, 2 }
   0xa   : > { %s1444_s19 = scalar_select %p55_p5, %s1375_s10, %s57_s17  }
   0xb   : > { %128 = sbr.rel (%p1115_p7) target bundleno = 54 (0x36), region = 20 }
  0x12   : > { %131 = sbr.rel (!%p66_p3) target bundleno = 54 (0x36), region = 24  ;;  %s133_s20 = sand.u32 (%p66_p3), 1, %s1375_s10  }
  0x13   : > { %s1199_s21 = sshll.u32 (%p66_p3), %s1383_s12, 4  ;;  %s1116_s22 = sshll.u32 (%p66_p3), %s133_s20, 9 }
  0x14   : > { %s1452_s25 = scalar_lea.vmem (%p66_p3), %s1803_s1, %s1199_s21  ;;  %s1457_s26 = scalar_lea.vmem (%p66_p3), [#allocation2], %s1116_s22 }
  0x15   : > { %v151_v0 = vld [vmem:[%s1452_s25] sm:$0xff] (%p66_p3)  ;;  %v153_v1 = vld [vmem:[%s1452_s25 + $0x8] sm:$0xff] (%p66_p3) }
  0x16   : > { %v155_v2 = vld [vmem:[%s1452_s25 + $0x20] sm:$0xff] (%p66_p3)  ;;  %152 = vst [vmem:[%s1457_s26] sm:$0xff] (%p66_p3), %v151_v0  ;;  %154 = vst [vmem:[%s1457_s26 + $0x8] sm:$0xff] (%p66_p3), %v153_v1  ;;  %v157_v3 = vld [vmem:[%s1452_s25 + $0x28] sm:$0xff] (%p66_p3) }
  0x17   : > { %156 = vst [vmem:[%s1457_s26 + $0x10] sm:$0xff] (%p66_p3), %v155_v2  ;;  %v159_v4 = vld [vmem:[%s1452_s25 + $0x40] sm:$0xff] (%p66_p3)  ;;  %v161_v5 = vld [vmem:[%s1452_s25 + $0x48] sm:$0xff] (%p66_p3)  ;;  %158 = vst [vmem:[%s1457_s26 + $0x18] sm:$0xff] (%p66_p3), %v157_v3 }
  0x18   : > { %160 = vst [vmem:[%s1457_s26 + $0x20] sm:$0xff] (%p66_p3), %v159_v4  ;;  %162 = vst [vmem:[%s1457_s26 + $0x28] sm:$0xff] (%p66_p3), %v161_v5  ;;  %v163_v6 = vld [vmem:[%s1452_s25 + $0x60] sm:$0xff] (%p66_p3)  ;;  %v165_v7 = vld [vmem:[%s1452_s25 + $0x68] sm:$0xff] (%p66_p3) }
  0x19   : > { %v167_v8 = vld [vmem:[%s1452_s25 + $0x80] sm:$0xff]  ;;  %164 = vst [vmem:[%s1457_s26 + $0x30] sm:$0xff] %v163_v6  ;;  %166 = vst [vmem:[%s1457_s26 + $0x38] sm:$0xff] %v165_v7  ;;  %v169_v9 = vld [vmem:[%s1452_s25 + $0x88] sm:$0xff] }
  0x1a   : > { %168 = vst [vmem:[%s1457_s26 + $0x40] sm:$0xff] %v167_v8  ;;  %v171_v10 = vld [vmem:[%s1452_s25 + $0xa0] sm:$0xff]  ;;  %v173_v11 = vld [vmem:[%s1452_s25 + $0xa8] sm:$0xff]  ;;  %170 = vst [vmem:[%s1457_s26 + $0x48] sm:$0xff] %v169_v9 }
  0x1b   : > { %172 = vst [vmem:[%s1457_s26 + $0x50] sm:$0xff] %v171_v10  ;;  %174 = vst [vmem:[%s1457_s26 + $0x58] sm:$0xff] %v173_v11  ;;  %v175_v12 = vld [vmem:[%s1452_s25 + $0xc0] sm:$0xff]  ;;  %v177_v13 = vld [vmem:[%s1452_s25 + $0xc8] sm:$0xff] }
  0x1c   : > { %v179_v14 = vld [vmem:[%s1452_s25 + $0xe0] sm:$0xff]  ;;  %176 = vst [vmem:[%s1457_s26 + $0x60] sm:$0xff] %v175_v12  ;;  %178 = vst [vmem:[%s1457_s26 + $0x68] sm:$0xff] %v177_v13  ;;  %v181_v15 = vld [vmem:[%s1452_s25 + $0xe8] sm:$0xff] }
  0x1d   : > { %180 = vst [vmem:[%s1457_s26 + $0x70] sm:$0xff] %v179_v14  ;;  %v183_v16 = vld [vmem:[%s1452_s25 + $0x100] sm:$0xff]  ;;  %v185_v17 = vld [vmem:[%s1452_s25 + $0x108] sm:$0xff]  ;;  %182 = vst [vmem:[%s1457_s26 + $0x78] sm:$0xff] %v181_v15 }
  0x1e   : > { %184 = vst [vmem:[%s1457_s26 + $0x80] sm:$0xff] %v183_v16  ;;  %186 = vst [vmem:[%s1457_s26 + $0x88] sm:$0xff] %v185_v17  ;;  %v187_v18 = vld [vmem:[%s1452_s25 + $0x120] sm:$0xff]  ;;  %v189_v19 = vld [vmem:[%s1452_s25 + $0x128] sm:$0xff] }
  0x1f   : > { %v191_v20 = vld [vmem:[%s1452_s25 + $0x140] sm:$0xff]  ;;  %188 = vst [vmem:[%s1457_s26 + $0x90] sm:$0xff] %v187_v18  ;;  %190 = vst [vmem:[%s1457_s26 + $0x98] sm:$0xff] %v189_v19  ;;  %v193_v21 = vld [vmem:[%s1452_s25 + $0x148] sm:$0xff] }
  0x20   : > { %192 = vst [vmem:[%s1457_s26 + $0xa0] sm:$0xff] %v191_v20  ;;  %v195_v22 = vld [vmem:[%s1452_s25 + $0x160] sm:$0xff]  ;;  %v197_v23 = vld [vmem:[%s1452_s25 + $0x168] sm:$0xff]  ;;  %194 = vst [vmem:[%s1457_s26 + $0xa8] sm:$0xff] %v193_v21 }
  0x21   : > { %196 = vst [vmem:[%s1457_s26 + $0xb0] sm:$0xff] %v195_v22  ;;  %198 = vst [vmem:[%s1457_s26 + $0xb8] sm:$0xff] %v197_v23  ;;  %v199_v24 = vld [vmem:[%s1452_s25 + $0x180] sm:$0xff]  ;;  %v201_v25 = vld [vmem:[%s1452_s25 + $0x188] sm:$0xff] }
  0x22   : > { %v203_v26 = vld [vmem:[%s1452_s25 + $0x1a0] sm:$0xff]  ;;  %200 = vst [vmem:[%s1457_s26 + $0xc0] sm:$0xff] %v199_v24  ;;  %202 = vst [vmem:[%s1457_s26 + $0xc8] sm:$0xff] %v201_v25  ;;  %v205_v27 = vld [vmem:[%s1452_s25 + $0x1a8] sm:$0xff] }
  0x23   : > { %204 = vst [vmem:[%s1457_s26 + $0xd0] sm:$0xff] %v203_v26  ;;  %v207_v28 = vld [vmem:[%s1452_s25 + $0x1c0] sm:$0xff]  ;;  %v209_v29 = vld [vmem:[%s1452_s25 + $0x1c8] sm:$0xff]  ;;  %206 = vst [vmem:[%s1457_s26 + $0xd8] sm:$0xff] %v205_v27 }
  0x24   : > { %208 = vst [vmem:[%s1457_s26 + $0xe0] sm:$0xff] %v207_v28  ;;  %210 = vst [vmem:[%s1457_s26 + $0xe8] sm:$0xff] %v209_v29  ;;  %v211_v30 = vld [vmem:[%s1452_s25 + $0x1e0] sm:$0xff]  ;;  %v213_v31 = vld [vmem:[%s1452_s25 + $0x1e8] sm:$0xff] }
  0x25   : > { %v215_v32 = vld [vmem:[%s1452_s25 + $0x200] sm:$0xff]  ;;  %212 = vst [vmem:[%s1457_s26 + $0xf0] sm:$0xff] %v211_v30  ;;  %214 = vst [vmem:[%s1457_s26 + $0xf8] sm:$0xff] %v213_v31  ;;  %v217_v33 = vld [vmem:[%s1452_s25 + $0x208] sm:$0xff] }
  0x26   : > { %216 = vst [vmem:[%s1457_s26 + $0x100] sm:$0xff] %v215_v32  ;;  %v219_v34 = vld [vmem:[%s1452_s25 + $0x220] sm:$0xff]  ;;  %v221_v35 = vld [vmem:[%s1452_s25 + $0x228] sm:$0xff]  ;;  %218 = vst [vmem:[%s1457_s26 + $0x108] sm:$0xff] %v217_v33 }
  0x27   : > { %220 = vst [vmem:[%s1457_s26 + $0x110] sm:$0xff] %v219_v34  ;;  %222 = vst [vmem:[%s1457_s26 + $0x118] sm:$0xff] %v221_v35  ;;  %v223_v36 = vld [vmem:[%s1452_s25 + $0x240] sm:$0xff]  ;;  %v225_v37 = vld [vmem:[%s1452_s25 + $0x248] sm:$0xff] }
  0x28   : > { %v227_v38 = vld [vmem:[%s1452_s25 + $0x260] sm:$0xff]  ;;  %224 = vst [vmem:[%s1457_s26 + $0x120] sm:$0xff] %v223_v36  ;;  %226 = vst [vmem:[%s1457_s26 + $0x128] sm:$0xff] %v225_v37  ;;  %v229_v39 = vld [vmem:[%s1452_s25 + $0x268] sm:$0xff] }
  0x29   : > { %228 = vst [vmem:[%s1457_s26 + $0x130] sm:$0xff] %v227_v38  ;;  %v231_v40 = vld [vmem:[%s1452_s25 + $0x280] sm:$0xff]  ;;  %v233_v41 = vld [vmem:[%s1452_s25 + $0x288] sm:$0xff]  ;;  %230 = vst [vmem:[%s1457_s26 + $0x138] sm:$0xff] %v229_v39 }
  0x2a   : > { %232 = vst [vmem:[%s1457_s26 + $0x140] sm:$0xff] %v231_v40  ;;  %234 = vst [vmem:[%s1457_s26 + $0x148] sm:$0xff] %v233_v41  ;;  %v235_v42 = vld [vmem:[%s1452_s25 + $0x2a0] sm:$0xff]  ;;  %v237_v43 = vld [vmem:[%s1452_s25 + $0x2a8] sm:$0xff] }
  0x2b   : > { %v239_v44 = vld [vmem:[%s1452_s25 + $0x2c0] sm:$0xff]  ;;  %236 = vst [vmem:[%s1457_s26 + $0x150] sm:$0xff] %v235_v42  ;;  %238 = vst [vmem:[%s1457_s26 + $0x158] sm:$0xff] %v237_v43  ;;  %v241_v45 = vld [vmem:[%s1452_s25 + $0x2c8] sm:$0xff] }
  0x2c   : > { %240 = vst [vmem:[%s1457_s26 + $0x160] sm:$0xff] %v239_v44  ;;  %v243_v46 = vld [vmem:[%s1452_s25 + $0x2e0] sm:$0xff]  ;;  %v245_v47 = vld [vmem:[%s1452_s25 + $0x2e8] sm:$0xff]  ;;  %242 = vst [vmem:[%s1457_s26 + $0x168] sm:$0xff] %v241_v45 }
  0x2d   : > { %244 = vst [vmem:[%s1457_s26 + $0x170] sm:$0xff] %v243_v46  ;;  %246 = vst [vmem:[%s1457_s26 + $0x178] sm:$0xff] %v245_v47  ;;  %v247_v48 = vld [vmem:[%s1452_s25 + $0x300] sm:$0xff]  ;;  %v249_v49 = vld [vmem:[%s1452_s25 + $0x308] sm:$0xff] }
  0x2e   : > { %v251_v50 = vld [vmem:[%s1452_s25 + $0x320] sm:$0xff]  ;;  %248 = vst [vmem:[%s1457_s26 + $0x180] sm:$0xff] %v247_v48  ;;  %250 = vst [vmem:[%s1457_s26 + $0x188] sm:$0xff] %v249_v49  ;;  %v253_v51 = vld [vmem:[%s1452_s25 + $0x328] sm:$0xff] }
  0x2f   : > { %252 = vst [vmem:[%s1457_s26 + $0x190] sm:$0xff] %v251_v50  ;;  %v255_v52 = vld [vmem:[%s1452_s25 + $0x340] sm:$0xff]  ;;  %v257_v53 = vld [vmem:[%s1452_s25 + $0x348] sm:$0xff]  ;;  %254 = vst [vmem:[%s1457_s26 + $0x198] sm:$0xff] %v253_v51 }
  0x30   : > { %256 = vst [vmem:[%s1457_s26 + $0x1a0] sm:$0xff] %v255_v52  ;;  %258 = vst [vmem:[%s1457_s26 + $0x1a8] sm:$0xff] %v257_v53  ;;  %v259_v54 = vld [vmem:[%s1452_s25 + $0x360] sm:$0xff]  ;;  %v261_v55 = vld [vmem:[%s1452_s25 + $0x368] sm:$0xff] }
  0x31   : > { %v263_v56 = vld [vmem:[%s1452_s25 + $0x380] sm:$0xff]  ;;  %260 = vst [vmem:[%s1457_s26 + $0x1b0] sm:$0xff] %v259_v54  ;;  %262 = vst [vmem:[%s1457_s26 + $0x1b8] sm:$0xff] %v261_v55  ;;  %v265_v57 = vld [vmem:[%s1452_s25 + $0x388] sm:$0xff] }
  0x32   : > { %264 = vst [vmem:[%s1457_s26 + $0x1c0] sm:$0xff] %v263_v56  ;;  %v267_v58 = vld [vmem:[%s1452_s25 + $0x3a0] sm:$0xff]  ;;  %v269_v59 = vld [vmem:[%s1452_s25 + $0x3a8] sm:$0xff]  ;;  %266 = vst [vmem:[%s1457_s26 + $0x1c8] sm:$0xff] %v265_v57 }
  0x33   : > { %268 = vst [vmem:[%s1457_s26 + $0x1d0] sm:$0xff] %v267_v58  ;;  %270 = vst [vmem:[%s1457_s26 + $0x1d8] sm:$0xff] %v269_v59  ;;  %v271_v60 = vld [vmem:[%s1452_s25 + $0x3c0] sm:$0xff]  ;;  %v273_v61 = vld [vmem:[%s1452_s25 + $0x3c8] sm:$0xff] }
  0x34   : > { %v275_v62 = vld [vmem:[%s1452_s25 + $0x3e0] sm:$0xff]  ;;  %272 = vst [vmem:[%s1457_s26 + $0x1e0] sm:$0xff] %v271_v60  ;;  %274 = vst [vmem:[%s1457_s26 + $0x1e8] sm:$0xff] %v273_v61  ;;  %v277_v63 = vld [vmem:[%s1452_s25 + $0x3e8] sm:$0xff] }
  0x35   : > { %276 = vst [vmem:[%s1457_s26 + $0x1f0] sm:$0xff] %v275_v62  ;;  %278 = vst [vmem:[%s1457_s26 + $0x1f8] sm:$0xff] %v277_v63 }
  0x36 PF: > { %p1119_p8 = scmp.ge.s32.totalorder %s1387_s13, 1  ;;  %p283_p9 = scmp.lt.s32.totalorder %s1387_s13, 3 }
  0x38   : > { %p284_p10 = pnand %p1119_p8, %p283_p9 }
  0x39   : > { %s290_s27 = sand.u32 (!%p284_p10), 1, %s1371_s9   ;;  %v1339_v0 = vld [vmem:[%s1802_s0 + $0x4] ss:$8 sps:$4 sm:$0xff] (!%p284_p10)  }
  0x3a   : > { %287 = sbr.rel (%p284_p10) target bundleno = 373 (0x175), region = 47  ;;  %s1120_s28 = sshll.u32 (!%p284_p10), %s290_s27, 9  ;;  %790 = vmatprep.mubr.bf16.mxu0 (!%p284_p10), %v1339_v0  ;;  %863 = vmatprep.mubr.bf16.mxu1 (!%p284_p10), %v1339_v0 }
  0x3b   : > { %s1592_s3 = scalar_lea.vmem (!%p284_p10), [#allocation2], %s1120_s28  ;;  %s1121_s26 = sshll.u32 (!%p284_p10), %s290_s27, 8 }
  0x3c   : > { %v1241_v1 = vld [vmem:[%s1592_s3 + $0x4] ss:$16 sps:$4 sm:$0xff] (!%p284_p10)   ;;  %v1243_v2 = vld [vmem:[%s1592_s3 + $0xc] ss:$16 sps:$4 sm:$0xff] (!%p284_p10)   ;;  %v1245_v3 = vld [vmem:[%s1592_s3] ss:$16 sps:$4 sm:$0xff] (!%p284_p10)  }
  0x3d   : > { %758 = vmatprep.subr.bf16.mxu0 (!%p284_p10), %v1241_v1  ;;  %v1246_v4 = vld [vmem:[%s1592_s3 + $0x8] ss:$16 sps:$4 sm:$0xff] (!%p284_p10)   ;;  %831 = vmatprep.subr.bf16.mxu1 (!%p284_p10), %v1243_v2  ;;  %v1247_v5 = vld [vmem:[%s1592_s3 + $0x24] ss:$16 sps:$4 sm:$0xff] (!%p284_p10)   ;;  %v1249_v6 = vld [vmem:[%s1592_s3 + $0x2c] ss:$16 sps:$4 sm:$0xff] (!%p284_p10)  }
  0x3e   : > { %759 = vmatpush1.bf16.msra.mxu0 (!%p284_p10), %v1245_v3  ;;  %832 = vmatpush1.bf16.msra.mxu1 (!%p284_p10), %v1246_v4  ;;  %v1251_v7 = vld [vmem:[%s1592_s3 + $0x20] ss:$16 sps:$4 sm:$0xff] (!%p284_p10)   ;;  %v1252_v8 = vld [vmem:[%s1592_s3 + $0x28] ss:$16 sps:$4 sm:$0xff] (!%p284_p10)   ;;  %v1253_v9 = vld [vmem:[%s1592_s3 + $0x44] ss:$16 sps:$4 sm:$0xff] (!%p284_p10)  }
  0x3f   : > { %760 = vmatprep.subr.bf16.mxu0 (!%p284_p10), %v1247_v5  ;;  %833 = vmatprep.subr.bf16.mxu1 (!%p284_p10), %v1249_v6  ;;  %v1255_v10 = vld [vmem:[%s1592_s3 + $0x4c] ss:$16 sps:$4 sm:$0xff] (!%p284_p10)   ;;  %v1257_v11 = vld [vmem:[%s1592_s3 + $0x40] ss:$16 sps:$4 sm:$0xff] (!%p284_p10)   ;;  %v1258_v12 = vld [vmem:[%s1592_s3 + $0x48] ss:$16 sps:$4 sm:$0xff] (!%p284_p10)  }
  0x40   : > { %v1259_v13 = vld [vmem:[%s1592_s3 + $0x64] ss:$16 sps:$4 sm:$0xff] (!%p284_p10)   ;;  %v1261_v14 = vld [vmem:[%s1592_s3 + $0x6c] ss:$16 sps:$4 sm:$0xff] (!%p284_p10)   ;;  %v1263_v15 = vld [vmem:[%s1592_s3 + $0x60] ss:$16 sps:$4 sm:$0xff] (!%p284_p10)  }
  0x41   : > { %v1264_v16 = vld [vmem:[%s1592_s3 + $0x68] ss:$16 sps:$4 sm:$0xff]   ;;  %v1265_v17 = vld [vmem:[%s1592_s3 + $0x84] ss:$16 sps:$4 sm:$0xff]   ;;  %v1267_v18 = vld [vmem:[%s1592_s3 + $0x8c] ss:$16 sps:$4 sm:$0xff]  }
  0x42   : > { %761 = vmatpush1.bf16.msra.mxu0 %v1251_v7  ;;  %834 = vmatpush1.bf16.msra.mxu1 %v1252_v8  ;;  %v1269_v19 = vld [vmem:[%s1592_s3 + $0x80] ss:$16 sps:$4 sm:$0xff]   ;;  %v1270_v20 = vld [vmem:[%s1592_s3 + $0x88] ss:$16 sps:$4 sm:$0xff]   ;;  %v1271_v21 = vld [vmem:[%s1592_s3 + $0xa4] ss:$16 sps:$4 sm:$0xff]  }
  0x43   : > { %762 = vmatprep.subr.bf16.mxu0 %v1253_v9  ;;  %835 = vmatprep.subr.bf16.mxu1 %v1255_v10  ;;  %v1273_v22 = vld [vmem:[%s1592_s3 + $0xac] ss:$16 sps:$4 sm:$0xff]   ;;  %v1275_v23 = vld [vmem:[%s1592_s3 + $0xa0] ss:$16 sps:$4 sm:$0xff]   ;;  %v1276_v24 = vld [vmem:[%s1592_s3 + $0xa8] ss:$16 sps:$4 sm:$0xff]  }
  0x44   : > { %v1277_v25 = vld [vmem:[%s1592_s3 + $0xc4] ss:$16 sps:$4 sm:$0xff]   ;;  %v1279_v26 = vld [vmem:[%s1592_s3 + $0xcc] ss:$16 sps:$4 sm:$0xff]   ;;  %v1281_v27 = vld [vmem:[%s1592_s3 + $0xc0] ss:$16 sps:$4 sm:$0xff]  }
  0x45   : > { %v1282_v28 = vld [vmem:[%s1592_s3 + $0xc8] ss:$16 sps:$4 sm:$0xff]   ;;  %v1283_v29 = vld [vmem:[%s1592_s3 + $0xe4] ss:$16 sps:$4 sm:$0xff]   ;;  %v1285_v30 = vld [vmem:[%s1592_s3 + $0xec] ss:$16 sps:$4 sm:$0xff]  }
  0x46   : > { %763 = vmatpush1.bf16.msra.mxu0 %v1257_v11  ;;  %836 = vmatpush1.bf16.msra.mxu1 %v1258_v12  ;;  %v1287_v31 = vld [vmem:[%s1592_s3 + $0xe0] ss:$16 sps:$4 sm:$0xff]   ;;  %v1288_v32 = vld [vmem:[%s1592_s3 + $0xe8] ss:$16 sps:$4 sm:$0xff]   ;;  %v1289_v33 = vld [vmem:[%s1592_s3 + $0x104] ss:$16 sps:$4 sm:$0xff]  }
  0x47   : > { %764 = vmatprep.subr.bf16.mxu0 %v1259_v13  ;;  %837 = vmatprep.subr.bf16.mxu1 %v1261_v14  ;;  %v1291_v34 = vld [vmem:[%s1592_s3 + $0x10c] ss:$16 sps:$4 sm:$0xff]   ;;  %v1293_v35 = vld [vmem:[%s1592_s3 + $0x100] ss:$16 sps:$4 sm:$0xff]   ;;  %v1294_v36 = vld [vmem:[%s1592_s3 + $0x108] ss:$16 sps:$4 sm:$0xff]  }
  0x48   : > { %v1295_v37 = vld [vmem:[%s1592_s3 + $0x124] ss:$16 sps:$4 sm:$0xff]   ;;  %v1297_v38 = vld [vmem:[%s1592_s3 + $0x12c] ss:$16 sps:$4 sm:$0xff]   ;;  %v1299_v39 = vld [vmem:[%s1592_s3 + $0x120] ss:$16 sps:$4 sm:$0xff]  }
  0x49   : > { %v1300_v40 = vld [vmem:[%s1592_s3 + $0x128] ss:$16 sps:$4 sm:$0xff]   ;;  %v1301_v41 = vld [vmem:[%s1592_s3 + $0x144] ss:$16 sps:$4 sm:$0xff]   ;;  %v1303_v42 = vld [vmem:[%s1592_s3 + $0x14c] ss:$16 sps:$4 sm:$0xff]  }
  0x4a   : > { %765 = vmatpush1.bf16.msra.mxu0 %v1263_v15  ;;  %838 = vmatpush1.bf16.msra.mxu1 %v1264_v16  ;;  %v1305_v43 = vld [vmem:[%s1592_s3 + $0x140] ss:$16 sps:$4 sm:$0xff]   ;;  %v1306_v44 = vld [vmem:[%s1592_s3 + $0x148] ss:$16 sps:$4 sm:$0xff]   ;;  %v1307_v45 = vld [vmem:[%s1592_s3 + $0x164] ss:$16 sps:$4 sm:$0xff]  }
  0x4b   : > { %766 = vmatprep.subr.bf16.mxu0 %v1265_v17  ;;  %839 = vmatprep.subr.bf16.mxu1 %v1267_v18  ;;  %v1309_v46 = vld [vmem:[%s1592_s3 + $0x16c] ss:$16 sps:$4 sm:$0xff]   ;;  %v1311_v47 = vld [vmem:[%s1592_s3 + $0x160] ss:$16 sps:$4 sm:$0xff]   ;;  %v1312_v48 = vld [vmem:[%s1592_s3 + $0x168] ss:$16 sps:$4 sm:$0xff]  }
  0x4c   : > { %v1313_v49 = vld [vmem:[%s1592_s3 + $0x184] ss:$16 sps:$4 sm:$0xff]   ;;  %v1315_v50 = vld [vmem:[%s1592_s3 + $0x18c] ss:$16 sps:$4 sm:$0xff]   ;;  %v1317_v51 = vld [vmem:[%s1592_s3 + $0x180] ss:$16 sps:$4 sm:$0xff]  }
  0x4d   : > { %v1318_v52 = vld [vmem:[%s1592_s3 + $0x188] ss:$16 sps:$4 sm:$0xff]   ;;  %v1319_v53 = vld [vmem:[%s1592_s3 + $0x1a4] ss:$16 sps:$4 sm:$0xff]   ;;  %v1321_v54 = vld [vmem:[%s1592_s3 + $0x1ac] ss:$16 sps:$4 sm:$0xff]  }
  0x4e   : > { %767 = vmatpush1.bf16.msra.mxu0 %v1269_v19  ;;  %840 = vmatpush1.bf16.msra.mxu1 %v1270_v20  ;;  %v1323_v55 = vld [vmem:[%s1592_s3 + $0x1a0] ss:$16 sps:$4 sm:$0xff]   ;;  %v1324_v56 = vld [vmem:[%s1592_s3 + $0x1a8] ss:$16 sps:$4 sm:$0xff]   ;;  %v1325_v57 = vld [vmem:[%s1592_s3 + $0x1c4] ss:$16 sps:$4 sm:$0xff]  }
  0x4f   : > { %768 = vmatprep.subr.bf16.mxu0 %v1271_v21  ;;  %841 = vmatprep.subr.bf16.mxu1 %v1273_v22  ;;  %v1327_v58 = vld [vmem:[%s1592_s3 + $0x1cc] ss:$16 sps:$4 sm:$0xff]   ;;  %v1329_v59 = vld [vmem:[%s1592_s3 + $0x1c0] ss:$16 sps:$4 sm:$0xff]   ;;  %v1330_v60 = vld [vmem:[%s1592_s3 + $0x1c8] ss:$16 sps:$4 sm:$0xff]  }
  0x50   : > { %v1331_v61 = vld [vmem:[%s1592_s3 + $0x1e4] ss:$16 sps:$4 sm:$0xff]   ;;  %v1333_v62 = vld [vmem:[%s1592_s3 + $0x1ec] ss:$16 sps:$4 sm:$0xff]   ;;  %v1335_v63 = vld [vmem:[%s1592_s3 + $0x1e0] ss:$16 sps:$4 sm:$0xff]  }
  0x51   : > { %v1336_v0 = vld [vmem:[%s1592_s3 + $0x1e8] ss:$16 sps:$4 sm:$0xff]   ;;  %v1340_v2 = vld [vmem:[%s1802_s0 + $0x14] ss:$8 sps:$4 sm:$0xff]   ;;  %v1343_v4 = vld [vmem:[%s1802_s0 + $0x24] ss:$8 sps:$4 sm:$0xff]  }
  0x52   : > { %769 = vmatpush1.bf16.msra.mxu0 %v1275_v23  ;;  %842 = vmatpush1.bf16.msra.mxu1 %v1276_v24  ;;  %v1337_v1 = vld [vmem:[%s1802_s0] ss:$8 sps:$4 sm:$0xff]   ;;  %v1342_v3 = vld [vmem:[%s1802_s0 + $0x10] ss:$8 sps:$4 sm:$0xff]   ;;  %v1346_v6 = vld [vmem:[%s1802_s0 + $0x34] ss:$8 sps:$4 sm:$0xff]  }
  0x53   : > { %770 = vmatprep.subr.bf16.mxu0 %v1277_v25  ;;  %843 = vmatprep.subr.bf16.mxu1 %v1279_v26  ;;  %v1345_v5 = vld [vmem:[%s1802_s0 + $0x20] ss:$8 sps:$4 sm:$0xff]   ;;  %v1348_v7 = vld [vmem:[%s1802_s0 + $0x30] ss:$8 sps:$4 sm:$0xff]   ;;  %s1681_s28 = scalar_lea.vmem [#allocation3], %s1121_s26  ;;  %s1200_s9 = sshll.u32 (%p1439_p6), %s1379_s11, 5 }
  0x54   : > { %s1724_s30 = scalar_lea.vmem (%p1439_p6), %s1804_s2, %s1200_s9 }
  0x56   : > { %771 = vmatpush1.bf16.msra.mxu0 %v1281_v27  ;;  %844 = vmatpush1.bf16.msra.mxu1 %v1282_v28 }
  0x57   : > { %772 = vmatprep.subr.bf16.mxu0 %v1283_v29  ;;  %845 = vmatprep.subr.bf16.mxu1 %v1285_v30 }
  0x5a   : > { %773 = vmatpush1.bf16.msra.mxu0 %v1287_v31  ;;  %846 = vmatpush1.bf16.msra.mxu1 %v1288_v32 }
  0x5b   : > { %774 = vmatprep.subr.bf16.mxu0 %v1289_v33  ;;  %847 = vmatprep.subr.bf16.mxu1 %v1291_v34 }
  0x5e   : > { %775 = vmatpush1.bf16.msra.mxu0 %v1293_v35  ;;  %848 = vmatpush1.bf16.msra.mxu1 %v1294_v36 }
  0x5f   : > { %776 = vmatprep.subr.bf16.mxu0 %v1295_v37  ;;  %849 = vmatprep.subr.bf16.mxu1 %v1297_v38 }
  0x62   : > { %777 = vmatpush1.bf16.msra.mxu0 %v1299_v39  ;;  %850 = vmatpush1.bf16.msra.mxu1 %v1300_v40 }
  0x63   : > { %778 = vmatprep.subr.bf16.mxu0 %v1301_v41  ;;  %851 = vmatprep.subr.bf16.mxu1 %v1303_v42 }
  0x66   : > { %779 = vmatpush1.bf16.msra.mxu0 %v1305_v43  ;;  %852 = vmatpush1.bf16.msra.mxu1 %v1306_v44 }
  0x67   : > { %780 = vmatprep.subr.bf16.mxu0 %v1307_v45  ;;  %853 = vmatprep.subr.bf16.mxu1 %v1309_v46 }
  0x6a   : > { %781 = vmatpush1.bf16.msra.mxu0 %v1311_v47  ;;  %854 = vmatpush1.bf16.msra.mxu1 %v1312_v48 }
  0x6b   : > { %782 = vmatprep.subr.bf16.mxu0 %v1313_v49  ;;  %855 = vmatprep.subr.bf16.mxu1 %v1315_v50 }
  0x6e   : > { %783 = vmatpush1.bf16.msra.mxu0 %v1317_v51  ;;  %856 = vmatpush1.bf16.msra.mxu1 %v1318_v52 }
  0x6f   : > { %784 = vmatprep.subr.bf16.mxu0 %v1319_v53  ;;  %857 = vmatprep.subr.bf16.mxu1 %v1321_v54 }
  0x72   : > { %785 = vmatpush1.bf16.msra.mxu0 %v1323_v55  ;;  %858 = vmatpush1.bf16.msra.mxu1 %v1324_v56 }
  0x73   : > { %786 = vmatprep.subr.bf16.mxu0 %v1325_v57  ;;  %859 = vmatprep.subr.bf16.mxu1 %v1327_v58 }
  0x76   : > { %787 = vmatpush1.bf16.msra.mxu0 %v1329_v59  ;;  %860 = vmatpush1.bf16.msra.mxu1 %v1330_v60 }
  0x77   : > { %788 = vmatprep.subr.bf16.mxu0 %v1331_v61  ;;  %861 = vmatprep.subr.bf16.mxu1 %v1333_v62 }
  0x7a   : > { %789 = vmatpush1.bf16.msra.mxu0 %v1335_v63  ;;  %862 = vmatpush1.bf16.msra.mxu1 %v1336_v0 }
  0x7d   : > { %791 = vmatmul.mubr.bf16.vlgmr.msra.gmra.mrb[0].mxu0 %v1337_v1  ;;  %864 = vmatmul.mubr.bf16.vlgmr.msra.gmra.mrb[0].mxu1 %v1337_v1 }
  0x7e   : > { %800 = vmatprep.mubr.bf16.mxu0 %v1340_v2  ;;  %873 = vmatprep.mubr.bf16.mxu1 %v1340_v2 }
  0x85   : > { %801 = vmatmul.mubr.bf16.gmra.mrb[4].mxu0 %v1342_v3  ;;  %874 = vmatmul.mubr.bf16.gmra.mrb[4].mxu1 %v1342_v3 }
  0x86   : > { %810 = vmatprep.mubr.bf16.mxu0 %v1343_v4  ;;  %883 = vmatprep.mubr.bf16.mxu1 %v1343_v4 }
  0x8d   : > { %811 = vmatmul.mubr.bf16.gmra.mrb[8].mxu0 %v1345_v5  ;;  %884 = vmatmul.mubr.bf16.gmra.mrb[8].mxu1 %v1345_v5 }
  0x8e   : > { %820 = vmatprep.mubr.bf16.mxu0 %v1346_v6  ;;  %893 = vmatprep.mubr.bf16.mxu1 %v1346_v6 }
  0x95   : > { %821 = vmatmul.mubr.bf16.gmra.mrb[12].mxu0 %v1348_v7  ;;  %894 = vmatmul.mubr.bf16.gmra.mrb[12].mxu1 %v1348_v7 }
 0x150   : > { %v792_v8 = vpop.f32.mrb[0].mxu0  ;;  %v865_v9 = vpop.f32.mrb[0].mxu1 }
 0x151   : > { %904 = vst [vmem:[%s1681_s28] sm:$0xff] %v792_v8  ;;  %906 = vst [vmem:[%s1681_s28 + $0x10] sm:$0xff] %v865_v9  ;;  %v794_v10 = vpop.f32.mrb[1].mxu0  ;;  %v867_v11 = vpop.f32.mrb[1].mxu1 }
 0x152   : > { %905 = vst [vmem:[%s1681_s28 + $0x8] sm:$0xff] %v794_v10  ;;  %907 = vst [vmem:[%s1681_s28 + $0x18] sm:$0xff] %v867_v11  ;;  %v796_v12 = vpop.f32.mrb[2].mxu0  ;;  %v869_v13 = vpop.f32.mrb[2].mxu1 }
 0x153   : > { %908 = vst [vmem:[%s1681_s28 + $0x20] sm:$0xff] %v796_v12  ;;  %910 = vst [vmem:[%s1681_s28 + $0x30] sm:$0xff] %v869_v13  ;;  %v798_v14 = vpop.f32.mrb[3].mxu0  ;;  %v871_v15 = vpop.f32.mrb[3].mxu1 }
 0x154   : > { %909 = vst [vmem:[%s1681_s28 + $0x28] sm:$0xff] %v798_v14  ;;  %911 = vst [vmem:[%s1681_s28 + $0x38] sm:$0xff] %v871_v15 }
 0x158   : > { %v802_v16 = vpop.f32.mrb[4].mxu0  ;;  %v875_v17 = vpop.f32.mrb[4].mxu1  ;;  %v961_v40 = vld [vmem:[%s1681_s28] sm:$0xff] (%p1439_p6)  ;;  %v965_v42 = vld [vmem:[%s1681_s28 + $0x10] sm:$0xff] (%p1439_p6) }
 0x159   : > { %912 = vst [vmem:[%s1681_s28 + $0x40] sm:$0xff] %v802_v16  ;;  %914 = vst [vmem:[%s1681_s28 + $0x50] sm:$0xff] %v875_v17  ;;  %v804_v18 = vpop.f32.mrb[5].mxu0  ;;  %v877_v19 = vpop.f32.mrb[5].mxu1  ;;  %v963_v41 = vld [vmem:[%s1681_s28 + $0x8] sm:$0xff] (%p1439_p6)  ;;  %v967_v43 = vld [vmem:[%s1681_s28 + $0x18] sm:$0xff] (%p1439_p6) }
 0x15a   : > { %913 = vst [vmem:[%s1681_s28 + $0x48] sm:$0xff] %v804_v18  ;;  %915 = vst [vmem:[%s1681_s28 + $0x58] sm:$0xff] %v877_v19  ;;  %v806_v20 = vpop.f32.mrb[6].mxu0  ;;  %v879_v21 = vpop.f32.mrb[6].mxu1  ;;  %v969_v44 = vld [vmem:[%s1681_s28 + $0x20] sm:$0xff] (%p1439_p6)  ;;  %v973_v46 = vld [vmem:[%s1681_s28 + $0x30] sm:$0xff] (%p1439_p6) }
 0x15b   : > { %916 = vst [vmem:[%s1681_s28 + $0x60] sm:$0xff] %v806_v20  ;;  %918 = vst [vmem:[%s1681_s28 + $0x70] sm:$0xff] %v879_v21  ;;  %v808_v22 = vpop.f32.mrb[7].mxu0  ;;  %v881_v23 = vpop.f32.mrb[7].mxu1  ;;  %v971_v45 = vld [vmem:[%s1681_s28 + $0x28] sm:$0xff] (%p1439_p6)  ;;  %v975_v47 = vld [vmem:[%s1681_s28 + $0x38] sm:$0xff] (%p1439_p6) }
 0x15c   : > { %917 = vst [vmem:[%s1681_s28 + $0x68] sm:$0xff] %v808_v22  ;;  %919 = vst [vmem:[%s1681_s28 + $0x78] sm:$0xff] %v881_v23 }
 0x15d   : > { %962 = vst [vmem:[%s1724_s30] sm:$0xff] (%p1439_p6), %v961_v40  ;;  %964 = vst [vmem:[%s1724_s30 + $0x8] sm:$0xff] (%p1439_p6), %v963_v41 }
 0x15e   : > { %966 = vst [vmem:[%s1724_s30 + $0x10] sm:$0xff] (%p1439_p6), %v965_v42  ;;  %968 = vst [vmem:[%s1724_s30 + $0x18] sm:$0xff] (%p1439_p6), %v967_v43 }
 0x15f   : > { %970 = vst [vmem:[%s1724_s30 + $0x40] sm:$0xff] (%p1439_p6), %v969_v44  ;;  %972 = vst [vmem:[%s1724_s30 + $0x48] sm:$0xff] (%p1439_p6), %v971_v45 }
 0x160   : > { %v812_v24 = vpop.f32.mrb[8].mxu0  ;;  %v885_v25 = vpop.f32.mrb[8].mxu1  ;;  %v977_v48 = vld [vmem:[%s1681_s28 + $0x40] sm:$0xff] (%p1439_p6)  ;;  %974 = vst [vmem:[%s1724_s30 + $0x50] sm:$0xff] (%p1439_p6), %v973_v46  ;;  %976 = vst [vmem:[%s1724_s30 + $0x58] sm:$0xff] (%p1439_p6), %v975_v47  ;;  %v981_v50 = vld [vmem:[%s1681_s28 + $0x50] sm:$0xff] (%p1439_p6) }
 0x161   : > { %920 = vst [vmem:[%s1681_s28 + $0x80] sm:$0xff] %v812_v24  ;;  %922 = vst [vmem:[%s1681_s28 + $0x90] sm:$0xff] %v885_v25  ;;  %v814_v26 = vpop.f32.mrb[9].mxu0  ;;  %v887_v27 = vpop.f32.mrb[9].mxu1  ;;  %v979_v49 = vld [vmem:[%s1681_s28 + $0x48] sm:$0xff] (%p1439_p6)  ;;  %v983_v51 = vld [vmem:[%s1681_s28 + $0x58] sm:$0xff] (%p1439_p6) }
 0x162   : > { %921 = vst [vmem:[%s1681_s28 + $0x88] sm:$0xff] %v814_v26  ;;  %923 = vst [vmem:[%s1681_s28 + $0x98] sm:$0xff] %v887_v27  ;;  %v816_v28 = vpop.f32.mrb[10].mxu0  ;;  %v889_v29 = vpop.f32.mrb[10].mxu1  ;;  %v985_v52 = vld [vmem:[%s1681_s28 + $0x60] sm:$0xff] (%p1439_p6)  ;;  %v989_v54 = vld [vmem:[%s1681_s28 + $0x70] sm:$0xff] (%p1439_p6) }
 0x163   : > { %924 = vst [vmem:[%s1681_s28 + $0xa0] sm:$0xff] %v816_v28  ;;  %926 = vst [vmem:[%s1681_s28 + $0xb0] sm:$0xff] %v889_v29  ;;  %v818_v30 = vpop.f32.mrb[11].mxu0  ;;  %v891_v31 = vpop.f32.mrb[11].mxu1  ;;  %v987_v53 = vld [vmem:[%s1681_s28 + $0x68] sm:$0xff] (%p1439_p6)  ;;  %v991_v55 = vld [vmem:[%s1681_s28 + $0x78] sm:$0xff] (%p1439_p6) }
 0x164   : > { %925 = vst [vmem:[%s1681_s28 + $0xa8] sm:$0xff] %v818_v30  ;;  %927 = vst [vmem:[%s1681_s28 + $0xb8] sm:$0xff] %v891_v31 }
 0x165   : > { %978 = vst [vmem:[%s1724_s30 + $0x80] sm:$0xff] (%p1439_p6), %v977_v48  ;;  %980 = vst [vmem:[%s1724_s30 + $0x88] sm:$0xff] (%p1439_p6), %v979_v49 }
 0x166   : > { %942 = sbr.rel (!%p1439_p6) target bundleno = 373 (0x175), region = 55  ;;  %982 = vst [vmem:[%s1724_s30 + $0x90] sm:$0xff] (%p1439_p6), %v981_v50  ;;  %984 = vst [vmem:[%s1724_s30 + $0x98] sm:$0xff] (%p1439_p6), %v983_v51 }
 0x167   : > { %986 = vst [vmem:[%s1724_s30 + $0xc0] sm:$0xff] (%p1439_p6), %v985_v52  ;;  %988 = vst [vmem:[%s1724_s30 + $0xc8] sm:$0xff] (%p1439_p6), %v987_v53 }
 0x168   : > { %v822_v32 = vpop.f32.mrb[12].mxu0  ;;  %v895_v33 = vpop.f32.mrb[12].mxu1  ;;  %990 = vst [vmem:[%s1724_s30 + $0xd0] sm:$0xff] (%p1439_p6), %v989_v54  ;;  %v993_v56 = vld [vmem:[%s1681_s28 + $0x80] sm:$0xff] (%p1439_p6)  ;;  %992 = vst [vmem:[%s1724_s30 + $0xd8] sm:$0xff] (%p1439_p6), %v991_v55  ;;  %v997_v58 = vld [vmem:[%s1681_s28 + $0x90] sm:$0xff] (%p1439_p6) }
 0x169   : > { %928 = vst [vmem:[%s1681_s28 + $0xc0] sm:$0xff] %v822_v32  ;;  %930 = vst [vmem:[%s1681_s28 + $0xd0] sm:$0xff] %v895_v33  ;;  %v824_v34 = vpop.f32.mrb[13].mxu0  ;;  %v897_v35 = vpop.f32.mrb[13].mxu1  ;;  %v995_v57 = vld [vmem:[%s1681_s28 + $0x88] sm:$0xff] (%p1439_p6)  ;;  %v999_v59 = vld [vmem:[%s1681_s28 + $0x98] sm:$0xff] (%p1439_p6) }
 0x16a   : > { %929 = vst [vmem:[%s1681_s28 + $0xc8] sm:$0xff] %v824_v34  ;;  %931 = vst [vmem:[%s1681_s28 + $0xd8] sm:$0xff] %v897_v35  ;;  %v826_v36 = vpop.f32.mrb[14].mxu0  ;;  %v899_v37 = vpop.f32.mrb[14].mxu1  ;;  %v1001_v60 = vld [vmem:[%s1681_s28 + $0xa0] sm:$0xff] (%p1439_p6)  ;;  %v1005_v62 = vld [vmem:[%s1681_s28 + $0xb0] sm:$0xff] (%p1439_p6) }
 0x16b   : > { %932 = vst [vmem:[%s1681_s28 + $0xe0] sm:$0xff] %v826_v36  ;;  %934 = vst [vmem:[%s1681_s28 + $0xf0] sm:$0xff] %v899_v37  ;;  %v828_v38 = vpop.f32.mrb[15].mxu0  ;;  %v901_v39 = vpop.f32.mrb[15].mxu1  ;;  %v1003_v61 = vld [vmem:[%s1681_s28 + $0xa8] sm:$0xff] (%p1439_p6)  ;;  %v1007_v63 = vld [vmem:[%s1681_s28 + $0xb8] sm:$0xff] (%p1439_p6) }
 0x16c   : > { %933 = vst [vmem:[%s1681_s28 + $0xe8] sm:$0xff] %v828_v38  ;;  %935 = vst [vmem:[%s1681_s28 + $0xf8] sm:$0xff] %v901_v39 }
 0x16d   : > { %994 = vst [vmem:[%s1724_s30 + $0x100] sm:$0xff] %v993_v56  ;;  %996 = vst [vmem:[%s1724_s30 + $0x108] sm:$0xff] %v995_v57 }
 0x16e   : > { %998 = vst [vmem:[%s1724_s30 + $0x110] sm:$0xff] %v997_v58  ;;  %1000 = vst [vmem:[%s1724_s30 + $0x118] sm:$0xff] %v999_v59 }
 0x16f   : > { %1002 = vst [vmem:[%s1724_s30 + $0x140] sm:$0xff] %v1001_v60  ;;  %1004 = vst [vmem:[%s1724_s30 + $0x148] sm:$0xff] %v1003_v61 }
 0x170   : > { %1006 = vst [vmem:[%s1724_s30 + $0x150] sm:$0xff] %v1005_v62  ;;  %1008 = vst [vmem:[%s1724_s30 + $0x158] sm:$0xff] %v1007_v63  ;;  %v1009_v0 = vld [vmem:[%s1681_s28 + $0xc0] sm:$0xff]  ;;  %v1013_v2 = vld [vmem:[%s1681_s28 + $0xd0] sm:$0xff] }
 0x171   : > { %v1011_v1 = vld [vmem:[%s1681_s28 + $0xc8] sm:$0xff]  ;;  %1010 = vst [vmem:[%s1724_s30 + $0x180] sm:$0xff] %v1009_v0  ;;  %1014 = vst [vmem:[%s1724_s30 + $0x190] sm:$0xff] %v1013_v2  ;;  %v1015_v3 = vld [vmem:[%s1681_s28 + $0xd8] sm:$0xff] }
 0x172   : > { %1012 = vst [vmem:[%s1724_s30 + $0x188] sm:$0xff] %v1011_v1  ;;  %v1017_v4 = vld [vmem:[%s1681_s28 + $0xe0] sm:$0xff]  ;;  %1016 = vst [vmem:[%s1724_s30 + $0x198] sm:$0xff] %v1015_v3  ;;  %v1021_v6 = vld [vmem:[%s1681_s28 + $0xf0] sm:$0xff] }
 0x173   : > { %v1019_v5 = vld [vmem:[%s1681_s28 + $0xe8] sm:$0xff]  ;;  %1018 = vst [vmem:[%s1724_s30 + $0x1c0] sm:$0xff] %v1017_v4  ;;  %v1023_v7 = vld [vmem:[%s1681_s28 + $0xf8] sm:$0xff]  ;;  %1022 = vst [vmem:[%s1724_s30 + $0x1d0] sm:$0xff] %v1021_v6 }
 0x174   : > { %1020 = vst [vmem:[%s1724_s30 + $0x1c8] sm:$0xff] %v1019_v5  ;;  %1024 = vst [vmem:[%s1724_s30 + $0x1d8] sm:$0xff] %v1023_v7 }
 0x175 PF: > { %s12_s13 = sadd.s32 1, %s1387_s13   ;;  %s1806_s9 = smov %s1375_s10 }
 0x176   : > { %p9_p11 = scmp.ge.s32.totalorder %s12_s13, 4   ;;  %s1807_s10 = smov %s1444_s19 }
 0x177   : > { %s1808_s11 = smov %s1383_s12  ;;  %s1809_s12 = smov %s1811_s14 }
 0x178   :  { %11 = sbr.rel (!%p9_p11) target bundleno = 3 (0x3), region = 112 }

// kernel: decoder_forward.2
= control target key start
LH: loop header
LB: loop body
LE: loop exit
PB: predicated region body
PF: predicated region fallthrough
CT: control target
= control target key end

     0   :  { %9 = vsyncpa [#allocation4], 0  ;;  %s8815_s0 = inlined_call_operand.vmem [shape: bf16[16,2048], index: 0, kind: input, shape index: {}]   ;;  %s8816_s1 = inlined_call_operand.hbm [shape: bf16[2048,512], index: 1, kind: input, shape index: {}]   ;;  %s8817_s2 = inlined_call_operand.hbm [shape: f32[1,512], index: 2, kind: input, shape index: {}]   ;;  %s8818_s3 = inlined_call_operand.hbm [shape: bf16[512,4096], index: 3, kind: input, shape index: {}]   ;;  %s8819_s4 = inlined_call_operand.vmem [shape: f32[16,4096], index: 4, kind: output, shape index: {}]  }
   0x1   :  { %10 = vsyncpa [#allocation6], 0  ;;  %s8175_s15 = smov 0   ;;  %s8177_s16 = smov 0  }
   0x2   :  { %s8179_s17 = smov 0   ;;  %s8181_s18 = smov 0  }
   0x3   :  { %s8183_s19 = smov 0   ;;  %s8185_s20 = smov 0  }
   0x4 LB: > { %s8204_s21 = sadd.s32 4294967295, %s8140_s20   ;;  %s103_s22 = sadd.s32 1, %s8128_s17  ;;  %s8140_s20 = sphi %s8185_s20, %s16_s20   ;;  %s8136_s19 = sphi %s8183_s19, %s8838_s19   ;;  %s8132_s18 = sphi %s8181_s18, %s8837_s18   ;;  %s8128_s17 = sphi %s8179_s17, %s8836_s17   ;;  %s8124_s16 = sphi %s8177_s16, %s8835_s16   ;;  %s8120_s15 = sphi %s8175_s15, %s8834_s15  }
   0x5   : > { %p110_p0 = scmp.ne.s32.totalorder %s8128_s17, %s8124_s16  ;;  %p111_p1 = scmp.eq.s32.totalorder %s8140_s20, 0 }
   0x6   : > { %p116_p2 = scmp.ne.s32.totalorder %s8124_s16, %s8120_s15  ;;  %p8820_p3 = scmp.eq.s32.totalorder %s8204_s21, 0 }
   0x7   : > { %p8212_p4 = por %p111_p1, %p110_p0  ;;  %p142_p5 = scmp.eq.s32.totalorder %s8204_s21, 3 }
   0x8   : > { %p8219_p6 = por %p8820_p3, %p116_p2  ;;  %p6262_p7 = scmp.ge.s32.totalorder %s8140_s20, 1 }
   0x9   : > { %p8224_p8 = por %p142_p5, %p110_p0  ;;  %p155_p9 = scmp.lt.s32.totalorder %s8140_s20, 5 }
   0xa   : > { %s8823_s24 = scalar_select %p8219_p6, 1, 0 }
   0xb   : > { %s8824_s25 = scalar_select %p8224_p8, 1, 0 }
   0xc   : > { %p8229_p10 = pnand %p6262_p7, %p155_p9  ;;  %s8142_s27 = smov [#allocation3]  }
   0xd   : > { %s177_s28 = sshll.u32 %s8142_s27, 4  ;;  %p7170_p12 = scmp.lt.s32.totalorder %s8140_s20, 4  ;;  %s8233_s28 = int_to_ptr.vmem [resolvable:$true] %s177_s28 }
   0xe   : > { %p7157_p11 = pneg %p8229_p10  ;;  %s8143_s5 = smov [#allocation5]  }
   0xf   : > { %p8246_p0 = pnand %p7170_p12, %p8212_p4  ;;  %s191_s6 = sshll.u32 %s8143_s5, 4  ;;  %s8250_s6 = int_to_ptr.vmem [resolvable:$true] %s191_s6 }
  0x10   : > { %p8240_p13 = pnand %p7157_p11, %p8820_p3  ;;  %s7996_s9 = scalar_lea.hbm %s8816_s1, 65536 }
  0x11   : > { %p7997_p1 = scmp.ne.s32.totalorder %s8816_s1, %s7996_s9  ;;  %p8003_p7 = scmp.lt.u32.totalorder %s7996_s9, %s8816_s1 }
  0x12   : > { %p7998_p2 = pneg %p8240_p13 }
  0x14   : > { %p7999_p4 = pnand %p7998_p2, %p7997_p1 }
  0x16   : > { %p8000_p5 = pneg %p7999_p4 }
  0x18   : > { %p8005_p9 = pnand %p8003_p7, %p8000_p5 }
  0x1a   : > { %8008 = shalt.err (!%p8005_p9)
}
  0x1b   : > { %s8009_s14 = scalar_lea.vmem %s8233_s28, 65536  ;;  %p8017_p8 = scmp.lt.s32.totalorder %s8233_s28, %s8233_s28 }
  0x1c   : > { %p8010_p11 = scmp.ne.s32.totalorder %s8233_s28, %s8009_s14  ;;  %p8018_p1 = scmp.lt.s32.totalorder %s8009_s14, %s8009_s14 }
  0x1e   : > { %p8012_p12 = pnand %p8010_p11, %p7998_p2  ;;  %p8019_p4 = por %p8018_p1, %p8017_p8 }
  0x20   : > { %p8013_p3 = pneg %p8012_p12 }
  0x22   : > { %p8020_p6 = pnand %p8019_p4, %p8013_p3 }
  0x24   : > { %8023 = shalt.err (!%p8020_p6)
}
  0x25   : > { %s8144_s15 = smov 256   ;;  %s8145_s23 = smov 16  }
  0x26   : > { %7160 = dma.hbm_to_vmem [thread:$0]  (!%p8240_p13), %s8816_s1, 65536, %s8233_s28, [#allocation4], %s8144_s15, %s8144_s15, %s8145_s23  }
  0x27   : > { %s8024_s9 = scalar_lea.hbm %s8817_s2, 64 }
  0x28   : > { %p8025_p8 = scmp.ne.s32.totalorder %s8817_s2, %s8024_s9  ;;  %p8031_p5 = scmp.lt.u32.totalorder %s8024_s9, %s8817_s2 }
  0x2a   : > { %p8027_p3 = pnand %p8025_p8, %p7998_p2 }
  0x2c   : > { %p8028_p6 = pneg %p8027_p3 }
  0x2e   : > { %p8033_p7 = pnand %p8031_p5, %p8028_p6 }
  0x30   : > { %8036 = shalt.err (!%p8033_p7)
}
  0x31   : > { %s8037_s28 = scalar_lea.vmem %s8250_s6, 64  ;;  %p8045_p1 = scmp.lt.s32.totalorder %s8250_s6, %s8250_s6 }
  0x32   : > { %p8038_p9 = scmp.ne.s32.totalorder %s8250_s6, %s8037_s28  ;;  %p8046_p4 = scmp.lt.s32.totalorder %s8037_s28, %s8037_s28 }
  0x34   : > { %p8040_p11 = pnand %p8038_p9, %p7998_p2  ;;  %p8047_p8 = por %p8046_p4, %p8045_p1 }
  0x36   : > { %p8041_p12 = pneg %p8040_p11 }
  0x38   : > { %p8048_p3 = pnand %p8047_p8, %p8041_p12 }
  0x3a   : > { %8051 = shalt.err (!%p8048_p3)
}
  0x3b   : > { %7163 = dma.hbm_to_vmem [thread:$0]  (!%p8240_p13), %s8817_s2, 64, %s8250_s6, [#allocation6]  }
  0x3c   : > { %s202_s23 = sand.u32 1, %s8140_s20   ;;  %s25_s27 = sadd.s32 1, %s8136_s19 }
  0x3d   : > { %p26_p2 = scmp.ge.s32.totalorder %s25_s27, 4  ;;  %s204_s5 = sand.u32 1, %s8128_s17  }
  0x3e   : > { %s6267_s7 = sshll.u32 %s204_s5, 11  ;;  %s7065_s29 = sshll.u32 %s8136_s19, 9 }
  0x3f   : > { %s8840_s27 = smov (%p26_p2, %s25_s27), 0  ;;  %s8313_s10 = scalar_lea.hbm %s8818_s3, %s7065_s29 }
  0x40   : > { %s100_s6 = ssub.s32 %s8136_s19, %s8840_s27  ;;  %s206_s11 = scalar_lea.vmem [#allocation7], %s6267_s7 }
  0x41   : > { %s213_s12 = sshll.u32 %s206_s11, 4  ;;  %p101_p13 = scmp.eq.s32.totalorder %s100_s6, 0  ;;  %s8317_s12 = int_to_ptr.vmem [resolvable:$true] %s213_s12 }
  0x42   : > { %s8324_s28 = scalar_lea.sflag [#allocation4], %s202_s23  ;;  %s8052_s14 = scalar_lea.hbm %s8313_s10, 32768 }
  0x43   : > { %s8322_s13 = scalar_select %p101_p13, %s8128_s17, %s103_s22  }
  0x44   : > { %p8053_p6 = scmp.ne.s32.totalorder %s8313_s10, %s8052_s14  ;;  %p8054_p5 = pneg %p8246_p0 }
  0x45   : > { %s8057_s7 = scalar_lea.hbm %s8818_s3, 131072  ;;  %p8058_p11 = scmp.lt.u32.totalorder %s8313_s10, %s8818_s3 }
  0x46   : > { %p8055_p7 = pnand %p8054_p5, %p8053_p6  ;;  %p8059_p12 = scmp.lt.u32.totalorder %s8057_s7, %s8052_s14 }
  0x47   : > { %p8061_p4 = scmp.lt.u32.totalorder %s8052_s14, %s8313_s10 }
  0x48   : > { %p8056_p9 = pneg %p8055_p7  ;;  %p8060_p1 = por %p8059_p12, %p8058_p11 }
  0x4a   : > { %p8062_p8 = por %p8061_p4, %p8060_p1 }
  0x4c   : > { %p8063_p3 = pnand %p8062_p8, %p8056_p9 }
  0x4e   : > { %8066 = shalt.err (!%p8063_p3)
}
  0x4f   : > { %s8067_s22 = scalar_lea.vmem %s8317_s12, 32768  ;;  %s8146_s23 = smov [#allocation7]  }
  0x50   : > { %p8068_p2 = scmp.ne.s32.totalorder %s8317_s12, %s8067_s22  ;;  %s8072_s9 = sshll.u32 %s8146_s23, 4  ;;  %s8073_s9 = int_to_ptr.vmem [resolvable:$false] %s8072_s9 }
  0x51   : > { %s8074_s6 = scalar_lea.vmem %s8073_s9, 65536  ;;  %p8075_p7 = scmp.lt.s32.totalorder %s8317_s12, %s8073_s9 }
  0x52   : > { %p8070_p13 = pnand %p8068_p2, %p8054_p5  ;;  %p8076_p11 = scmp.lt.s32.totalorder %s8074_s6, %s8067_s22 }
  0x54   : > { %p8071_p6 = pneg %p8070_p13  ;;  %p8077_p12 = por %p8076_p11, %p8075_p7 }
  0x56   : > { %p8078_p1 = pnand %p8077_p12, %p8071_p6 }
  0x58   : > { %8081 = shalt.err (!%p8078_p1)
}
  0x59   : > { %s8147_s11 = smov 2048   ;;  %s8148_s14 = smov 512  }
  0x5a   : > { %s8149_s15 = smov 32   ;;  %225 = sbr.rel (%p8229_p10) target bundleno = 1329 (0x531), region = 36 }
  0x5b   : > { %7167 = dma.hbm_to_vmem [thread:$0]  (!%p8246_p0), %s8313_s10, 32768, %s8317_s12, %s8324_s28, %s8147_s11, %s8148_s14, %s8149_s15  }
  0x5c   : > { %p8828_p5 = scmp.eq.s32.totalorder (!%p8229_p10), %s8204_s21, 0 }
  0x61   : > { %8107 = dma.done.wait (%p8828_p5), [#allocation4], 65536   ;;  %p8829_p9 = pmov %p8828_p5 }
  0x62   : > { %p8830_p4 = pmov %p8828_p5 }
  0x63   : > { %8109 = vsyncadd (%p8829_p9), [#allocation4], 4294901760 }
  0x64   : > { %8111 = dma.done.wait (%p8830_p4), [#allocation6], 64   ;;  %p8831_p8 = pmov %p8830_p4 }
  0x65   : > { %s235_s30 = sand.u32 1, %s8204_s21   ;;  %s237_s10 = sand.u32 1, %s8124_s16  }
  0x66   : > { %8113 = vsyncadd (%p8831_p8), [#allocation6], 4294967232  ;;  %s6273_s12 = sshll.u32 %s237_s10, 11  ;;  %s236_s26 = scalar_lea.sflag [#allocation4], %s235_s30 }
  0x67   : > { %s8364_s28 = scalar_lea.vmem [#allocation7], %s6273_s12  ;;  %p8832_p10 = scmp.ne.s32.totalorder %s8823_s24, 0 }
  0x69   : > { %8115 = dma.done.wait (%p8832_p10), %s236_s26, 32768  }
  0x6a   : > { %8117 = vsyncadd (%p8832_p10), %s236_s26, 4294934528  ;;  %s6274_s5 = sshll.u32 %s237_s10, 7  ;;  %p6275_p0 = scmp.ne.s32.totalorder %s8132_s18, 0 }
  0x6b   : > { %s8370_s7 = scalar_lea.vmem [#allocation8], %s6274_s5  ;;  %v7228_v0 = vld [vmem:[#allocation3 + $0x4] ss:$16 sps:$4 sm:$0xff] (!%p6275_p0)   ;;  %v7230_v1 = vld [vmem:[#allocation3 + $0xc] ss:$16 sps:$4 sm:$0xff] (!%p6275_p0)  }
  0x6c   : > { %282 = sbr.rel (%p6275_p0) target bundleno = 845 (0x34d), region = 52  ;;  %3473 = vmatprep.subr.bf16.mxu0 (!%p6275_p0), %v7228_v0  ;;  %v7232_v2 = vld [vmem:[#allocation3] ss:$16 sps:$4 sm:$0xff] (!%p6275_p0)   ;;  %v7233_v3 = vld [vmem:[#allocation3 + $0x8] ss:$16 sps:$4 sm:$0xff] (!%p6275_p0)   ;;  %3817 = vmatprep.subr.bf16.mxu1 (!%p6275_p0), %v7230_v1 }
  0x6d   : > { %v7234_v4 = vld [vmem:[#allocation3 + $0x24] ss:$16 sps:$4 sm:$0xff] (!%p6275_p0)   ;;  %3474 = vmatpush1.bf16.msra.mxu0 (!%p6275_p0), %v7232_v2  ;;  %3818 = vmatpush1.bf16.msra.mxu1 (!%p6275_p0), %v7233_v3  ;;  %v7236_v5 = vld [vmem:[#allocation3 + $0x2c] ss:$16 sps:$4 sm:$0xff] (!%p6275_p0)   ;;  %v7238_v6 = vld [vmem:[#allocation3 + $0x20] ss:$16 sps:$4 sm:$0xff] (!%p6275_p0)  }
  0x6e   : > { %3475 = vmatprep.subr.bf16.mxu0 (!%p6275_p0), %v7234_v4  ;;  %v7239_v7 = vld [vmem:[#allocation3 + $0x28] ss:$16 sps:$4 sm:$0xff] (!%p6275_p0)   ;;  %3819 = vmatprep.subr.bf16.mxu1 (!%p6275_p0), %v7236_v5  ;;  %v7240_v8 = vld [vmem:[#allocation3 + $0x44] ss:$16 sps:$4 sm:$0xff] (!%p6275_p0)   ;;  %v7242_v9 = vld [vmem:[#allocation3 + $0x4c] ss:$16 sps:$4 sm:$0xff] (!%p6275_p0)  }
  0x6f   : > { %v7244_v10 = vld [vmem:[#allocation3 + $0x40] ss:$16 sps:$4 sm:$0xff] (!%p6275_p0)   ;;  %v7245_v11 = vld [vmem:[#allocation3 + $0x48] ss:$16 sps:$4 sm:$0xff] (!%p6275_p0)   ;;  %v7246_v12 = vld [vmem:[#allocation3 + $0x64] ss:$16 sps:$4 sm:$0xff] (!%p6275_p0)  }
  0x70   : > { %v7248_v13 = vld [vmem:[#allocation3 + $0x6c] ss:$16 sps:$4 sm:$0xff] (!%p6275_p0)   ;;  %v7250_v14 = vld [vmem:[#allocation3 + $0x60] ss:$16 sps:$4 sm:$0xff] (!%p6275_p0)   ;;  %v7251_v15 = vld [vmem:[#allocation3 + $0x68] ss:$16 sps:$4 sm:$0xff] (!%p6275_p0)  }
  0x71   : > { %3476 = vmatpush1.bf16.msra.mxu0 (!%p6275_p0), %v7238_v6  ;;  %3820 = vmatpush1.bf16.msra.mxu1 (!%p6275_p0), %v7239_v7  ;;  %v7252_v16 = vld [vmem:[#allocation3 + $0x84] ss:$16 sps:$4 sm:$0xff] (!%p6275_p0)   ;;  %v7254_v17 = vld [vmem:[#allocation3 + $0x8c] ss:$16 sps:$4 sm:$0xff] (!%p6275_p0)   ;;  %v7256_v18 = vld [vmem:[#allocation3 + $0x80] ss:$16 sps:$4 sm:$0xff] (!%p6275_p0)  }
  0x72   : > { %3477 = vmatprep.subr.bf16.mxu0 (!%p6275_p0), %v7240_v8  ;;  %3821 = vmatprep.subr.bf16.mxu1 (!%p6275_p0), %v7242_v9  ;;  %v7257_v19 = vld [vmem:[#allocation3 + $0x88] ss:$16 sps:$4 sm:$0xff] (!%p6275_p0)   ;;  %v7258_v20 = vld [vmem:[#allocation3 + $0xa4] ss:$16 sps:$4 sm:$0xff] (!%p6275_p0)   ;;  %v7260_v21 = vld [vmem:[#allocation3 + $0xac] ss:$16 sps:$4 sm:$0xff] (!%p6275_p0)  }
  0x73   : > { %v7262_v22 = vld [vmem:[#allocation3 + $0xa0] ss:$16 sps:$4 sm:$0xff]   ;;  %v7263_v23 = vld [vmem:[#allocation3 + $0xa8] ss:$16 sps:$4 sm:$0xff]   ;;  %v7264_v24 = vld [vmem:[#allocation3 + $0xc4] ss:$16 sps:$4 sm:$0xff]  }
  0x74   : > { %v7266_v25 = vld [vmem:[#allocation3 + $0xcc] ss:$16 sps:$4 sm:$0xff]   ;;  %v7268_v26 = vld [vmem:[#allocation3 + $0xc0] ss:$16 sps:$4 sm:$0xff]   ;;  %v7269_v27 = vld [vmem:[#allocation3 + $0xc8] ss:$16 sps:$4 sm:$0xff]  }
  0x75   : > { %3478 = vmatpush1.bf16.msra.mxu0 %v7244_v10  ;;  %3822 = vmatpush1.bf16.msra.mxu1 %v7245_v11  ;;  %v7270_v28 = vld [vmem:[#allocation3 + $0xe4] ss:$16 sps:$4 sm:$0xff]   ;;  %v7272_v29 = vld [vmem:[#allocation3 + $0xec] ss:$16 sps:$4 sm:$0xff]   ;;  %v7274_v30 = vld [vmem:[#allocation3 + $0xe0] ss:$16 sps:$4 sm:$0xff]  }
  0x76   : > { %3479 = vmatprep.subr.bf16.mxu0 %v7246_v12  ;;  %3823 = vmatprep.subr.bf16.mxu1 %v7248_v13  ;;  %v7275_v31 = vld [vmem:[#allocation3 + $0xe8] ss:$16 sps:$4 sm:$0xff]   ;;  %v7276_v32 = vld [vmem:[#allocation3 + $0x104] ss:$16 sps:$4 sm:$0xff]   ;;  %v7278_v33 = vld [vmem:[#allocation3 + $0x10c] ss:$16 sps:$4 sm:$0xff]  }
  0x77   : > { %v7280_v34 = vld [vmem:[#allocation3 + $0x100] ss:$16 sps:$4 sm:$0xff]   ;;  %v7281_v35 = vld [vmem:[#allocation3 + $0x108] ss:$16 sps:$4 sm:$0xff]   ;;  %v7282_v36 = vld [vmem:[#allocation3 + $0x124] ss:$16 sps:$4 sm:$0xff]  }
  0x78   : > { %v7284_v37 = vld [vmem:[#allocation3 + $0x12c] ss:$16 sps:$4 sm:$0xff]   ;;  %v7286_v38 = vld [vmem:[#allocation3 + $0x120] ss:$16 sps:$4 sm:$0xff]   ;;  %v7287_v39 = vld [vmem:[#allocation3 + $0x128] ss:$16 sps:$4 sm:$0xff]  }
  0x79   : > { %3480 = vmatpush1.bf16.msra.mxu0 %v7250_v14  ;;  %3824 = vmatpush1.bf16.msra.mxu1 %v7251_v15  ;;  %v7288_v40 = vld [vmem:[#allocation3 + $0x144] ss:$16 sps:$4 sm:$0xff]   ;;  %v7290_v41 = vld [vmem:[#allocation3 + $0x14c] ss:$16 sps:$4 sm:$0xff]   ;;  %v7292_v42 = vld [vmem:[#allocation3 + $0x140] ss:$16 sps:$4 sm:$0xff]  }
  0x7a   : > { %3481 = vmatprep.subr.bf16.mxu0 %v7252_v16  ;;  %3825 = vmatprep.subr.bf16.mxu1 %v7254_v17  ;;  %v7293_v43 = vld [vmem:[#allocation3 + $0x148] ss:$16 sps:$4 sm:$0xff]   ;;  %v7294_v44 = vld [vmem:[#allocation3 + $0x164] ss:$16 sps:$4 sm:$0xff]   ;;  %v7296_v45 = vld [vmem:[#allocation3 + $0x16c] ss:$16 sps:$4 sm:$0xff]  }
  0x7b   : > { %v283_v46 = vld [vmem:[%s8815_s0] sm:$0xff]  ;;  %v7299_v49 = vld [vmem:[#allocation3 + $0x168] ss:$16 sps:$4 sm:$0xff]   ;;  %v7302_v52 = vld [vmem:[#allocation3 + $0x18c] ss:$16 sps:$4 sm:$0xff]  }
  0x7c   : > { %v291_v47 = vld [vmem:[%s8815_s0 + $0x40] sm:$0xff]  ;;  %v7305_v54 = vld [vmem:[#allocation3 + $0x188] ss:$16 sps:$4 sm:$0xff]   ;;  %v7308_v56 = vld [vmem:[#allocation3 + $0x1ac] ss:$16 sps:$4 sm:$0xff]  }
  0x7d   : > { %3482 = vmatpush1.bf16.msra.mxu0 %v7256_v18  ;;  %3826 = vmatpush1.bf16.msra.mxu1 %v7257_v19  ;;  %v7298_v48 = vld [vmem:[#allocation3 + $0x160] ss:$16 sps:$4 sm:$0xff]   ;;  %v6277_v50 = vcombine.high %v283_v46, %v291_v47  ;;  %v7300_v51 = vld [vmem:[#allocation3 + $0x184] ss:$16 sps:$4 sm:$0xff]   ;;  %v7311_v58 = vld [vmem:[#allocation3 + $0x1a8] ss:$16 sps:$4 sm:$0xff]   ;;  %v6276_v5 = vcombine.low %v283_v46, %v291_v47 }
  0x7e   : > { %3483 = vmatprep.subr.bf16.mxu0 %v7258_v20  ;;  %3827 = vmatprep.subr.bf16.mxu1 %v7260_v21  ;;  %v7304_v53 = vld [vmem:[#allocation3 + $0x180] ss:$16 sps:$4 sm:$0xff]   ;;  %v7306_v55 = vld [vmem:[#allocation3 + $0x1a4] ss:$16 sps:$4 sm:$0xff]   ;;  %v7314_v60 = vld [vmem:[#allocation3 + $0x1cc] ss:$16 sps:$4 sm:$0xff]  }
  0x7f   : > { %3505 = vmatprep.mubr.bf16.mxu0 %v6277_v50  ;;  %3849 = vmatprep.mubr.bf16.mxu1 %v6277_v50  ;;  %v7310_v57 = vld [vmem:[#allocation3 + $0x1a0] ss:$16 sps:$4 sm:$0xff]   ;;  %v7312_v59 = vld [vmem:[#allocation3 + $0x1c4] ss:$16 sps:$4 sm:$0xff]   ;;  %v7317_v62 = vld [vmem:[#allocation3 + $0x1c8] ss:$16 sps:$4 sm:$0xff]  }
  0x80   : > { %v7316_v61 = vld [vmem:[#allocation3 + $0x1c0] ss:$16 sps:$4 sm:$0xff]   ;;  %v7318_v63 = vld [vmem:[#allocation3 + $0x1e4] ss:$16 sps:$4 sm:$0xff]   ;;  %v7320_v0 = vld [vmem:[#allocation3 + $0x1ec] ss:$16 sps:$4 sm:$0xff]  }
  0x81   : > { %3484 = vmatpush1.bf16.msra.mxu0 %v7262_v22  ;;  %3828 = vmatpush1.bf16.msra.mxu1 %v7263_v23  ;;  %v7322_v1 = vld [vmem:[#allocation3 + $0x1e0] ss:$16 sps:$4 sm:$0xff]   ;;  %v7323_v2 = vld [vmem:[#allocation3 + $0x1e8] ss:$16 sps:$4 sm:$0xff]   ;;  %v7326_v3 = vld [vmem:[#allocation3 + $0x204] ss:$16 sps:$4 sm:$0xff]  }
  0x82   : > { %3485 = vmatprep.subr.bf16.mxu0 %v7264_v24  ;;  %3829 = vmatprep.subr.bf16.mxu1 %v7266_v25  ;;  %v7329_v4 = vld [vmem:[#allocation3 + $0x20c] ss:$16 sps:$4 sm:$0xff]   ;;  %v7324_v6 = vld [vmem:[#allocation3 + $0x200] ss:$16 sps:$4 sm:$0xff]   ;;  %v7327_v7 = vld [vmem:[#allocation3 + $0x208] ss:$16 sps:$4 sm:$0xff]  }
  0x83   : > { %v7332_v8 = vld [vmem:[#allocation3 + $0x224] ss:$16 sps:$4 sm:$0xff]   ;;  %v7335_v9 = vld [vmem:[#allocation3 + $0x22c] ss:$16 sps:$4 sm:$0xff]   ;;  %v7330_v10 = vld [vmem:[#allocation3 + $0x220] ss:$16 sps:$4 sm:$0xff]  }
  0x84   : > { %v7333_v11 = vld [vmem:[#allocation3 + $0x228] ss:$16 sps:$4 sm:$0xff]   ;;  %v7338_v12 = vld [vmem:[#allocation3 + $0x244] ss:$16 sps:$4 sm:$0xff]   ;;  %v7341_v13 = vld [vmem:[#allocation3 + $0x24c] ss:$16 sps:$4 sm:$0xff]  }
  0x85   : > { %3486 = vmatpush1.bf16.msra.mxu0 %v7268_v26  ;;  %3830 = vmatpush1.bf16.msra.mxu1 %v7269_v27  ;;  %v7336_v14 = vld [vmem:[#allocation3 + $0x240] ss:$16 sps:$4 sm:$0xff]   ;;  %v7339_v15 = vld [vmem:[#allocation3 + $0x248] ss:$16 sps:$4 sm:$0xff]   ;;  %v7344_v16 = vld [vmem:[#allocation3 + $0x264] ss:$16 sps:$4 sm:$0xff]  }
  0x86   : > { %3487 = vmatprep.subr.bf16.mxu0 %v7270_v28  ;;  %3831 = vmatprep.subr.bf16.mxu1 %v7272_v29  ;;  %v7347_v17 = vld [vmem:[#allocation3 + $0x26c] ss:$16 sps:$4 sm:$0xff]   ;;  %v7342_v18 = vld [vmem:[#allocation3 + $0x260] ss:$16 sps:$4 sm:$0xff]   ;;  %v7345_v19 = vld [vmem:[#allocation3 + $0x268] ss:$16 sps:$4 sm:$0xff]  }
  0x87   : > { %v7350_v20 = vld [vmem:[#allocation3 + $0x284] ss:$16 sps:$4 sm:$0xff]   ;;  %v7353_v21 = vld [vmem:[#allocation3 + $0x28c] ss:$16 sps:$4 sm:$0xff]   ;;  %v7348_v22 = vld [vmem:[#allocation3 + $0x280] ss:$16 sps:$4 sm:$0xff]  }
  0x88   : > { %v7351_v23 = vld [vmem:[#allocation3 + $0x288] ss:$16 sps:$4 sm:$0xff]   ;;  %v7356_v24 = vld [vmem:[#allocation3 + $0x2a4] ss:$16 sps:$4 sm:$0xff]   ;;  %v7359_v25 = vld [vmem:[#allocation3 + $0x2ac] ss:$16 sps:$4 sm:$0xff]  }
  0x89   : > { %3488 = vmatpush1.bf16.msra.mxu0 %v7274_v30  ;;  %3832 = vmatpush1.bf16.msra.mxu1 %v7275_v31  ;;  %v7354_v26 = vld [vmem:[#allocation3 + $0x2a0] ss:$16 sps:$4 sm:$0xff]   ;;  %v7357_v27 = vld [vmem:[#allocation3 + $0x2a8] ss:$16 sps:$4 sm:$0xff]   ;;  %v7362_v28 = vld [vmem:[#allocation3 + $0x2c4] ss:$16 sps:$4 sm:$0xff]  }
  0x8a   : > { %3489 = vmatprep.subr.bf16.mxu0 %v7276_v32  ;;  %3833 = vmatprep.subr.bf16.mxu1 %v7278_v33  ;;  %v7365_v29 = vld [vmem:[#allocation3 + $0x2cc] ss:$16 sps:$4 sm:$0xff]   ;;  %v7360_v32 = vld [vmem:[#allocation3 + $0x2c0] ss:$16 sps:$4 sm:$0xff]   ;;  %v7363_v33 = vld [vmem:[#allocation3 + $0x2c8] ss:$16 sps:$4 sm:$0xff]  }
  0x8b   : > { %v8382_v30 = vld [vmem:[%s8815_s0 + $0x8] sm:$0xff]  ;;  %v7386_v47 = vld [vmem:[#allocation3 + $0x344] ss:$16 sps:$4 sm:$0xff]  }
  0x8c   : > { %v8387_v31 = vld [vmem:[%s8815_s0 + $0x48] sm:$0xff] }
  0x8d   : > { %3490 = vmatpush1.bf16.msra.mxu0 %v7280_v34  ;;  %3834 = vmatpush1.bf16.msra.mxu1 %v7281_v35  ;;  %v6279_v34 = vcombine.high %v8382_v30, %v8387_v31  ;;  %v7368_v35 = vld [vmem:[#allocation3 + $0x2e4] ss:$16 sps:$4 sm:$0xff]   ;;  %v7381_v46 = vld [vmem:[#allocation3 + $0x328] ss:$16 sps:$4 sm:$0xff]  }
  0x8e   : > { %3491 = vmatprep.subr.bf16.mxu0 %v7282_v36  ;;  %3835 = vmatprep.subr.bf16.mxu1 %v7284_v37  ;;  %v7371_v36 = vld [vmem:[#allocation3 + $0x2ec] ss:$16 sps:$4 sm:$0xff]   ;;  %v7366_v37 = vld [vmem:[#allocation3 + $0x2e0] ss:$16 sps:$4 sm:$0xff]   ;;  %v7387_v50 = vld [vmem:[#allocation3 + $0x348] ss:$16 sps:$4 sm:$0xff]  }
  0x91   : > { %3492 = vmatpush1.bf16.msra.mxu0 %v7286_v38  ;;  %3836 = vmatpush1.bf16.msra.mxu1 %v7287_v39  ;;  %v7369_v38 = vld [vmem:[#allocation3 + $0x2e8] ss:$16 sps:$4 sm:$0xff]   ;;  %v7374_v39 = vld [vmem:[#allocation3 + $0x304] ss:$16 sps:$4 sm:$0xff]  }
  0x92   : > { %3493 = vmatprep.subr.bf16.mxu0 %v7288_v40  ;;  %3837 = vmatprep.subr.bf16.mxu1 %v7290_v41  ;;  %v7377_v40 = vld [vmem:[#allocation3 + $0x30c] ss:$16 sps:$4 sm:$0xff]   ;;  %v7372_v41 = vld [vmem:[#allocation3 + $0x300] ss:$16 sps:$4 sm:$0xff]  }
  0x95   : > { %3494 = vmatpush1.bf16.msra.mxu0 %v7292_v42  ;;  %3838 = vmatpush1.bf16.msra.mxu1 %v7293_v43  ;;  %v7375_v42 = vld [vmem:[#allocation3 + $0x308] ss:$16 sps:$4 sm:$0xff]   ;;  %v7380_v43 = vld [vmem:[#allocation3 + $0x324] ss:$16 sps:$4 sm:$0xff]  }
  0x96   : > { %3495 = vmatprep.subr.bf16.mxu0 %v7294_v44  ;;  %3839 = vmatprep.subr.bf16.mxu1 %v7296_v45  ;;  %v7383_v44 = vld [vmem:[#allocation3 + $0x32c] ss:$16 sps:$4 sm:$0xff]   ;;  %v7378_v45 = vld [vmem:[#allocation3 + $0x320] ss:$16 sps:$4 sm:$0xff]  }
  0x99   : > { %3496 = vmatpush1.bf16.msra.mxu0 %v7298_v48  ;;  %3840 = vmatpush1.bf16.msra.mxu1 %v7299_v49  ;;  %v7389_v48 = vld [vmem:[#allocation3 + $0x34c] ss:$16 sps:$4 sm:$0xff]   ;;  %v7384_v49 = vld [vmem:[#allocation3 + $0x340] ss:$16 sps:$4 sm:$0xff]  }
  0x9a   : > { %3497 = vmatprep.subr.bf16.mxu0 %v7300_v51  ;;  %3841 = vmatprep.subr.bf16.mxu1 %v7302_v52  ;;  %v7392_v51 = vld [vmem:[#allocation3 + $0x364] ss:$16 sps:$4 sm:$0xff]   ;;  %v7395_v52 = vld [vmem:[#allocation3 + $0x36c] ss:$16 sps:$4 sm:$0xff]  }
  0x9d   : > { %3498 = vmatpush1.bf16.msra.mxu0 %v7304_v53  ;;  %3842 = vmatpush1.bf16.msra.mxu1 %v7305_v54  ;;  %v7390_v53 = vld [vmem:[#allocation3 + $0x360] ss:$16 sps:$4 sm:$0xff]   ;;  %v7393_v54 = vld [vmem:[#allocation3 + $0x368] ss:$16 sps:$4 sm:$0xff]  }
  0x9e   : > { %3499 = vmatprep.subr.bf16.mxu0 %v7306_v55  ;;  %3843 = vmatprep.subr.bf16.mxu1 %v7308_v56  ;;  %v7398_v55 = vld [vmem:[#allocation3 + $0x384] ss:$16 sps:$4 sm:$0xff]   ;;  %v7401_v56 = vld [vmem:[#allocation3 + $0x38c] ss:$16 sps:$4 sm:$0xff]  }
  0xa1   : > { %3500 = vmatpush1.bf16.msra.mxu0 %v7310_v57  ;;  %3844 = vmatpush1.bf16.msra.mxu1 %v7311_v58  ;;  %v7396_v57 = vld [vmem:[#allocation3 + $0x380] ss:$16 sps:$4 sm:$0xff]   ;;  %v7399_v58 = vld [vmem:[#allocation3 + $0x388] ss:$16 sps:$4 sm:$0xff]  }
  0xa2   : > { %3501 = vmatprep.subr.bf16.mxu0 %v7312_v59  ;;  %3845 = vmatprep.subr.bf16.mxu1 %v7314_v60  ;;  %v7404_v59 = vld [vmem:[#allocation3 + $0x3a4] ss:$16 sps:$4 sm:$0xff]   ;;  %v7407_v60 = vld [vmem:[#allocation3 + $0x3ac] ss:$16 sps:$4 sm:$0xff]  }
  0xa5   : > { %3502 = vmatpush1.bf16.msra.mxu0 %v7316_v61  ;;  %3846 = vmatpush1.bf16.msra.mxu1 %v7317_v62  ;;  %v7402_v61 = vld [vmem:[#allocation3 + $0x3a0] ss:$16 sps:$4 sm:$0xff]   ;;  %v7405_v62 = vld [vmem:[#allocation3 + $0x3a8] ss:$16 sps:$4 sm:$0xff]  }
  0xa6   : > { %3503 = vmatprep.subr.bf16.mxu0 %v7318_v63  ;;  %3847 = vmatprep.subr.bf16.mxu1 %v7320_v0  ;;  %v7410_v63 = vld [vmem:[#allocation3 + $0x3c4] ss:$16 sps:$4 sm:$0xff]   ;;  %v7413_v0 = vld [vmem:[#allocation3 + $0x3cc] ss:$16 sps:$4 sm:$0xff]  }
  0xa9   : > { %3504 = vmatpush1.bf16.msra.mxu0 %v7322_v1  ;;  %3848 = vmatpush1.bf16.msra.mxu1 %v7323_v2  ;;  %v7408_v1 = vld [vmem:[#allocation3 + $0x3c0] ss:$16 sps:$4 sm:$0xff]   ;;  %v7411_v2 = vld [vmem:[#allocation3 + $0x3c8] ss:$16 sps:$4 sm:$0xff]  }
  0xaa   : > { %3516 = vmatprep.subr.bf16.mxu0 %v7326_v3  ;;  %3860 = vmatprep.subr.bf16.mxu1 %v7329_v4  ;;  %v7416_v3 = vld [vmem:[#allocation3 + $0x3e4] ss:$16 sps:$4 sm:$0xff]   ;;  %v7419_v4 = vld [vmem:[#allocation3 + $0x3ec] ss:$16 sps:$4 sm:$0xff]  }
  0xac   : > { %3506 = vmatmul.mubr.bf16.vlgmr.msra.gmra.mrb[0].mxu0 %v6276_v5  ;;  %3850 = vmatmul.mubr.bf16.vlgmr.msra.gmra.mrb[0].mxu1 %v6276_v5  ;;  %v7414_v5 = vld [vmem:[#allocation3 + $0x3e0] ss:$16 sps:$4 sm:$0xff]  }
  0xad   : > { %3517 = vmatpush1.bf16.msra.mxu0 %v7324_v6  ;;  %3861 = vmatpush1.bf16.msra.mxu1 %v7327_v7  ;;  %v7417_v6 = vld [vmem:[#allocation3 + $0x3e8] ss:$16 sps:$4 sm:$0xff]   ;;  %v7422_v7 = vld [vmem:[#allocation3 + $0x404] ss:$16 sps:$4 sm:$0xff]  }
  0xae   : > { %3518 = vmatprep.subr.bf16.mxu0 %v7332_v8  ;;  %3862 = vmatprep.subr.bf16.mxu1 %v7335_v9  ;;  %v7425_v8 = vld [vmem:[#allocation3 + $0x40c] ss:$16 sps:$4 sm:$0xff]   ;;  %v6278_v9 = vcombine.low %v8382_v30, %v8387_v31  ;;  %v7447_v30 = vld [vmem:[#allocation3 + $0x488] ss:$16 sps:$4 sm:$0xff]   ;;  %v7452_v31 = vld [vmem:[#allocation3 + $0x4a4] ss:$16 sps:$4 sm:$0xff]  }
  0xaf   : > { %3548 = vmatprep.mubr.bf16.mxu0 %v6279_v34  ;;  %3892 = vmatprep.mubr.bf16.mxu1 %v6279_v34  ;;  %v7453_v34 = vld [vmem:[#allocation3 + $0x4a8] ss:$16 sps:$4 sm:$0xff]  }
  0xb1   : > { %3519 = vmatpush1.bf16.msra.mxu0 %v7330_v10  ;;  %3863 = vmatpush1.bf16.msra.mxu1 %v7333_v11  ;;  %v7420_v10 = vld [vmem:[#allocation3 + $0x400] ss:$16 sps:$4 sm:$0xff]   ;;  %v7423_v11 = vld [vmem:[#allocation3 + $0x408] ss:$16 sps:$4 sm:$0xff]  }
  0xb2   : > { %3520 = vmatprep.subr.bf16.mxu0 %v7338_v12  ;;  %3864 = vmatprep.subr.bf16.mxu1 %v7341_v13  ;;  %v7428_v12 = vld [vmem:[#allocation3 + $0x424] ss:$16 sps:$4 sm:$0xff]   ;;  %v7431_v13 = vld [vmem:[#allocation3 + $0x42c] ss:$16 sps:$4 sm:$0xff]  }
  0xb5   : > { %3521 = vmatpush1.bf16.msra.mxu0 %v7336_v14  ;;  %3865 = vmatpush1.bf16.msra.mxu1 %v7339_v15  ;;  %v8396_v14 = vld [vmem:[%s8815_s0 + $0x10] sm:$0xff] }
  0xb6   : > { %3522 = vmatprep.subr.bf16.mxu0 %v7344_v16  ;;  %3866 = vmatprep.subr.bf16.mxu1 %v7347_v17  ;;  %v8401_v15 = vld [vmem:[%s8815_s0 + $0x50] sm:$0xff] }
  0xb7   : > { %v6281_v16 = vcombine.high %v8396_v14, %v8401_v15  ;;  %v7426_v17 = vld [vmem:[#allocation3 + $0x420] ss:$16 sps:$4 sm:$0xff]  }
  0xb9   : > { %3523 = vmatpush1.bf16.msra.mxu0 %v7342_v18  ;;  %3867 = vmatpush1.bf16.msra.mxu1 %v7345_v19  ;;  %v7429_v18 = vld [vmem:[#allocation3 + $0x428] ss:$16 sps:$4 sm:$0xff]   ;;  %v7434_v19 = vld [vmem:[#allocation3 + $0x444] ss:$16 sps:$4 sm:$0xff]  }
  0xba   : > { %3524 = vmatprep.subr.bf16.mxu0 %v7350_v20  ;;  %3868 = vmatprep.subr.bf16.mxu1 %v7353_v21  ;;  %v7437_v20 = vld [vmem:[#allocation3 + $0x44c] ss:$16 sps:$4 sm:$0xff]   ;;  %v7432_v21 = vld [vmem:[#allocation3 + $0x440] ss:$16 sps:$4 sm:$0xff]  }
  0xbd   : > { %3525 = vmatpush1.bf16.msra.mxu0 %v7348_v22  ;;  %3869 = vmatpush1.bf16.msra.mxu1 %v7351_v23  ;;  %v7435_v22 = vld [vmem:[#allocation3 + $0x448] ss:$16 sps:$4 sm:$0xff]   ;;  %v7440_v23 = vld [vmem:[#allocation3 + $0x464] ss:$16 sps:$4 sm:$0xff]  }
  0xbe   : > { %3526 = vmatprep.subr.bf16.mxu0 %v7356_v24  ;;  %3870 = vmatprep.subr.bf16.mxu1 %v7359_v25  ;;  %v7443_v24 = vld [vmem:[#allocation3 + $0x46c] ss:$16 sps:$4 sm:$0xff]   ;;  %v7438_v25 = vld [vmem:[#allocation3 + $0x460] ss:$16 sps:$4 sm:$0xff]  }
  0xc1   : > { %3527 = vmatpush1.bf16.msra.mxu0 %v7354_v26  ;;  %3871 = vmatpush1.bf16.msra.mxu1 %v7357_v27  ;;  %v7441_v26 = vld [vmem:[#allocation3 + $0x468] ss:$16 sps:$4 sm:$0xff]   ;;  %v7446_v27 = vld [vmem:[#allocation3 + $0x484] ss:$16 sps:$4 sm:$0xff]  }
  0xc2   : > { %3528 = vmatprep.subr.bf16.mxu0 %v7362_v28  ;;  %3872 = vmatprep.subr.bf16.mxu1 %v7365_v29  ;;  %v7449_v28 = vld [vmem:[#allocation3 + $0x48c] ss:$16 sps:$4 sm:$0xff]   ;;  %v7444_v29 = vld [vmem:[#allocation3 + $0x480] ss:$16 sps:$4 sm:$0xff]  }
  0xc5   : > { %3529 = vmatpush1.bf16.msra.mxu0 %v7360_v32  ;;  %3873 = vmatpush1.bf16.msra.mxu1 %v7363_v33  ;;  %v7455_v32 = vld [vmem:[#allocation3 + $0x4ac] ss:$16 sps:$4 sm:$0xff]   ;;  %v7450_v33 = vld [vmem:[#allocation3 + $0x4a0] ss:$16 sps:$4 sm:$0xff]  }
  0xc6   : > { %3530 = vmatprep.subr.bf16.mxu0 %v7368_v35  ;;  %3874 = vmatprep.subr.bf16.mxu1 %v7371_v36  ;;  %v7458_v35 = vld [vmem:[#allocation3 + $0x4c4] ss:$16 sps:$4 sm:$0xff]   ;;  %v7461_v36 = vld [vmem:[#allocation3 + $0x4cc] ss:$16 sps:$4 sm:$0xff]  }
  0xc9   : > { %3531 = vmatpush1.bf16.msra.mxu0 %v7366_v37  ;;  %3875 = vmatpush1.bf16.msra.mxu1 %v7369_v38  ;;  %v7456_v37 = vld [vmem:[#allocation3 + $0x4c0] ss:$16 sps:$4 sm:$0xff]   ;;  %v7459_v38 = vld [vmem:[#allocation3 + $0x4c8] ss:$16 sps:$4 sm:$0xff]  }
  0xca   : > { %3532 = vmatprep.subr.bf16.mxu0 %v7374_v39  ;;  %3876 = vmatprep.subr.bf16.mxu1 %v7377_v40  ;;  %v7464_v39 = vld [vmem:[#allocation3 + $0x4e4] ss:$16 sps:$4 sm:$0xff]   ;;  %v7467_v40 = vld [vmem:[#allocation3 + $0x4ec] ss:$16 sps:$4 sm:$0xff]  }
  0xcd   : > { %3533 = vmatpush1.bf16.msra.mxu0 %v7372_v41  ;;  %3877 = vmatpush1.bf16.msra.mxu1 %v7375_v42  ;;  %v7462_v41 = vld [vmem:[#allocation3 + $0x4e0] ss:$16 sps:$4 sm:$0xff]   ;;  %v7465_v42 = vld [vmem:[#allocation3 + $0x4e8] ss:$16 sps:$4 sm:$0xff]  }
  0xce   : > { %3534 = vmatprep.subr.bf16.mxu0 %v7380_v43  ;;  %3878 = vmatprep.subr.bf16.mxu1 %v7383_v44  ;;  %v7470_v43 = vld [vmem:[#allocation3 + $0x504] ss:$16 sps:$4 sm:$0xff]   ;;  %v7473_v44 = vld [vmem:[#allocation3 + $0x50c] ss:$16 sps:$4 sm:$0xff]  }
  0xd1   : > { %3535 = vmatpush1.bf16.msra.mxu0 %v7378_v45  ;;  %3879 = vmatpush1.bf16.msra.mxu1 %v7381_v46  ;;  %v7468_v45 = vld [vmem:[#allocation3 + $0x500] ss:$16 sps:$4 sm:$0xff]   ;;  %v7471_v46 = vld [vmem:[#allocation3 + $0x508] ss:$16 sps:$4 sm:$0xff]  }
  0xd2   : > { %3536 = vmatprep.subr.bf16.mxu0 %v7386_v47  ;;  %3880 = vmatprep.subr.bf16.mxu1 %v7389_v48  ;;  %v7476_v47 = vld [vmem:[#allocation3 + $0x524] ss:$16 sps:$4 sm:$0xff]   ;;  %v7479_v48 = vld [vmem:[#allocation3 + $0x52c] ss:$16 sps:$4 sm:$0xff]  }
  0xd5   : > { %3537 = vmatpush1.bf16.msra.mxu0 %v7384_v49  ;;  %3881 = vmatpush1.bf16.msra.mxu1 %v7387_v50  ;;  %v7474_v49 = vld [vmem:[#allocation3 + $0x520] ss:$16 sps:$4 sm:$0xff]   ;;  %v7477_v50 = vld [vmem:[#allocation3 + $0x528] ss:$16 sps:$4 sm:$0xff]  }
  0xd6   : > { %3538 = vmatprep.subr.bf16.mxu0 %v7392_v51  ;;  %3882 = vmatprep.subr.bf16.mxu1 %v7395_v52  ;;  %v7482_v51 = vld [vmem:[#allocation3 + $0x544] ss:$16 sps:$4 sm:$0xff]   ;;  %v7485_v52 = vld [vmem:[#allocation3 + $0x54c] ss:$16 sps:$4 sm:$0xff]  }
  0xd9   : > { %3539 = vmatpush1.bf16.msra.mxu0 %v7390_v53  ;;  %3883 = vmatpush1.bf16.msra.mxu1 %v7393_v54  ;;  %v7480_v53 = vld [vmem:[#allocation3 + $0x540] ss:$16 sps:$4 sm:$0xff]   ;;  %v7483_v54 = vld [vmem:[#allocation3 + $0x548] ss:$16 sps:$4 sm:$0xff]  }
  0xda   : > { %3540 = vmatprep.subr.bf16.mxu0 %v7398_v55  ;;  %3884 = vmatprep.subr.bf16.mxu1 %v7401_v56  ;;  %v7488_v55 = vld [vmem:[#allocation3 + $0x564] ss:$16 sps:$4 sm:$0xff]   ;;  %v7491_v56 = vld [vmem:[#allocation3 + $0x56c] ss:$16 sps:$4 sm:$0xff]  }
  0xdd   : > { %3541 = vmatpush1.bf16.msra.mxu0 %v7396_v57  ;;  %3885 = vmatpush1.bf16.msra.mxu1 %v7399_v58  ;;  %v7486_v57 = vld [vmem:[#allocation3 + $0x560] ss:$16 sps:$4 sm:$0xff]   ;;  %v7489_v58 = vld [vmem:[#allocation3 + $0x568] ss:$16 sps:$4 sm:$0xff]  }
  0xde   : > { %3542 = vmatprep.subr.bf16.mxu0 %v7404_v59  ;;  %3886 = vmatprep.subr.bf16.mxu1 %v7407_v60  ;;  %v7494_v59 = vld [vmem:[#allocation3 + $0x584] ss:$16 sps:$4 sm:$0xff]   ;;  %v7497_v60 = vld [vmem:[#allocation3 + $0x58c] ss:$16 sps:$4 sm:$0xff]  }
  0xe1   : > { %3543 = vmatpush1.bf16.msra.mxu0 %v7402_v61  ;;  %3887 = vmatpush1.bf16.msra.mxu1 %v7405_v62  ;;  %v7492_v61 = vld [vmem:[#allocation3 + $0x580] ss:$16 sps:$4 sm:$0xff]   ;;  %v7495_v62 = vld [vmem:[#allocation3 + $0x588] ss:$16 sps:$4 sm:$0xff]  }
  0xe2   : > { %3544 = vmatprep.subr.bf16.mxu0 %v7410_v63  ;;  %3888 = vmatprep.subr.bf16.mxu1 %v7413_v0  ;;  %v7500_v63 = vld [vmem:[#allocation3 + $0x5a4] ss:$16 sps:$4 sm:$0xff]   ;;  %v7503_v0 = vld [vmem:[#allocation3 + $0x5ac] ss:$16 sps:$4 sm:$0xff]  }
  0xe5   : > { %3545 = vmatpush1.bf16.msra.mxu0 %v7408_v1  ;;  %3889 = vmatpush1.bf16.msra.mxu1 %v7411_v2  ;;  %v7498_v1 = vld [vmem:[#allocation3 + $0x5a0] ss:$16 sps:$4 sm:$0xff]   ;;  %v7501_v2 = vld [vmem:[#allocation3 + $0x5a8] ss:$16 sps:$4 sm:$0xff]  }
  0xe6   : > { %3546 = vmatprep.subr.bf16.mxu0 %v7416_v3  ;;  %3890 = vmatprep.subr.bf16.mxu1 %v7419_v4  ;;  %v7506_v3 = vld [vmem:[#allocation3 + $0x5c4] ss:$16 sps:$4 sm:$0xff]   ;;  %v7509_v4 = vld [vmem:[#allocation3 + $0x5cc] ss:$16 sps:$4 sm:$0xff]  }
  0xe9   : > { %3547 = vmatpush1.bf16.msra.mxu0 %v7414_v5  ;;  %3891 = vmatpush1.bf16.msra.mxu1 %v7417_v6  ;;  %v7504_v5 = vld [vmem:[#allocation3 + $0x5c0] ss:$16 sps:$4 sm:$0xff]   ;;  %v7507_v6 = vld [vmem:[#allocation3 + $0x5c8] ss:$16 sps:$4 sm:$0xff]  }
  0xea   : > { %3559 = vmatprep.subr.bf16.mxu0 %v7422_v7  ;;  %3903 = vmatprep.subr.bf16.mxu1 %v7425_v8  ;;  %v7512_v7 = vld [vmem:[#allocation3 + $0x5e4] ss:$16 sps:$4 sm:$0xff]   ;;  %v7515_v8 = vld [vmem:[#allocation3 + $0x5ec] ss:$16 sps:$4 sm:$0xff]  }
  0xec   : > { %3549 = vmatmul.mubr.bf16.vlgmr.msra.gmra.mrb[0].mxu0 %v6278_v9  ;;  %3893 = vmatmul.mubr.bf16.vlgmr.msra.gmra.mrb[0].mxu1 %v6278_v9  ;;  %v7510_v9 = vld [vmem:[#allocation3 + $0x5e0] ss:$16 sps:$4 sm:$0xff]  }
  0xed   : > { %3560 = vmatpush1.bf16.msra.mxu0 %v7420_v10  ;;  %3904 = vmatpush1.bf16.msra.mxu1 %v7423_v11  ;;  %v7513_v10 = vld [vmem:[#allocation3 + $0x5e8] ss:$16 sps:$4 sm:$0xff]   ;;  %v7518_v11 = vld [vmem:[#allocation3 + $0x604] ss:$16 sps:$4 sm:$0xff]  }
  0xee   : > { %3561 = vmatprep.subr.bf16.mxu0 %v7428_v12  ;;  %3905 = vmatprep.subr.bf16.mxu1 %v7431_v13  ;;  %v7521_v12 = vld [vmem:[#allocation3 + $0x60c] ss:$16 sps:$4 sm:$0xff]   ;;  %v7516_v13 = vld [vmem:[#allocation3 + $0x600] ss:$16 sps:$4 sm:$0xff]  }
  0xef   : > { %3591 = vmatprep.mubr.bf16.mxu0 %v6281_v16  ;;  %3935 = vmatprep.mubr.bf16.mxu1 %v6281_v16  ;;  %v7519_v16 = vld [vmem:[#allocation3 + $0x608] ss:$16 sps:$4 sm:$0xff]  }
  0xf1   : > { %3562 = vmatpush1.bf16.msra.mxu0 %v7426_v17  ;;  %3906 = vmatpush1.bf16.msra.mxu1 %v7429_v18  ;;  %v6280_v17 = vcombine.low %v8396_v14, %v8401_v15  ;;  %v8410_v18 = vld [vmem:[%s8815_s0 + $0x18] sm:$0xff]  ;;  %v7522_v14 = vld [vmem:[#allocation3 + $0x620] ss:$16 sps:$4 sm:$0xff]  }
  0xf2   : > { %3563 = vmatprep.subr.bf16.mxu0 %v7434_v19  ;;  %3907 = vmatprep.subr.bf16.mxu1 %v7437_v20  ;;  %v8415_v19 = vld [vmem:[%s8815_s0 + $0x58] sm:$0xff]  ;;  %v7524_v20 = vld [vmem:[#allocation3 + $0x624] ss:$16 sps:$4 sm:$0xff]  }
  0xf3   : > { %v7525_v15 = vld [vmem:[#allocation3 + $0x628] ss:$16 sps:$4 sm:$0xff]  }
  0xf5   : > { %3564 = vmatpush1.bf16.msra.mxu0 %v7432_v21  ;;  %3908 = vmatpush1.bf16.msra.mxu1 %v7435_v22  ;;  %v7527_v21 = vld [vmem:[#allocation3 + $0x62c] ss:$16 sps:$4 sm:$0xff]   ;;  %v6283_v22 = vcombine.high %v8410_v18, %v8415_v19 }
  0xf6   : > { %3565 = vmatprep.subr.bf16.mxu0 %v7440_v23  ;;  %3909 = vmatprep.subr.bf16.mxu1 %v7443_v24  ;;  %v7530_v23 = vld [vmem:[#allocation3 + $0x644] ss:$16 sps:$4 sm:$0xff]   ;;  %v7533_v24 = vld [vmem:[#allocation3 + $0x64c] ss:$16 sps:$4 sm:$0xff]  }
  0xf9   : > { %3566 = vmatpush1.bf16.msra.mxu0 %v7438_v25  ;;  %3910 = vmatpush1.bf16.msra.mxu1 %v7441_v26  ;;  %v7528_v25 = vld [vmem:[#allocation3 + $0x640] ss:$16 sps:$4 sm:$0xff]   ;;  %v7531_v26 = vld [vmem:[#allocation3 + $0x648] ss:$16 sps:$4 sm:$0xff]  }
  0xfa   : > { %3567 = vmatprep.subr.bf16.mxu0 %v7446_v27  ;;  %3911 = vmatprep.subr.bf16.mxu1 %v7449_v28  ;;  %v7536_v27 = vld [vmem:[#allocation3 + $0x664] ss:$16 sps:$4 sm:$0xff]   ;;  %v7539_v28 = vld [vmem:[#allocation3 + $0x66c] ss:$16 sps:$4 sm:$0xff]  }
  0xfd   : > { %3568 = vmatpush1.bf16.msra.mxu0 %v7444_v29  ;;  %3912 = vmatpush1.bf16.msra.mxu1 %v7447_v30  ;;  %v7534_v29 = vld [vmem:[#allocation3 + $0x660] ss:$16 sps:$4 sm:$0xff]   ;;  %v7537_v30 = vld [vmem:[#allocation3 + $0x668] ss:$16 sps:$4 sm:$0xff]  }
  0xfe   : > { %3569 = vmatprep.subr.bf16.mxu0 %v7452_v31  ;;  %3913 = vmatprep.subr.bf16.mxu1 %v7455_v32  ;;  %v7542_v31 = vld [vmem:[#allocation3 + $0x684] ss:$16 sps:$4 sm:$0xff]   ;;  %v7545_v32 = vld [vmem:[#allocation3 + $0x68c] ss:$16 sps:$4 sm:$0xff]  }
 0x101   : > { %3570 = vmatpush1.bf16.msra.mxu0 %v7450_v33  ;;  %3914 = vmatpush1.bf16.msra.mxu1 %v7453_v34  ;;  %v7540_v33 = vld [vmem:[#allocation3 + $0x680] ss:$16 sps:$4 sm:$0xff]   ;;  %v7543_v34 = vld [vmem:[#allocation3 + $0x688] ss:$16 sps:$4 sm:$0xff]  }
 0x102   : > { %3571 = vmatprep.subr.bf16.mxu0 %v7458_v35  ;;  %3915 = vmatprep.subr.bf16.mxu1 %v7461_v36  ;;  %v7548_v35 = vld [vmem:[#allocation3 + $0x6a4] ss:$16 sps:$4 sm:$0xff]   ;;  %v7551_v36 = vld [vmem:[#allocation3 + $0x6ac] ss:$16 sps:$4 sm:$0xff]  }
 0x105   : > { %3572 = vmatpush1.bf16.msra.mxu0 %v7456_v37  ;;  %3916 = vmatpush1.bf16.msra.mxu1 %v7459_v38  ;;  %v7546_v37 = vld [vmem:[#allocation3 + $0x6a0] ss:$16 sps:$4 sm:$0xff]   ;;  %v7549_v38 = vld [vmem:[#allocation3 + $0x6a8] ss:$16 sps:$4 sm:$0xff]  }
 0x106   : > { %3573 = vmatprep.subr.bf16.mxu0 %v7464_v39  ;;  %3917 = vmatprep.subr.bf16.mxu1 %v7467_v40  ;;  %v7554_v39 = vld [vmem:[#allocation3 + $0x6c4] ss:$16 sps:$4 sm:$0xff]   ;;  %v7557_v40 = vld [vmem:[#allocation3 + $0x6cc] ss:$16 sps:$4 sm:$0xff]  }
 0x109   : > { %3574 = vmatpush1.bf16.msra.mxu0 %v7462_v41  ;;  %3918 = vmatpush1.bf16.msra.mxu1 %v7465_v42  ;;  %v7552_v41 = vld [vmem:[#allocation3 + $0x6c0] ss:$16 sps:$4 sm:$0xff]   ;;  %v7555_v42 = vld [vmem:[#allocation3 + $0x6c8] ss:$16 sps:$4 sm:$0xff]  }
 0x10a   : > { %3575 = vmatprep.subr.bf16.mxu0 %v7470_v43  ;;  %3919 = vmatprep.subr.bf16.mxu1 %v7473_v44  ;;  %v7560_v43 = vld [vmem:[#allocation3 + $0x6e4] ss:$16 sps:$4 sm:$0xff]   ;;  %v7563_v44 = vld [vmem:[#allocation3 + $0x6ec] ss:$16 sps:$4 sm:$0xff]  }
 0x10d   : > { %3576 = vmatpush1.bf16.msra.mxu0 %v7468_v45  ;;  %3920 = vmatpush1.bf16.msra.mxu1 %v7471_v46  ;;  %v7558_v45 = vld [vmem:[#allocation3 + $0x6e0] ss:$16 sps:$4 sm:$0xff]   ;;  %v7561_v46 = vld [vmem:[#allocation3 + $0x6e8] ss:$16 sps:$4 sm:$0xff]  }
 0x10e   : > { %3577 = vmatprep.subr.bf16.mxu0 %v7476_v47  ;;  %3921 = vmatprep.subr.bf16.mxu1 %v7479_v48  ;;  %v7566_v47 = vld [vmem:[#allocation3 + $0x704] ss:$16 sps:$4 sm:$0xff]   ;;  %v7569_v48 = vld [vmem:[#allocation3 + $0x70c] ss:$16 sps:$4 sm:$0xff]  }
 0x111   : > { %3578 = vmatpush1.bf16.msra.mxu0 %v7474_v49  ;;  %3922 = vmatpush1.bf16.msra.mxu1 %v7477_v50  ;;  %v7564_v49 = vld [vmem:[#allocation3 + $0x700] ss:$16 sps:$4 sm:$0xff]   ;;  %v7567_v50 = vld [vmem:[#allocation3 + $0x708] ss:$16 sps:$4 sm:$0xff]  }
 0x112   : > { %3579 = vmatprep.subr.bf16.mxu0 %v7482_v51  ;;  %3923 = vmatprep.subr.bf16.mxu1 %v7485_v52  ;;  %v7572_v51 = vld [vmem:[#allocation3 + $0x724] ss:$16 sps:$4 sm:$0xff]   ;;  %v7575_v52 = vld [vmem:[#allocation3 + $0x72c] ss:$16 sps:$4 sm:$0xff]  }
 0x115   : > { %3580 = vmatpush1.bf16.msra.mxu0 %v7480_v53  ;;  %3924 = vmatpush1.bf16.msra.mxu1 %v7483_v54  ;;  %v7570_v53 = vld [vmem:[#allocation3 + $0x720] ss:$16 sps:$4 sm:$0xff]   ;;  %v7573_v54 = vld [vmem:[#allocation3 + $0x728] ss:$16 sps:$4 sm:$0xff]  }
 0x116   : > { %3581 = vmatprep.subr.bf16.mxu0 %v7488_v55  ;;  %3925 = vmatprep.subr.bf16.mxu1 %v7491_v56  ;;  %v7578_v55 = vld [vmem:[#allocation3 + $0x744] ss:$16 sps:$4 sm:$0xff]   ;;  %v7581_v56 = vld [vmem:[#allocation3 + $0x74c] ss:$16 sps:$4 sm:$0xff]  }
 0x119   : > { %3582 = vmatpush1.bf16.msra.mxu0 %v7486_v57  ;;  %3926 = vmatpush1.bf16.msra.mxu1 %v7489_v58  ;;  %v7576_v57 = vld [vmem:[#allocation3 + $0x740] ss:$16 sps:$4 sm:$0xff]   ;;  %v7579_v58 = vld [vmem:[#allocation3 + $0x748] ss:$16 sps:$4 sm:$0xff]  }
 0x11a   : > { %3583 = vmatprep.subr.bf16.mxu0 %v7494_v59  ;;  %3927 = vmatprep.subr.bf16.mxu1 %v7497_v60  ;;  %v7584_v59 = vld [vmem:[#allocation3 + $0x764] ss:$16 sps:$4 sm:$0xff]   ;;  %v7587_v60 = vld [vmem:[#allocation3 + $0x76c] ss:$16 sps:$4 sm:$0xff]  }
 0x11d   : > { %3584 = vmatpush1.bf16.msra.mxu0 %v7492_v61  ;;  %3928 = vmatpush1.bf16.msra.mxu1 %v7495_v62  ;;  %v7582_v61 = vld [vmem:[#allocation3 + $0x760] ss:$16 sps:$4 sm:$0xff]   ;;  %v7585_v62 = vld [vmem:[#allocation3 + $0x768] ss:$16 sps:$4 sm:$0xff]  }
 0x11e   : > { %3585 = vmatprep.subr.bf16.mxu0 %v7500_v63  ;;  %3929 = vmatprep.subr.bf16.mxu1 %v7503_v0  ;;  %v7590_v63 = vld [vmem:[#allocation3 + $0x784] ss:$16 sps:$4 sm:$0xff]   ;;  %v7593_v0 = vld [vmem:[#allocation3 + $0x78c] ss:$16 sps:$4 sm:$0xff]  }
 0x121   : > { %3586 = vmatpush1.bf16.msra.mxu0 %v7498_v1  ;;  %3930 = vmatpush1.bf16.msra.mxu1 %v7501_v2  ;;  %v7588_v1 = vld [vmem:[#allocation3 + $0x780] ss:$16 sps:$4 sm:$0xff]   ;;  %v7591_v2 = vld [vmem:[#allocation3 + $0x788] ss:$16 sps:$4 sm:$0xff]  }
 0x122   : > { %3587 = vmatprep.subr.bf16.mxu0 %v7506_v3  ;;  %3931 = vmatprep.subr.bf16.mxu1 %v7509_v4  ;;  %v7596_v3 = vld [vmem:[#allocation3 + $0x7a4] ss:$16 sps:$4 sm:$0xff]   ;;  %v7599_v4 = vld [vmem:[#allocation3 + $0x7ac] ss:$16 sps:$4 sm:$0xff]  }
 0x125   : > { %3588 = vmatpush1.bf16.msra.mxu0 %v7504_v5  ;;  %3932 = vmatpush1.bf16.msra.mxu1 %v7507_v6  ;;  %v7594_v5 = vld [vmem:[#allocation3 + $0x7a0] ss:$16 sps:$4 sm:$0xff]   ;;  %v7597_v6 = vld [vmem:[#allocation3 + $0x7a8] ss:$16 sps:$4 sm:$0xff]  }
 0x126   : > { %3589 = vmatprep.subr.bf16.mxu0 %v7512_v7  ;;  %3933 = vmatprep.subr.bf16.mxu1 %v7515_v8  ;;  %v7602_v7 = vld [vmem:[#allocation3 + $0x7c4] ss:$16 sps:$4 sm:$0xff]   ;;  %v7605_v8 = vld [vmem:[#allocation3 + $0x7cc] ss:$16 sps:$4 sm:$0xff]  }
 0x129   : > { %3590 = vmatpush1.bf16.msra.mxu0 %v7510_v9  ;;  %3934 = vmatpush1.bf16.msra.mxu1 %v7513_v10  ;;  %v7600_v9 = vld [vmem:[#allocation3 + $0x7c0] ss:$16 sps:$4 sm:$0xff]   ;;  %v7603_v10 = vld [vmem:[#allocation3 + $0x7c8] ss:$16 sps:$4 sm:$0xff]  }
 0x12a   : > { %3602 = vmatprep.subr.bf16.mxu0 %v7518_v11  ;;  %3946 = vmatprep.subr.bf16.mxu1 %v7521_v12  ;;  %v7608_v11 = vld [vmem:[#allocation3 + $0x7e4] ss:$16 sps:$4 sm:$0xff]   ;;  %v7611_v12 = vld [vmem:[#allocation3 + $0x7ec] ss:$16 sps:$4 sm:$0xff]  }
 0x12c   : > { %3592 = vmatmul.mubr.bf16.vlgmr.msra.gmra.mrb[0].mxu0 %v6280_v17  ;;  %3936 = vmatmul.mubr.bf16.vlgmr.msra.gmra.mrb[0].mxu1 %v6280_v17  ;;  %v7614_v17 = vld [vmem:[#allocation3 + $0x804] ss:$16 sps:$4 sm:$0xff]  }
 0x12d   : > { %3603 = vmatpush1.bf16.msra.mxu0 %v7516_v13  ;;  %3947 = vmatpush1.bf16.msra.mxu1 %v7519_v16  ;;  %v7606_v13 = vld [vmem:[#allocation3 + $0x7e0] ss:$16 sps:$4 sm:$0xff]   ;;  %v7609_v16 = vld [vmem:[#allocation3 + $0x7e8] ss:$16 sps:$4 sm:$0xff]  }
 0x12e   : > { %3604 = vmatprep.subr.bf16.mxu0 %v7524_v20  ;;  %3948 = vmatprep.subr.bf16.mxu1 %v7527_v21  ;;  %v7617_v20 = vld [vmem:[#allocation3 + $0x80c] ss:$16 sps:$4 sm:$0xff]   ;;  %v8422_v21 = vld [vmem:[%s8815_s0 + $0x20] sm:$0xff] }
 0x12f   : > { %3634 = vmatprep.mubr.bf16.mxu0 %v6283_v22  ;;  %3978 = vmatprep.mubr.bf16.mxu1 %v6283_v22  ;;  %v6282_v22 = vcombine.low %v8410_v18, %v8415_v19  ;;  %v7621_v18 = vld [vmem:[#allocation3 + $0x828] ss:$16 sps:$4 sm:$0xff]   ;;  %v7626_v19 = vld [vmem:[#allocation3 + $0x844] ss:$16 sps:$4 sm:$0xff]  }
 0x131   : > { %3605 = vmatpush1.bf16.msra.mxu0 %v7522_v14  ;;  %3949 = vmatpush1.bf16.msra.mxu1 %v7525_v15  ;;  %v8429_v14 = vld [vmem:[%s8815_s0 + $0x60] sm:$0xff] }
 0x132   : > { %3606 = vmatprep.subr.bf16.mxu0 %v7530_v23  ;;  %3950 = vmatprep.subr.bf16.mxu1 %v7533_v24  ;;  %v7612_v15 = vld [vmem:[#allocation3 + $0x800] ss:$16 sps:$4 sm:$0xff]   ;;  %v7615_v23 = vld [vmem:[#allocation3 + $0x808] ss:$16 sps:$4 sm:$0xff]   ;;  %v7620_v24 = vld [vmem:[#allocation3 + $0x824] ss:$16 sps:$4 sm:$0xff]  }
 0x135   : > { %3607 = vmatpush1.bf16.msra.mxu0 %v7528_v25  ;;  %3951 = vmatpush1.bf16.msra.mxu1 %v7531_v26  ;;  %v7623_v25 = vld [vmem:[#allocation3 + $0x82c] ss:$16 sps:$4 sm:$0xff]   ;;  %v6285_v26 = vcombine.high %v8422_v21, %v8429_v14 }
 0x136   : > { %3608 = vmatprep.subr.bf16.mxu0 %v7536_v27  ;;  %3952 = vmatprep.subr.bf16.mxu1 %v7539_v28  ;;  %v7618_v27 = vld [vmem:[#allocation3 + $0x820] ss:$16 sps:$4 sm:$0xff]   ;;  %v7629_v28 = vld [vmem:[#allocation3 + $0x84c] ss:$16 sps:$4 sm:$0xff]  }
 0x139   : > { %3609 = vmatpush1.bf16.msra.mxu0 %v7534_v29  ;;  %3953 = vmatpush1.bf16.msra.mxu1 %v7537_v30  ;;  %v7624_v29 = vld [vmem:[#allocation3 + $0x840] ss:$16 sps:$4 sm:$0xff]   ;;  %v7627_v30 = vld [vmem:[#allocation3 + $0x848] ss:$16 sps:$4 sm:$0xff]  }
 0x13a   : > { %3610 = vmatprep.subr.bf16.mxu0 %v7542_v31  ;;  %3954 = vmatprep.subr.bf16.mxu1 %v7545_v32  ;;  %v7632_v31 = vld [vmem:[#allocation3 + $0x864] ss:$16 sps:$4 sm:$0xff]   ;;  %v7635_v32 = vld [vmem:[#allocation3 + $0x86c] ss:$16 sps:$4 sm:$0xff]  }
 0x13d   : > { %3611 = vmatpush1.bf16.msra.mxu0 %v7540_v33  ;;  %3955 = vmatpush1.bf16.msra.mxu1 %v7543_v34  ;;  %v7630_v33 = vld [vmem:[#allocation3 + $0x860] ss:$16 sps:$4 sm:$0xff]   ;;  %v7633_v34 = vld [vmem:[#allocation3 + $0x868] ss:$16 sps:$4 sm:$0xff]  }
 0x13e   : > { %3612 = vmatprep.subr.bf16.mxu0 %v7548_v35  ;;  %3956 = vmatprep.subr.bf16.mxu1 %v7551_v36  ;;  %v7638_v35 = vld [vmem:[#allocation3 + $0x884] ss:$16 sps:$4 sm:$0xff]   ;;  %v7641_v36 = vld [vmem:[#allocation3 + $0x88c] ss:$16 sps:$4 sm:$0xff]  }
 0x141   : > { %3613 = vmatpush1.bf16.msra.mxu0 %v7546_v37  ;;  %3957 = vmatpush1.bf16.msra.mxu1 %v7549_v38  ;;  %v7636_v37 = vld [vmem:[#allocation3 + $0x880] ss:$16 sps:$4 sm:$0xff]   ;;  %v7639_v38 = vld [vmem:[#allocation3 + $0x888] ss:$16 sps:$4 sm:$0xff]  }
 0x142   : > { %3614 = vmatprep.subr.bf16.mxu0 %v7554_v39  ;;  %3958 = vmatprep.subr.bf16.mxu1 %v7557_v40  ;;  %v7644_v39 = vld [vmem:[#allocation3 + $0x8a4] ss:$16 sps:$4 sm:$0xff]   ;;  %v7647_v40 = vld [vmem:[#allocation3 + $0x8ac] ss:$16 sps:$4 sm:$0xff]  }
 0x145   : > { %3615 = vmatpush1.bf16.msra.mxu0 %v7552_v41  ;;  %3959 = vmatpush1.bf16.msra.mxu1 %v7555_v42  ;;  %v7642_v41 = vld [vmem:[#allocation3 + $0x8a0] ss:$16 sps:$4 sm:$0xff]   ;;  %v7645_v42 = vld [vmem:[#allocation3 + $0x8a8] ss:$16 sps:$4 sm:$0xff]  }
 0x146   : > { %3616 = vmatprep.subr.bf16.mxu0 %v7560_v43  ;;  %3960 = vmatprep.subr.bf16.mxu1 %v7563_v44  ;;  %v7650_v43 = vld [vmem:[#allocation3 + $0x8c4] ss:$16 sps:$4 sm:$0xff]   ;;  %v7653_v44 = vld [vmem:[#allocation3 + $0x8cc] ss:$16 sps:$4 sm:$0xff]  }
 0x149   : > { %3617 = vmatpush1.bf16.msra.mxu0 %v7558_v45  ;;  %3961 = vmatpush1.bf16.msra.mxu1 %v7561_v46  ;;  %v7648_v45 = vld [vmem:[#allocation3 + $0x8c0] ss:$16 sps:$4 sm:$0xff]   ;;  %v7651_v46 = vld [vmem:[#allocation3 + $0x8c8] ss:$16 sps:$4 sm:$0xff]  }
 0x14a   : > { %3618 = vmatprep.subr.bf16.mxu0 %v7566_v47  ;;  %3962 = vmatprep.subr.bf16.mxu1 %v7569_v48  ;;  %v7656_v47 = vld [vmem:[#allocation3 + $0x8e4] ss:$16 sps:$4 sm:$0xff]   ;;  %v7659_v48 = vld [vmem:[#allocation3 + $0x8ec] ss:$16 sps:$4 sm:$0xff]  }
 0x14d   : > { %3619 = vmatpush1.bf16.msra.mxu0 %v7564_v49  ;;  %3963 = vmatpush1.bf16.msra.mxu1 %v7567_v50  ;;  %v7654_v49 = vld [vmem:[#allocation3 + $0x8e0] ss:$16 sps:$4 sm:$0xff]   ;;  %v7657_v50 = vld [vmem:[#allocation3 + $0x8e8] ss:$16 sps:$4 sm:$0xff]  }
 0x14e   : > { %3620 = vmatprep.subr.bf16.mxu0 %v7572_v51  ;;  %3964 = vmatprep.subr.bf16.mxu1 %v7575_v52  ;;  %v7662_v51 = vld [vmem:[#allocation3 + $0x904] ss:$16 sps:$4 sm:$0xff]   ;;  %v7665_v52 = vld [vmem:[#allocation3 + $0x90c] ss:$16 sps:$4 sm:$0xff]  }
 0x151   : > { %3621 = vmatpush1.bf16.msra.mxu0 %v7570_v53  ;;  %3965 = vmatpush1.bf16.msra.mxu1 %v7573_v54  ;;  %v7660_v53 = vld [vmem:[#allocation3 + $0x900] ss:$16 sps:$4 sm:$0xff]   ;;  %v7663_v54 = vld [vmem:[#allocation3 + $0x908] ss:$16 sps:$4 sm:$0xff]  }
 0x152   : > { %3622 = vmatprep.subr.bf16.mxu0 %v7578_v55  ;;  %3966 = vmatprep.subr.bf16.mxu1 %v7581_v56  ;;  %v7668_v55 = vld [vmem:[#allocation3 + $0x924] ss:$16 sps:$4 sm:$0xff]   ;;  %v7671_v56 = vld [vmem:[#allocation3 + $0x92c] ss:$16 sps:$4 sm:$0xff]  }
 0x155   : > { %3623 = vmatpush1.bf16.msra.mxu0 %v7576_v57  ;;  %3967 = vmatpush1.bf16.msra.mxu1 %v7579_v58  ;;  %v7666_v57 = vld [vmem:[#allocation3 + $0x920] ss:$16 sps:$4 sm:$0xff]   ;;  %v7669_v58 = vld [vmem:[#allocation3 + $0x928] ss:$16 sps:$4 sm:$0xff]  }
 0x156   : > { %3624 = vmatprep.subr.bf16.mxu0 %v7584_v59  ;;  %3968 = vmatprep.subr.bf16.mxu1 %v7587_v60  ;;  %v7674_v59 = vld [vmem:[#allocation3 + $0x944] ss:$16 sps:$4 sm:$0xff]   ;;  %v7677_v60 = vld [vmem:[#allocation3 + $0x94c] ss:$16 sps:$4 sm:$0xff]  }
 0x159   : > { %3625 = vmatpush1.bf16.msra.mxu0 %v7582_v61  ;;  %3969 = vmatpush1.bf16.msra.mxu1 %v7585_v62  ;;  %v7672_v61 = vld [vmem:[#allocation3 + $0x940] ss:$16 sps:$4 sm:$0xff]   ;;  %v7675_v62 = vld [vmem:[#allocation3 + $0x948] ss:$16 sps:$4 sm:$0xff]  }
 0x15a   : > { %3626 = vmatprep.subr.bf16.mxu0 %v7590_v63  ;;  %3970 = vmatprep.subr.bf16.mxu1 %v7593_v0  ;;  %v7680_v63 = vld [vmem:[#allocation3 + $0x964] ss:$16 sps:$4 sm:$0xff]   ;;  %v7683_v0 = vld [vmem:[#allocation3 + $0x96c] ss:$16 sps:$4 sm:$0xff]  }
 0x15d   : > { %3627 = vmatpush1.bf16.msra.mxu0 %v7588_v1  ;;  %3971 = vmatpush1.bf16.msra.mxu1 %v7591_v2  ;;  %v7678_v1 = vld [vmem:[#allocation3 + $0x960] ss:$16 sps:$4 sm:$0xff]   ;;  %v7681_v2 = vld [vmem:[#allocation3 + $0x968] ss:$16 sps:$4 sm:$0xff]  }
 0x15e   : > { %3628 = vmatprep.subr.bf16.mxu0 %v7596_v3  ;;  %3972 = vmatprep.subr.bf16.mxu1 %v7599_v4  ;;  %v7686_v3 = vld [vmem:[#allocation3 + $0x984] ss:$16 sps:$4 sm:$0xff]   ;;  %v7689_v4 = vld [vmem:[#allocation3 + $0x98c] ss:$16 sps:$4 sm:$0xff]  }
 0x161   : > { %3629 = vmatpush1.bf16.msra.mxu0 %v7594_v5  ;;  %3973 = vmatpush1.bf16.msra.mxu1 %v7597_v6  ;;  %v7684_v5 = vld [vmem:[#allocation3 + $0x980] ss:$16 sps:$4 sm:$0xff]   ;;  %v7687_v6 = vld [vmem:[#allocation3 + $0x988] ss:$16 sps:$4 sm:$0xff]  }
 0x162   : > { %3630 = vmatprep.subr.bf16.mxu0 %v7602_v7  ;;  %3974 = vmatprep.subr.bf16.mxu1 %v7605_v8  ;;  %v7692_v7 = vld [vmem:[#allocation3 + $0x9a4] ss:$16 sps:$4 sm:$0xff]   ;;  %v7695_v8 = vld [vmem:[#allocation3 + $0x9ac] ss:$16 sps:$4 sm:$0xff]  }
 0x165   : > { %3631 = vmatpush1.bf16.msra.mxu0 %v7600_v9  ;;  %3975 = vmatpush1.bf16.msra.mxu1 %v7603_v10  ;;  %v7690_v9 = vld [vmem:[#allocation3 + $0x9a0] ss:$16 sps:$4 sm:$0xff]   ;;  %v7693_v10 = vld [vmem:[#allocation3 + $0x9a8] ss:$16 sps:$4 sm:$0xff]  }
 0x166   : > { %3632 = vmatprep.subr.bf16.mxu0 %v7608_v11  ;;  %3976 = vmatprep.subr.bf16.mxu1 %v7611_v12  ;;  %v7698_v11 = vld [vmem:[#allocation3 + $0x9c4] ss:$16 sps:$4 sm:$0xff]   ;;  %v7701_v12 = vld [vmem:[#allocation3 + $0x9cc] ss:$16 sps:$4 sm:$0xff]  }
 0x169   : > { %3633 = vmatpush1.bf16.msra.mxu0 %v7606_v13  ;;  %3977 = vmatpush1.bf16.msra.mxu1 %v7609_v16  ;;  %v7696_v13 = vld [vmem:[#allocation3 + $0x9c0] ss:$16 sps:$4 sm:$0xff]   ;;  %v7699_v16 = vld [vmem:[#allocation3 + $0x9c8] ss:$16 sps:$4 sm:$0xff]  }
 0x16a   : > { %3645 = vmatprep.subr.bf16.mxu0 %v7614_v17  ;;  %3989 = vmatprep.subr.bf16.mxu1 %v7617_v20  ;;  %v7704_v17 = vld [vmem:[#allocation3 + $0x9e4] ss:$16 sps:$4 sm:$0xff]   ;;  %v7707_v20 = vld [vmem:[#allocation3 + $0x9ec] ss:$16 sps:$4 sm:$0xff]  }
 0x16c   : > { %3635 = vmatmul.mubr.bf16.vlgmr.msra.gmra.mrb[0].mxu0 %v6282_v22  ;;  %3979 = vmatmul.mubr.bf16.vlgmr.msra.gmra.mrb[0].mxu1 %v6282_v22  ;;  %v7702_v22 = vld [vmem:[#allocation3 + $0x9e0] ss:$16 sps:$4 sm:$0xff]  }
 0x16d   : > { %3646 = vmatpush1.bf16.msra.mxu0 %v7612_v15  ;;  %3990 = vmatpush1.bf16.msra.mxu1 %v7615_v23  ;;  %v7705_v15 = vld [vmem:[#allocation3 + $0x9e8] ss:$16 sps:$4 sm:$0xff]   ;;  %v7710_v23 = vld [vmem:[#allocation3 + $0xa04] ss:$16 sps:$4 sm:$0xff]  }
 0x16e   : > { %3647 = vmatprep.subr.bf16.mxu0 %v7620_v24  ;;  %3991 = vmatprep.subr.bf16.mxu1 %v7623_v25  ;;  %v7713_v24 = vld [vmem:[#allocation3 + $0xa0c] ss:$16 sps:$4 sm:$0xff]  }
 0x16f   : > { %3677 = vmatprep.mubr.bf16.mxu0 %v6285_v26  ;;  %4021 = vmatprep.mubr.bf16.mxu1 %v6285_v26  ;;  %v8436_v25 = vld [vmem:[%s8815_s0 + $0x28] sm:$0xff] }
 0x170   : > { %v8441_v26 = vld [vmem:[%s8815_s0 + $0x68] sm:$0xff] }
 0x171   : > { %3648 = vmatpush1.bf16.msra.mxu0 %v7618_v27  ;;  %3992 = vmatpush1.bf16.msra.mxu1 %v7621_v18  ;;  %v6284_v27 = vcombine.low %v8422_v21, %v8429_v14  ;;  %v7708_v18 = vld [vmem:[#allocation3 + $0xa00] ss:$16 sps:$4 sm:$0xff]   ;;  %v7722_v21 = vld [vmem:[#allocation3 + $0xa44] ss:$16 sps:$4 sm:$0xff]   ;;  %v7725_v14 = vld [vmem:[#allocation3 + $0xa4c] ss:$16 sps:$4 sm:$0xff]  }
 0x172   : > { %3649 = vmatprep.subr.bf16.mxu0 %v7626_v19  ;;  %3993 = vmatprep.subr.bf16.mxu1 %v7629_v28  ;;  %v7711_v19 = vld [vmem:[#allocation3 + $0xa08] ss:$16 sps:$4 sm:$0xff]   ;;  %v7716_v28 = vld [vmem:[#allocation3 + $0xa24] ss:$16 sps:$4 sm:$0xff]  }
 0x175   : > { %3650 = vmatpush1.bf16.msra.mxu0 %v7624_v29  ;;  %3994 = vmatpush1.bf16.msra.mxu1 %v7627_v30  ;;  %v7719_v29 = vld [vmem:[#allocation3 + $0xa2c] ss:$16 sps:$4 sm:$0xff]   ;;  %v6287_v30 = vcombine.high %v8436_v25, %v8441_v26 }
 0x176   : > { %3651 = vmatprep.subr.bf16.mxu0 %v7632_v31  ;;  %3995 = vmatprep.subr.bf16.mxu1 %v7635_v32  ;;  %v7714_v31 = vld [vmem:[#allocation3 + $0xa20] ss:$16 sps:$4 sm:$0xff]   ;;  %v7717_v32 = vld [vmem:[#allocation3 + $0xa28] ss:$16 sps:$4 sm:$0xff]  }
 0x179   : > { %3652 = vmatpush1.bf16.msra.mxu0 %v7630_v33  ;;  %3996 = vmatpush1.bf16.msra.mxu1 %v7633_v34  ;;  %v7720_v33 = vld [vmem:[#allocation3 + $0xa40] ss:$16 sps:$4 sm:$0xff]   ;;  %v7723_v34 = vld [vmem:[#allocation3 + $0xa48] ss:$16 sps:$4 sm:$0xff]  }
 0x17a   : > { %3653 = vmatprep.subr.bf16.mxu0 %v7638_v35  ;;  %3997 = vmatprep.subr.bf16.mxu1 %v7641_v36  ;;  %v7728_v35 = vld [vmem:[#allocation3 + $0xa64] ss:$16 sps:$4 sm:$0xff]   ;;  %v7731_v36 = vld [vmem:[#allocation3 + $0xa6c] ss:$16 sps:$4 sm:$0xff]  }
 0x17d   : > { %3654 = vmatpush1.bf16.msra.mxu0 %v7636_v37  ;;  %3998 = vmatpush1.bf16.msra.mxu1 %v7639_v38  ;;  %v7726_v37 = vld [vmem:[#allocation3 + $0xa60] ss:$16 sps:$4 sm:$0xff]   ;;  %v7729_v38 = vld [vmem:[#allocation3 + $0xa68] ss:$16 sps:$4 sm:$0xff]  }
 0x17e   : > { %3655 = vmatprep.subr.bf16.mxu0 %v7644_v39  ;;  %3999 = vmatprep.subr.bf16.mxu1 %v7647_v40  ;;  %v7734_v39 = vld [vmem:[#allocation3 + $0xa84] ss:$16 sps:$4 sm:$0xff]   ;;  %v7737_v40 = vld [vmem:[#allocation3 + $0xa8c] ss:$16 sps:$4 sm:$0xff]  }
 0x181   : > { %3656 = vmatpush1.bf16.msra.mxu0 %v7642_v41  ;;  %4000 = vmatpush1.bf16.msra.mxu1 %v7645_v42  ;;  %v7732_v41 = vld [vmem:[#allocation3 + $0xa80] ss:$16 sps:$4 sm:$0xff]   ;;  %v7735_v42 = vld [vmem:[#allocation3 + $0xa88] ss:$16 sps:$4 sm:$0xff]  }
 0x182   : > { %3657 = vmatprep.subr.bf16.mxu0 %v7650_v43  ;;  %4001 = vmatprep.subr.bf16.mxu1 %v7653_v44  ;;  %v7740_v43 = vld [vmem:[#allocation3 + $0xaa4] ss:$16 sps:$4 sm:$0xff]   ;;  %v7743_v44 = vld [vmem:[#allocation3 + $0xaac] ss:$16 sps:$4 sm:$0xff]  }
 0x185   : > { %3658 = vmatpush1.bf16.msra.mxu0 %v7648_v45  ;;  %4002 = vmatpush1.bf16.msra.mxu1 %v7651_v46  ;;  %v7738_v45 = vld [vmem:[#allocation3 + $0xaa0] ss:$16 sps:$4 sm:$0xff]   ;;  %v7741_v46 = vld [vmem:[#allocation3 + $0xaa8] ss:$16 sps:$4 sm:$0xff]  }
 0x186   : > { %3659 = vmatprep.subr.bf16.mxu0 %v7656_v47  ;;  %4003 = vmatprep.subr.bf16.mxu1 %v7659_v48  ;;  %v7746_v47 = vld [vmem:[#allocation3 + $0xac4] ss:$16 sps:$4 sm:$0xff]   ;;  %v7749_v48 = vld [vmem:[#allocation3 + $0xacc] ss:$16 sps:$4 sm:$0xff]  }
 0x189   : > { %3660 = vmatpush1.bf16.msra.mxu0 %v7654_v49  ;;  %4004 = vmatpush1.bf16.msra.mxu1 %v7657_v50  ;;  %v7744_v49 = vld [vmem:[#allocation3 + $0xac0] ss:$16 sps:$4 sm:$0xff]   ;;  %v7747_v50 = vld [vmem:[#allocation3 + $0xac8] ss:$16 sps:$4 sm:$0xff]  }
 0x18a   : > { %3661 = vmatprep.subr.bf16.mxu0 %v7662_v51  ;;  %4005 = vmatprep.subr.bf16.mxu1 %v7665_v52  ;;  %v7752_v51 = vld [vmem:[#allocation3 + $0xae4] ss:$16 sps:$4 sm:$0xff]   ;;  %v7755_v52 = vld [vmem:[#allocation3 + $0xaec] ss:$16 sps:$4 sm:$0xff]  }
 0x18d   : > { %3662 = vmatpush1.bf16.msra.mxu0 %v7660_v53  ;;  %4006 = vmatpush1.bf16.msra.mxu1 %v7663_v54  ;;  %v7750_v53 = vld [vmem:[#allocation3 + $0xae0] ss:$16 sps:$4 sm:$0xff]   ;;  %v7753_v54 = vld [vmem:[#allocation3 + $0xae8] ss:$16 sps:$4 sm:$0xff]  }
 0x18e   : > { %3663 = vmatprep.subr.bf16.mxu0 %v7668_v55  ;;  %4007 = vmatprep.subr.bf16.mxu1 %v7671_v56  ;;  %v7758_v55 = vld [vmem:[#allocation3 + $0xb04] ss:$16 sps:$4 sm:$0xff]   ;;  %v7761_v56 = vld [vmem:[#allocation3 + $0xb0c] ss:$16 sps:$4 sm:$0xff]  }
 0x191   : > { %3664 = vmatpush1.bf16.msra.mxu0 %v7666_v57  ;;  %4008 = vmatpush1.bf16.msra.mxu1 %v7669_v58  ;;  %v7756_v57 = vld [vmem:[#allocation3 + $0xb00] ss:$16 sps:$4 sm:$0xff]   ;;  %v7759_v58 = vld [vmem:[#allocation3 + $0xb08] ss:$16 sps:$4 sm:$0xff]  }
 0x192   : > { %3665 = vmatprep.subr.bf16.mxu0 %v7674_v59  ;;  %4009 = vmatprep.subr.bf16.mxu1 %v7677_v60  ;;  %v7764_v59 = vld [vmem:[#allocation3 + $0xb24] ss:$16 sps:$4 sm:$0xff]   ;;  %v7767_v60 = vld [vmem:[#allocation3 + $0xb2c] ss:$16 sps:$4 sm:$0xff]  }
 0x195   : > { %3666 = vmatpush1.bf16.msra.mxu0 %v7672_v61  ;;  %4010 = vmatpush1.bf16.msra.mxu1 %v7675_v62  ;;  %v7762_v61 = vld [vmem:[#allocation3 + $0xb20] ss:$16 sps:$4 sm:$0xff]   ;;  %v7765_v62 = vld [vmem:[#allocation3 + $0xb28] ss:$16 sps:$4 sm:$0xff]  }
 0x196   : > { %3667 = vmatprep.subr.bf16.mxu0 %v7680_v63  ;;  %4011 = vmatprep.subr.bf16.mxu1 %v7683_v0  ;;  %v7770_v63 = vld [vmem:[#allocation3 + $0xb44] ss:$16 sps:$4 sm:$0xff]   ;;  %v7773_v0 = vld [vmem:[#allocation3 + $0xb4c] ss:$16 sps:$4 sm:$0xff]  }
 0x199   : > { %3668 = vmatpush1.bf16.msra.mxu0 %v7678_v1  ;;  %4012 = vmatpush1.bf16.msra.mxu1 %v7681_v2  ;;  %v7768_v1 = vld [vmem:[#allocation3 + $0xb40] ss:$16 sps:$4 sm:$0xff]   ;;  %v7771_v2 = vld [vmem:[#allocation3 + $0xb48] ss:$16 sps:$4 sm:$0xff]  }
 0x19a   : > { %3669 = vmatprep.subr.bf16.mxu0 %v7686_v3  ;;  %4013 = vmatprep.subr.bf16.mxu1 %v7689_v4  ;;  %v7776_v3 = vld [vmem:[#allocation3 + $0xb64] ss:$16 sps:$4 sm:$0xff]   ;;  %v7779_v4 = vld [vmem:[#allocation3 + $0xb6c] ss:$16 sps:$4 sm:$0xff]  }
 0x19d   : > { %3670 = vmatpush1.bf16.msra.mxu0 %v7684_v5  ;;  %4014 = vmatpush1.bf16.msra.mxu1 %v7687_v6  ;;  %v7774_v5 = vld [vmem:[#allocation3 + $0xb60] ss:$16 sps:$4 sm:$0xff]   ;;  %v7777_v6 = vld [vmem:[#allocation3 + $0xb68] ss:$16 sps:$4 sm:$0xff]  }
 0x19e   : > { %3671 = vmatprep.subr.bf16.mxu0 %v7692_v7  ;;  %4015 = vmatprep.subr.bf16.mxu1 %v7695_v8  ;;  %v7782_v7 = vld [vmem:[#allocation3 + $0xb84] ss:$16 sps:$4 sm:$0xff]   ;;  %v7785_v8 = vld [vmem:[#allocation3 + $0xb8c] ss:$16 sps:$4 sm:$0xff]  }
 0x1a1   : > { %3672 = vmatpush1.bf16.msra.mxu0 %v7690_v9  ;;  %4016 = vmatpush1.bf16.msra.mxu1 %v7693_v10  ;;  %v7780_v9 = vld [vmem:[#allocation3 + $0xb80] ss:$16 sps:$4 sm:$0xff]   ;;  %v7783_v10 = vld [vmem:[#allocation3 + $0xb88] ss:$16 sps:$4 sm:$0xff]  }
 0x1a2   : > { %3673 = vmatprep.subr.bf16.mxu0 %v7698_v11  ;;  %4017 = vmatprep.subr.bf16.mxu1 %v7701_v12  ;;  %v7788_v11 = vld [vmem:[#allocation3 + $0xba4] ss:$16 sps:$4 sm:$0xff]   ;;  %v7791_v12 = vld [vmem:[#allocation3 + $0xbac] ss:$16 sps:$4 sm:$0xff]  }
 0x1a5   : > { %3674 = vmatpush1.bf16.msra.mxu0 %v7696_v13  ;;  %4018 = vmatpush1.bf16.msra.mxu1 %v7699_v16  ;;  %v7786_v13 = vld [vmem:[#allocation3 + $0xba0] ss:$16 sps:$4 sm:$0xff]   ;;  %v7789_v16 = vld [vmem:[#allocation3 + $0xba8] ss:$16 sps:$4 sm:$0xff]  }
 0x1a6   : > { %3675 = vmatprep.subr.bf16.mxu0 %v7704_v17  ;;  %4019 = vmatprep.subr.bf16.mxu1 %v7707_v20  ;;  %v7794_v17 = vld [vmem:[#allocation3 + $0xbc4] ss:$16 sps:$4 sm:$0xff]   ;;  %v7797_v20 = vld [vmem:[#allocation3 + $0xbcc] ss:$16 sps:$4 sm:$0xff]  }
 0x1a9   : > { %3676 = vmatpush1.bf16.msra.mxu0 %v7702_v22  ;;  %4020 = vmatpush1.bf16.msra.mxu1 %v7705_v15  ;;  %v7792_v22 = vld [vmem:[#allocation3 + $0xbc0] ss:$16 sps:$4 sm:$0xff]   ;;  %v7795_v15 = vld [vmem:[#allocation3 + $0xbc8] ss:$16 sps:$4 sm:$0xff]  }
 0x1aa   : > { %3688 = vmatprep.subr.bf16.mxu0 %v7710_v23  ;;  %4032 = vmatprep.subr.bf16.mxu1 %v7713_v24  ;;  %v7800_v23 = vld [vmem:[#allocation3 + $0xbe4] ss:$16 sps:$4 sm:$0xff]   ;;  %v7803_v24 = vld [vmem:[#allocation3 + $0xbec] ss:$16 sps:$4 sm:$0xff]  }
 0x1ac   : > { %3678 = vmatmul.mubr.bf16.vlgmr.msra.gmra.mrb[0].mxu0 %v6284_v27  ;;  %4022 = vmatmul.mubr.bf16.vlgmr.msra.gmra.mrb[0].mxu1 %v6284_v27  ;;  %v7798_v27 = vld [vmem:[#allocation3 + $0xbe0] ss:$16 sps:$4 sm:$0xff]  }
 0x1ad   : > { %3689 = vmatpush1.bf16.msra.mxu0 %v7708_v18  ;;  %4033 = vmatpush1.bf16.msra.mxu1 %v7711_v19  ;;  %v7801_v18 = vld [vmem:[#allocation3 + $0xbe8] ss:$16 sps:$4 sm:$0xff]   ;;  %v7806_v19 = vld [vmem:[#allocation3 + $0xc04] ss:$16 sps:$4 sm:$0xff]  }
 0x1ae   : > { %3690 = vmatprep.subr.bf16.mxu0 %v7716_v28  ;;  %4034 = vmatprep.subr.bf16.mxu1 %v7719_v29  ;;  %v7809_v28 = vld [vmem:[#allocation3 + $0xc0c] ss:$16 sps:$4 sm:$0xff]   ;;  %v6286_v29 = vcombine.low %v8436_v25, %v8441_v26  ;;  %v7810_v26 = vld [vmem:[#allocation3 + $0xc20] ss:$16 sps:$4 sm:$0xff]  }
 0x1af   : > { %3720 = vmatprep.mubr.bf16.mxu0 %v6287_v30  ;;  %4064 = vmatprep.mubr.bf16.mxu1 %v6287_v30  ;;  %v8452_v30 = vld [vmem:[%s8815_s0 + $0x30] sm:$0xff] }
 0x1b1   : > { %3691 = vmatpush1.bf16.msra.mxu0 %v7714_v31  ;;  %4035 = vmatpush1.bf16.msra.mxu1 %v7717_v32  ;;  %v8457_v31 = vld [vmem:[%s8815_s0 + $0x70] sm:$0xff] }
 0x1b2   : > { %3692 = vmatprep.subr.bf16.mxu0 %v7722_v21  ;;  %4036 = vmatprep.subr.bf16.mxu1 %v7725_v14  ;;  %v7804_v32 = vld [vmem:[#allocation3 + $0xc00] ss:$16 sps:$4 sm:$0xff]   ;;  %v7807_v21 = vld [vmem:[#allocation3 + $0xc08] ss:$16 sps:$4 sm:$0xff]   ;;  %v7812_v14 = vld [vmem:[#allocation3 + $0xc24] ss:$16 sps:$4 sm:$0xff]   ;;  %v6289_v25 = vcombine.high %v8452_v30, %v8457_v31 }
 0x1b5   : > { %3693 = vmatpush1.bf16.msra.mxu0 %v7720_v33  ;;  %4037 = vmatpush1.bf16.msra.mxu1 %v7723_v34  ;;  %v7815_v33 = vld [vmem:[#allocation3 + $0xc2c] ss:$16 sps:$4 sm:$0xff]   ;;  %v7813_v34 = vld [vmem:[#allocation3 + $0xc28] ss:$16 sps:$4 sm:$0xff]  }
 0x1b6   : > { %3694 = vmatprep.subr.bf16.mxu0 %v7728_v35  ;;  %4038 = vmatprep.subr.bf16.mxu1 %v7731_v36  ;;  %v7818_v35 = vld [vmem:[#allocation3 + $0xc44] ss:$16 sps:$4 sm:$0xff]   ;;  %v7821_v36 = vld [vmem:[#allocation3 + $0xc4c] ss:$16 sps:$4 sm:$0xff]  }
 0x1b9   : > { %3695 = vmatpush1.bf16.msra.mxu0 %v7726_v37  ;;  %4039 = vmatpush1.bf16.msra.mxu1 %v7729_v38  ;;  %v7816_v37 = vld [vmem:[#allocation3 + $0xc40] ss:$16 sps:$4 sm:$0xff]   ;;  %v7819_v38 = vld [vmem:[#allocation3 + $0xc48] ss:$16 sps:$4 sm:$0xff]  }
 0x1ba   : > { %3696 = vmatprep.subr.bf16.mxu0 %v7734_v39  ;;  %4040 = vmatprep.subr.bf16.mxu1 %v7737_v40  ;;  %v7824_v39 = vld [vmem:[#allocation3 + $0xc64] ss:$16 sps:$4 sm:$0xff]   ;;  %v7827_v40 = vld [vmem:[#allocation3 + $0xc6c] ss:$16 sps:$4 sm:$0xff]  }
 0x1bd   : > { %3697 = vmatpush1.bf16.msra.mxu0 %v7732_v41  ;;  %4041 = vmatpush1.bf16.msra.mxu1 %v7735_v42  ;;  %v7822_v41 = vld [vmem:[#allocation3 + $0xc60] ss:$16 sps:$4 sm:$0xff]   ;;  %v7825_v42 = vld [vmem:[#allocation3 + $0xc68] ss:$16 sps:$4 sm:$0xff]  }
 0x1be   : > { %3698 = vmatprep.subr.bf16.mxu0 %v7740_v43  ;;  %4042 = vmatprep.subr.bf16.mxu1 %v7743_v44  ;;  %v7830_v43 = vld [vmem:[#allocation3 + $0xc84] ss:$16 sps:$4 sm:$0xff]   ;;  %v7833_v44 = vld [vmem:[#allocation3 + $0xc8c] ss:$16 sps:$4 sm:$0xff]  }
 0x1c1   : > { %3699 = vmatpush1.bf16.msra.mxu0 %v7738_v45  ;;  %4043 = vmatpush1.bf16.msra.mxu1 %v7741_v46  ;;  %v7828_v45 = vld [vmem:[#allocation3 + $0xc80] ss:$16 sps:$4 sm:$0xff]   ;;  %v7831_v46 = vld [vmem:[#allocation3 + $0xc88] ss:$16 sps:$4 sm:$0xff]  }
 0x1c2   : > { %3700 = vmatprep.subr.bf16.mxu0 %v7746_v47  ;;  %4044 = vmatprep.subr.bf16.mxu1 %v7749_v48  ;;  %v7836_v47 = vld [vmem:[#allocation3 + $0xca4] ss:$16 sps:$4 sm:$0xff]   ;;  %v7839_v48 = vld [vmem:[#allocation3 + $0xcac] ss:$16 sps:$4 sm:$0xff]  }
 0x1c5   : > { %3701 = vmatpush1.bf16.msra.mxu0 %v7744_v49  ;;  %4045 = vmatpush1.bf16.msra.mxu1 %v7747_v50  ;;  %v7834_v49 = vld [vmem:[#allocation3 + $0xca0] ss:$16 sps:$4 sm:$0xff]   ;;  %v7837_v50 = vld [vmem:[#allocation3 + $0xca8] ss:$16 sps:$4 sm:$0xff]  }
 0x1c6   : > { %3702 = vmatprep.subr.bf16.mxu0 %v7752_v51  ;;  %4046 = vmatprep.subr.bf16.mxu1 %v7755_v52  ;;  %v7842_v51 = vld [vmem:[#allocation3 + $0xcc4] ss:$16 sps:$4 sm:$0xff]   ;;  %v7845_v52 = vld [vmem:[#allocation3 + $0xccc] ss:$16 sps:$4 sm:$0xff]  }
 0x1c9   : > { %3703 = vmatpush1.bf16.msra.mxu0 %v7750_v53  ;;  %4047 = vmatpush1.bf16.msra.mxu1 %v7753_v54  ;;  %v7840_v53 = vld [vmem:[#allocation3 + $0xcc0] ss:$16 sps:$4 sm:$0xff]   ;;  %v7843_v54 = vld [vmem:[#allocation3 + $0xcc8] ss:$16 sps:$4 sm:$0xff]  }
 0x1ca   : > { %3704 = vmatprep.subr.bf16.mxu0 %v7758_v55  ;;  %4048 = vmatprep.subr.bf16.mxu1 %v7761_v56  ;;  %v7848_v55 = vld [vmem:[#allocation3 + $0xce4] ss:$16 sps:$4 sm:$0xff]   ;;  %v7851_v56 = vld [vmem:[#allocation3 + $0xcec] ss:$16 sps:$4 sm:$0xff]  }
 0x1cd   : > { %3705 = vmatpush1.bf16.msra.mxu0 %v7756_v57  ;;  %4049 = vmatpush1.bf16.msra.mxu1 %v7759_v58  ;;  %v7846_v57 = vld [vmem:[#allocation3 + $0xce0] ss:$16 sps:$4 sm:$0xff]   ;;  %v7849_v58 = vld [vmem:[#allocation3 + $0xce8] ss:$16 sps:$4 sm:$0xff]  }
 0x1ce   : > { %3706 = vmatprep.subr.bf16.mxu0 %v7764_v59  ;;  %4050 = vmatprep.subr.bf16.mxu1 %v7767_v60  ;;  %v7854_v59 = vld [vmem:[#allocation3 + $0xd04] ss:$16 sps:$4 sm:$0xff]   ;;  %v7857_v60 = vld [vmem:[#allocation3 + $0xd0c] ss:$16 sps:$4 sm:$0xff]  }
 0x1d1   : > { %3707 = vmatpush1.bf16.msra.mxu0 %v7762_v61  ;;  %4051 = vmatpush1.bf16.msra.mxu1 %v7765_v62  ;;  %v7852_v61 = vld [vmem:[#allocation3 + $0xd00] ss:$16 sps:$4 sm:$0xff]   ;;  %v7855_v62 = vld [vmem:[#allocation3 + $0xd08] ss:$16 sps:$4 sm:$0xff]  }
 0x1d2   : > { %3708 = vmatprep.subr.bf16.mxu0 %v7770_v63  ;;  %4052 = vmatprep.subr.bf16.mxu1 %v7773_v0  ;;  %v7860_v63 = vld [vmem:[#allocation3 + $0xd24] ss:$16 sps:$4 sm:$0xff]   ;;  %v7863_v0 = vld [vmem:[#allocation3 + $0xd2c] ss:$16 sps:$4 sm:$0xff]  }
 0x1d5   : > { %3709 = vmatpush1.bf16.msra.mxu0 %v7768_v1  ;;  %4053 = vmatpush1.bf16.msra.mxu1 %v7771_v2  ;;  %v7858_v1 = vld [vmem:[#allocation3 + $0xd20] ss:$16 sps:$4 sm:$0xff]   ;;  %v7861_v2 = vld [vmem:[#allocation3 + $0xd28] ss:$16 sps:$4 sm:$0xff]  }
 0x1d6   : > { %3710 = vmatprep.subr.bf16.mxu0 %v7776_v3  ;;  %4054 = vmatprep.subr.bf16.mxu1 %v7779_v4  ;;  %v7866_v3 = vld [vmem:[#allocation3 + $0xd44] ss:$16 sps:$4 sm:$0xff]   ;;  %v7869_v4 = vld [vmem:[#allocation3 + $0xd4c] ss:$16 sps:$4 sm:$0xff]  }
 0x1d9   : > { %3711 = vmatpush1.bf16.msra.mxu0 %v7774_v5  ;;  %4055 = vmatpush1.bf16.msra.mxu1 %v7777_v6  ;;  %v7864_v5 = vld [vmem:[#allocation3 + $0xd40] ss:$16 sps:$4 sm:$0xff]   ;;  %v7867_v6 = vld [vmem:[#allocation3 + $0xd48] ss:$16 sps:$4 sm:$0xff]  }
 0x1da   : > { %3712 = vmatprep.subr.bf16.mxu0 %v7782_v7  ;;  %4056 = vmatprep.subr.bf16.mxu1 %v7785_v8  ;;  %v7872_v7 = vld [vmem:[#allocation3 + $0xd64] ss:$16 sps:$4 sm:$0xff]   ;;  %v7875_v8 = vld [vmem:[#allocation3 + $0xd6c] ss:$16 sps:$4 sm:$0xff]  }
 0x1dd   : > { %3713 = vmatpush1.bf16.msra.mxu0 %v7780_v9  ;;  %4057 = vmatpush1.bf16.msra.mxu1 %v7783_v10  ;;  %v7870_v9 = vld [vmem:[#allocation3 + $0xd60] ss:$16 sps:$4 sm:$0xff]   ;;  %v7873_v10 = vld [vmem:[#allocation3 + $0xd68] ss:$16 sps:$4 sm:$0xff]  }
 0x1de   : > { %3714 = vmatprep.subr.bf16.mxu0 %v7788_v11  ;;  %4058 = vmatprep.subr.bf16.mxu1 %v7791_v12  ;;  %v7878_v11 = vld [vmem:[#allocation3 + $0xd84] ss:$16 sps:$4 sm:$0xff]   ;;  %v7881_v12 = vld [vmem:[#allocation3 + $0xd8c] ss:$16 sps:$4 sm:$0xff]  }
 0x1e1   : > { %3715 = vmatpush1.bf16.msra.mxu0 %v7786_v13  ;;  %4059 = vmatpush1.bf16.msra.mxu1 %v7789_v16  ;;  %v7876_v13 = vld [vmem:[#allocation3 + $0xd80] ss:$16 sps:$4 sm:$0xff]   ;;  %v7879_v16 = vld [vmem:[#allocation3 + $0xd88] ss:$16 sps:$4 sm:$0xff]  }
 0x1e2   : > { %3716 = vmatprep.subr.bf16.mxu0 %v7794_v17  ;;  %4060 = vmatprep.subr.bf16.mxu1 %v7797_v20  ;;  %v7884_v17 = vld [vmem:[#allocation3 + $0xda4] ss:$16 sps:$4 sm:$0xff]   ;;  %v7887_v20 = vld [vmem:[#allocation3 + $0xdac] ss:$16 sps:$4 sm:$0xff]  }
 0x1e5   : > { %3717 = vmatpush1.bf16.msra.mxu0 %v7792_v22  ;;  %4061 = vmatpush1.bf16.msra.mxu1 %v7795_v15  ;;  %v7882_v22 = vld [vmem:[#allocation3 + $0xda0] ss:$16 sps:$4 sm:$0xff]   ;;  %v7885_v15 = vld [vmem:[#allocation3 + $0xda8] ss:$16 sps:$4 sm:$0xff]  }
 0x1e6   : > { %3718 = vmatprep.subr.bf16.mxu0 %v7800_v23  ;;  %4062 = vmatprep.subr.bf16.mxu1 %v7803_v24  ;;  %v7890_v23 = vld [vmem:[#allocation3 + $0xdc4] ss:$16 sps:$4 sm:$0xff]   ;;  %v7893_v24 = vld [vmem:[#allocation3 + $0xdcc] ss:$16 sps:$4 sm:$0xff]  }
 0x1e9   : > { %3719 = vmatpush1.bf16.msra.mxu0 %v7798_v27  ;;  %4063 = vmatpush1.bf16.msra.mxu1 %v7801_v18  ;;  %v7888_v27 = vld [vmem:[#allocation3 + $0xdc0] ss:$16 sps:$4 sm:$0xff]   ;;  %v7891_v18 = vld [vmem:[#allocation3 + $0xdc8] ss:$16 sps:$4 sm:$0xff]  }
 0x1ea   : > { %3731 = vmatprep.subr.bf16.mxu0 %v7806_v19  ;;  %4075 = vmatprep.subr.bf16.mxu1 %v7809_v28  ;;  %v7896_v19 = vld [vmem:[#allocation3 + $0xde4] ss:$16 sps:$4 sm:$0xff]   ;;  %v7899_v28 = vld [vmem:[#allocation3 + $0xdec] ss:$16 sps:$4 sm:$0xff]  }
 0x1ec   : > { %3721 = vmatmul.mubr.bf16.vlgmr.msra.gmra.mrb[0].mxu0 %v6286_v29  ;;  %4065 = vmatmul.mubr.bf16.vlgmr.msra.gmra.mrb[0].mxu1 %v6286_v29  ;;  %v7894_v29 = vld [vmem:[#allocation3 + $0xde0] ss:$16 sps:$4 sm:$0xff]  }
 0x1ed   : > { %3732 = vmatpush1.bf16.msra.mxu0 %v7804_v32  ;;  %4076 = vmatpush1.bf16.msra.mxu1 %v7807_v21  ;;  %v7897_v32 = vld [vmem:[#allocation3 + $0xde8] ss:$16 sps:$4 sm:$0xff]   ;;  %v7902_v21 = vld [vmem:[#allocation3 + $0xe04] ss:$16 sps:$4 sm:$0xff]  }
 0x1ee   : > { %3733 = vmatprep.subr.bf16.mxu0 %v7812_v14  ;;  %4077 = vmatprep.subr.bf16.mxu1 %v7815_v33  ;;  %v7905_v14 = vld [vmem:[#allocation3 + $0xe0c] ss:$16 sps:$4 sm:$0xff]   ;;  %v6288_v33 = vcombine.low %v8452_v30, %v8457_v31  ;;  %v7906_v31 = vld [vmem:[#allocation3 + $0xe20] ss:$16 sps:$4 sm:$0xff]  }
 0x1ef   : > { %3763 = vmatprep.mubr.bf16.mxu0 %v6289_v25  ;;  %4107 = vmatprep.mubr.bf16.mxu1 %v6289_v25  ;;  %v8466_v25 = vld [vmem:[%s8815_s0 + $0x38] sm:$0xff] }
 0x1f1   : > { %3734 = vmatpush1.bf16.msra.mxu0 %v7810_v26  ;;  %4078 = vmatpush1.bf16.msra.mxu1 %v7813_v34  ;;  %v8471_v26 = vld [vmem:[%s8815_s0 + $0x78] sm:$0xff]  ;;  %v7900_v34 = vld [vmem:[#allocation3 + $0xe00] ss:$16 sps:$4 sm:$0xff]  }
 0x1f2   : > { %3735 = vmatprep.subr.bf16.mxu0 %v7818_v35  ;;  %4079 = vmatprep.subr.bf16.mxu1 %v7821_v36  ;;  %v7903_v35 = vld [vmem:[#allocation3 + $0xe08] ss:$16 sps:$4 sm:$0xff]   ;;  %v7908_v36 = vld [vmem:[#allocation3 + $0xe24] ss:$16 sps:$4 sm:$0xff]   ;;  %v6291_v30 = vcombine.high %v8466_v25, %v8471_v26 }
 0x1f5   : > { %3736 = vmatpush1.bf16.msra.mxu0 %v7816_v37  ;;  %4080 = vmatpush1.bf16.msra.mxu1 %v7819_v38  ;;  %v7911_v37 = vld [vmem:[#allocation3 + $0xe2c] ss:$16 sps:$4 sm:$0xff]   ;;  %v7909_v38 = vld [vmem:[#allocation3 + $0xe28] ss:$16 sps:$4 sm:$0xff]  }
 0x1f6   : > { %3737 = vmatprep.subr.bf16.mxu0 %v7824_v39  ;;  %4081 = vmatprep.subr.bf16.mxu1 %v7827_v40  ;;  %v7914_v39 = vld [vmem:[#allocation3 + $0xe44] ss:$16 sps:$4 sm:$0xff]   ;;  %v7917_v40 = vld [vmem:[#allocation3 + $0xe4c] ss:$16 sps:$4 sm:$0xff]  }
 0x1f9   : > { %3738 = vmatpush1.bf16.msra.mxu0 %v7822_v41  ;;  %4082 = vmatpush1.bf16.msra.mxu1 %v7825_v42  ;;  %v7912_v41 = vld [vmem:[#allocation3 + $0xe40] ss:$16 sps:$4 sm:$0xff]   ;;  %v7915_v42 = vld [vmem:[#allocation3 + $0xe48] ss:$16 sps:$4 sm:$0xff]  }
 0x1fa   : > { %3739 = vmatprep.subr.bf16.mxu0 %v7830_v43  ;;  %4083 = vmatprep.subr.bf16.mxu1 %v7833_v44  ;;  %v7920_v43 = vld [vmem:[#allocation3 + $0xe64] ss:$16 sps:$4 sm:$0xff]   ;;  %v7923_v44 = vld [vmem:[#allocation3 + $0xe6c] ss:$16 sps:$4 sm:$0xff]  }
 0x1fd   : > { %3740 = vmatpush1.bf16.msra.mxu0 %v7828_v45  ;;  %4084 = vmatpush1.bf16.msra.mxu1 %v7831_v46  ;;  %v7918_v45 = vld [vmem:[#allocation3 + $0xe60] ss:$16 sps:$4 sm:$0xff]   ;;  %v7921_v46 = vld [vmem:[#allocation3 + $0xe68] ss:$16 sps:$4 sm:$0xff]  }
 0x1fe   : > { %3741 = vmatprep.subr.bf16.mxu0 %v7836_v47  ;;  %4085 = vmatprep.subr.bf16.mxu1 %v7839_v48  ;;  %v7926_v47 = vld [vmem:[#allocation3 + $0xe84] ss:$16 sps:$4 sm:$0xff]   ;;  %v7929_v48 = vld [vmem:[#allocation3 + $0xe8c] ss:$16 sps:$4 sm:$0xff]  }
 0x201   : > { %3742 = vmatpush1.bf16.msra.mxu0 %v7834_v49  ;;  %4086 = vmatpush1.bf16.msra.mxu1 %v7837_v50  ;;  %v7924_v49 = vld [vmem:[#allocation3 + $0xe80] ss:$16 sps:$4 sm:$0xff]   ;;  %v7927_v50 = vld [vmem:[#allocation3 + $0xe88] ss:$16 sps:$4 sm:$0xff]  }
 0x202   : > { %3743 = vmatprep.subr.bf16.mxu0 %v7842_v51  ;;  %4087 = vmatprep.subr.bf16.mxu1 %v7845_v52  ;;  %v7932_v51 = vld [vmem:[#allocation3 + $0xea4] ss:$16 sps:$4 sm:$0xff]   ;;  %v7935_v52 = vld [vmem:[#allocation3 + $0xeac] ss:$16 sps:$4 sm:$0xff]  }
 0x205   : > { %3744 = vmatpush1.bf16.msra.mxu0 %v7840_v53  ;;  %4088 = vmatpush1.bf16.msra.mxu1 %v7843_v54  ;;  %v7930_v53 = vld [vmem:[#allocation3 + $0xea0] ss:$16 sps:$4 sm:$0xff]   ;;  %v7933_v54 = vld [vmem:[#allocation3 + $0xea8] ss:$16 sps:$4 sm:$0xff]  }
 0x206   : > { %3745 = vmatprep.subr.bf16.mxu0 %v7848_v55  ;;  %4089 = vmatprep.subr.bf16.mxu1 %v7851_v56  ;;  %v7938_v55 = vld [vmem:[#allocation3 + $0xec4] ss:$16 sps:$4 sm:$0xff]   ;;  %v7941_v56 = vld [vmem:[#allocation3 + $0xecc] ss:$16 sps:$4 sm:$0xff]  }
 0x209   : > { %3746 = vmatpush1.bf16.msra.mxu0 %v7846_v57  ;;  %4090 = vmatpush1.bf16.msra.mxu1 %v7849_v58  ;;  %v7936_v57 = vld [vmem:[#allocation3 + $0xec0] ss:$16 sps:$4 sm:$0xff]   ;;  %v7939_v58 = vld [vmem:[#allocation3 + $0xec8] ss:$16 sps:$4 sm:$0xff]  }
 0x20a   : > { %3747 = vmatprep.subr.bf16.mxu0 %v7854_v59  ;;  %4091 = vmatprep.subr.bf16.mxu1 %v7857_v60  ;;  %v7944_v59 = vld [vmem:[#allocation3 + $0xee4] ss:$16 sps:$4 sm:$0xff]   ;;  %v7947_v60 = vld [vmem:[#allocation3 + $0xeec] ss:$16 sps:$4 sm:$0xff]  }
 0x20d   : > { %3748 = vmatpush1.bf16.msra.mxu0 %v7852_v61  ;;  %4092 = vmatpush1.bf16.msra.mxu1 %v7855_v62  ;;  %v7942_v61 = vld [vmem:[#allocation3 + $0xee0] ss:$16 sps:$4 sm:$0xff]   ;;  %v7945_v62 = vld [vmem:[#allocation3 + $0xee8] ss:$16 sps:$4 sm:$0xff]  }
 0x20e   : > { %3749 = vmatprep.subr.bf16.mxu0 %v7860_v63  ;;  %4093 = vmatprep.subr.bf16.mxu1 %v7863_v0  ;;  %v7950_v63 = vld [vmem:[#allocation3 + $0xf04] ss:$16 sps:$4 sm:$0xff]   ;;  %v7953_v0 = vld [vmem:[#allocation3 + $0xf0c] ss:$16 sps:$4 sm:$0xff]  }
 0x211   : > { %3750 = vmatpush1.bf16.msra.mxu0 %v7858_v1  ;;  %4094 = vmatpush1.bf16.msra.mxu1 %v7861_v2  ;;  %v7948_v1 = vld [vmem:[#allocation3 + $0xf00] ss:$16 sps:$4 sm:$0xff]   ;;  %v7951_v2 = vld [vmem:[#allocation3 + $0xf08] ss:$16 sps:$4 sm:$0xff]  }
 0x212   : > { %3751 = vmatprep.subr.bf16.mxu0 %v7866_v3  ;;  %4095 = vmatprep.subr.bf16.mxu1 %v7869_v4  ;;  %v7956_v3 = vld [vmem:[#allocation3 + $0xf24] ss:$16 sps:$4 sm:$0xff]   ;;  %v7959_v4 = vld [vmem:[#allocation3 + $0xf2c] ss:$16 sps:$4 sm:$0xff]  }
 0x215   : > { %3752 = vmatpush1.bf16.msra.mxu0 %v7864_v5  ;;  %4096 = vmatpush1.bf16.msra.mxu1 %v7867_v6  ;;  %v7954_v5 = vld [vmem:[#allocation3 + $0xf20] ss:$16 sps:$4 sm:$0xff]   ;;  %v7957_v6 = vld [vmem:[#allocation3 + $0xf28] ss:$16 sps:$4 sm:$0xff]  }
 0x216   : > { %3753 = vmatprep.subr.bf16.mxu0 %v7872_v7  ;;  %4097 = vmatprep.subr.bf16.mxu1 %v7875_v8  ;;  %v7962_v7 = vld [vmem:[#allocation3 + $0xf44] ss:$16 sps:$4 sm:$0xff]   ;;  %v7965_v8 = vld [vmem:[#allocation3 + $0xf4c] ss:$16 sps:$4 sm:$0xff]  }
 0x219   : > { %3754 = vmatpush1.bf16.msra.mxu0 %v7870_v9  ;;  %4098 = vmatpush1.bf16.msra.mxu1 %v7873_v10  ;;  %v7960_v9 = vld [vmem:[#allocation3 + $0xf40] ss:$16 sps:$4 sm:$0xff]   ;;  %v7963_v10 = vld [vmem:[#allocation3 + $0xf48] ss:$16 sps:$4 sm:$0xff]  }
 0x21a   : > { %3755 = vmatprep.subr.bf16.mxu0 %v7878_v11  ;;  %4099 = vmatprep.subr.bf16.mxu1 %v7881_v12  ;;  %v7968_v11 = vld [vmem:[#allocation3 + $0xf64] ss:$16 sps:$4 sm:$0xff]   ;;  %v7971_v12 = vld [vmem:[#allocation3 + $0xf6c] ss:$16 sps:$4 sm:$0xff]  }
 0x21d   : > { %3756 = vmatpush1.bf16.msra.mxu0 %v7876_v13  ;;  %4100 = vmatpush1.bf16.msra.mxu1 %v7879_v16  ;;  %v7966_v13 = vld [vmem:[#allocation3 + $0xf60] ss:$16 sps:$4 sm:$0xff]   ;;  %v7969_v16 = vld [vmem:[#allocation3 + $0xf68] ss:$16 sps:$4 sm:$0xff]  }
 0x21e   : > { %3757 = vmatprep.subr.bf16.mxu0 %v7884_v17  ;;  %4101 = vmatprep.subr.bf16.mxu1 %v7887_v20  ;;  %v7974_v17 = vld [vmem:[#allocation3 + $0xf84] ss:$16 sps:$4 sm:$0xff]   ;;  %v7977_v20 = vld [vmem:[#allocation3 + $0xf8c] ss:$16 sps:$4 sm:$0xff]  }
 0x221   : > { %3758 = vmatpush1.bf16.msra.mxu0 %v7882_v22  ;;  %4102 = vmatpush1.bf16.msra.mxu1 %v7885_v15  ;;  %v7972_v22 = vld [vmem:[#allocation3 + $0xf80] ss:$16 sps:$4 sm:$0xff]   ;;  %v7975_v15 = vld [vmem:[#allocation3 + $0xf88] ss:$16 sps:$4 sm:$0xff]  }
 0x222   : > { %3759 = vmatprep.subr.bf16.mxu0 %v7890_v23  ;;  %4103 = vmatprep.subr.bf16.mxu1 %v7893_v24  ;;  %v7980_v23 = vld [vmem:[#allocation3 + $0xfa4] ss:$16 sps:$4 sm:$0xff]   ;;  %v7983_v24 = vld [vmem:[#allocation3 + $0xfac] ss:$16 sps:$4 sm:$0xff]  }
 0x225   : > { %3760 = vmatpush1.bf16.msra.mxu0 %v7888_v27  ;;  %4104 = vmatpush1.bf16.msra.mxu1 %v7891_v18  ;;  %v7978_v27 = vld [vmem:[#allocation3 + $0xfa0] ss:$16 sps:$4 sm:$0xff]   ;;  %v7981_v18 = vld [vmem:[#allocation3 + $0xfa8] ss:$16 sps:$4 sm:$0xff]  }
 0x226   : > { %3761 = vmatprep.subr.bf16.mxu0 %v7896_v19  ;;  %4105 = vmatprep.subr.bf16.mxu1 %v7899_v28  ;;  %v7986_v19 = vld [vmem:[#allocation3 + $0xfc4] ss:$16 sps:$4 sm:$0xff]   ;;  %v7989_v28 = vld [vmem:[#allocation3 + $0xfcc] ss:$16 sps:$4 sm:$0xff]  }
 0x229   : > { %3762 = vmatpush1.bf16.msra.mxu0 %v7894_v29  ;;  %4106 = vmatpush1.bf16.msra.mxu1 %v7897_v32  ;;  %v7984_v29 = vld [vmem:[#allocation3 + $0xfc0] ss:$16 sps:$4 sm:$0xff]   ;;  %v7987_v32 = vld [vmem:[#allocation3 + $0xfc8] ss:$16 sps:$4 sm:$0xff]  }
 0x22a   : > { %3774 = vmatprep.subr.bf16.mxu0 %v7902_v21  ;;  %4118 = vmatprep.subr.bf16.mxu1 %v7905_v14  ;;  %v7992_v21 = vld [vmem:[#allocation3 + $0xfe4] ss:$16 sps:$4 sm:$0xff]   ;;  %v7995_v14 = vld [vmem:[#allocation3 + $0xfec] ss:$16 sps:$4 sm:$0xff]  }
 0x22c   : > { %3764 = vmatmul.mubr.bf16.vlgmr.msra.gmra.mrb[0].mxu0 %v6288_v33  ;;  %4108 = vmatmul.mubr.bf16.vlgmr.msra.gmra.mrb[0].mxu1 %v6288_v33  ;;  %v7990_v33 = vld [vmem:[#allocation3 + $0xfe0] ss:$16 sps:$4 sm:$0xff]  }
 0x22d   : > { %3775 = vmatpush1.bf16.msra.mxu0 %v7900_v34  ;;  %4119 = vmatpush1.bf16.msra.mxu1 %v7903_v35  ;;  %v7993_v34 = vld [vmem:[#allocation3 + $0xfe8] ss:$16 sps:$4 sm:$0xff]   ;;  %v6290_v35 = vcombine.low %v8466_v25, %v8471_v26 }
 0x22e   : > { %3776 = vmatprep.subr.bf16.mxu0 %v7908_v36  ;;  %4120 = vmatprep.subr.bf16.mxu1 %v7911_v37  ;;  %v813_v36 = vlaneseq }
 0x22f   : > { %3806 = vmatprep.mubr.bf16.mxu0 %v6291_v30  ;;  %4150 = vmatprep.mubr.bf16.mxu1 %v6291_v30 }
 0x230   : > { %v814_v37 = vshrl.u32 %v813_v36, 7 }
 0x231   : > { %3777 = vmatpush1.bf16.msra.mxu0 %v7906_v31  ;;  %4121 = vmatpush1.bf16.msra.mxu1 %v7909_v38  ;;  %v811_v38 = vld [vmem:[#allocation5] sm:$0xf] }
 0x232   : > { %3778 = vmatprep.subr.bf16.mxu0 %v7914_v39  ;;  %4122 = vmatprep.subr.bf16.mxu1 %v7917_v40  ;;  %v815_v30 = vsub.s32 0, %v814_v37  ;;  %v823_v31 = vsub.s32 2, %v814_v37  ;;  %v819_v39 = vsub.s32 1, %v814_v37  ;;  %v827_v40 = vsub.s32 3, %v814_v37 }
 0x235   : > { %3779 = vmatpush1.bf16.msra.mxu0 %v7912_v41  ;;  %4123 = vmatpush1.bf16.msra.mxu1 %v7915_v42  ;;  %v816_v41 = vrot.slane %v811_v38, %v815_v30  ;;  %v824_v42 = vrot.slane %v811_v38, %v823_v31 }
 0x236   : > { %3780 = vmatprep.subr.bf16.mxu0 %v7920_v43  ;;  %4124 = vmatprep.subr.bf16.mxu1 %v7923_v44  ;;  %v820_v43 = vrot.slane %v811_v38, %v819_v39  ;;  %v828_v44 = vrot.slane %v811_v38, %v827_v40 }
 0x239   : > { %3781 = vmatpush1.bf16.msra.mxu0 %v7918_v45  ;;  %4125 = vmatpush1.bf16.msra.mxu1 %v7921_v46 }
 0x23a   : > { %3782 = vmatprep.subr.bf16.mxu0 %v7926_v47  ;;  %4126 = vmatprep.subr.bf16.mxu1 %v7929_v48 }
 0x23d   : > { %3783 = vmatpush1.bf16.msra.mxu0 %v7924_v49  ;;  %4127 = vmatpush1.bf16.msra.mxu1 %v7927_v50 }
 0x23e   : > { %3784 = vmatprep.subr.bf16.mxu0 %v7932_v51  ;;  %4128 = vmatprep.subr.bf16.mxu1 %v7935_v52 }
 0x241   : > { %3785 = vmatpush1.bf16.msra.mxu0 %v7930_v53  ;;  %4129 = vmatpush1.bf16.msra.mxu1 %v7933_v54 }
 0x242   : > { %3786 = vmatprep.subr.bf16.mxu0 %v7938_v55  ;;  %4130 = vmatprep.subr.bf16.mxu1 %v7941_v56 }
 0x245   : > { %3787 = vmatpush1.bf16.msra.mxu0 %v7936_v57  ;;  %4131 = vmatpush1.bf16.msra.mxu1 %v7939_v58 }
 0x246   : > { %3788 = vmatprep.subr.bf16.mxu0 %v7944_v59  ;;  %4132 = vmatprep.subr.bf16.mxu1 %v7947_v60 }
 0x249   : > { %3789 = vmatpush1.bf16.msra.mxu0 %v7942_v61  ;;  %4133 = vmatpush1.bf16.msra.mxu1 %v7945_v62 }
 0x24a   : > { %3790 = vmatprep.subr.bf16.mxu0 %v7950_v63  ;;  %4134 = vmatprep.subr.bf16.mxu1 %v7953_v0 }
 0x24d   : > { %3791 = vmatpush1.bf16.msra.mxu0 %v7948_v1  ;;  %4135 = vmatpush1.bf16.msra.mxu1 %v7951_v2 }
 0x24e   : > { %3792 = vmatprep.subr.bf16.mxu0 %v7956_v3  ;;  %4136 = vmatprep.subr.bf16.mxu1 %v7959_v4 }
 0x251   : > { %3793 = vmatpush1.bf16.msra.mxu0 %v7954_v5  ;;  %4137 = vmatpush1.bf16.msra.mxu1 %v7957_v6 }
 0x252   : > { %3794 = vmatprep.subr.bf16.mxu0 %v7962_v7  ;;  %4138 = vmatprep.subr.bf16.mxu1 %v7965_v8 }
 0x255   : > { %3795 = vmatpush1.bf16.msra.mxu0 %v7960_v9  ;;  %4139 = vmatpush1.bf16.msra.mxu1 %v7963_v10 }
 0x256   : > { %3796 = vmatprep.subr.bf16.mxu0 %v7968_v11  ;;  %4140 = vmatprep.subr.bf16.mxu1 %v7971_v12 }
 0x259   : > { %3797 = vmatpush1.bf16.msra.mxu0 %v7966_v13  ;;  %4141 = vmatpush1.bf16.msra.mxu1 %v7969_v16 }
 0x25a   : > { %3798 = vmatprep.subr.bf16.mxu0 %v7974_v17  ;;  %4142 = vmatprep.subr.bf16.mxu1 %v7977_v20 }
 0x25d   : > { %3799 = vmatpush1.bf16.msra.mxu0 %v7972_v22  ;;  %4143 = vmatpush1.bf16.msra.mxu1 %v7975_v15 }
 0x25e   : > { %3800 = vmatprep.subr.bf16.mxu0 %v7980_v23  ;;  %4144 = vmatprep.subr.bf16.mxu1 %v7983_v24 }
 0x261   : > { %3801 = vmatpush1.bf16.msra.mxu0 %v7978_v27  ;;  %4145 = vmatpush1.bf16.msra.mxu1 %v7981_v18 }
 0x262   : > { %3802 = vmatprep.subr.bf16.mxu0 %v7986_v19  ;;  %4146 = vmatprep.subr.bf16.mxu1 %v7989_v28 }
 0x265   : > { %3803 = vmatpush1.bf16.msra.mxu0 %v7984_v29  ;;  %4147 = vmatpush1.bf16.msra.mxu1 %v7987_v32 }
 0x266   : > { %3804 = vmatprep.subr.bf16.mxu0 %v7992_v21  ;;  %4148 = vmatprep.subr.bf16.mxu1 %v7995_v14 }
 0x269   : > { %3805 = vmatpush1.bf16.msra.mxu0 %v7990_v33  ;;  %4149 = vmatpush1.bf16.msra.mxu1 %v7993_v34 }
 0x26c   : > { %3807 = vmatmul.mubr.bf16.vlgmr.msra.gmra.mrb[0].mxu0 %v6290_v35  ;;  %4151 = vmatmul.mubr.bf16.vlgmr.msra.gmra.mrb[0].mxu1 %v6290_v35 }
 0x33f   : > { %v3808_v45 = vpop.f32.mrb[0].mxu0  ;;  %v4152_v46 = vpop.f32.mrb[0].mxu1 }
 0x340   : > { %v7067_v47 = vadd.f32 %v3808_v45, %v816_v41  ;;  %v7071_v48 = vadd.f32 %v4152_v46, %v824_v42  ;;  %v3810_v25 = vpop.f32.mrb[1].mxu0  ;;  %v4154_v26 = vpop.f32.mrb[1].mxu1 }
 0x341   : > { %v7068_v49 = vadd.f32 %v3810_v25, %v820_v43  ;;  %v7072_v50 = vadd.f32 %v4154_v26, %v828_v44  ;;  %v3812_v51 = vpop.f32.mrb[2].mxu0  ;;  %v4156_v52 = vpop.f32.mrb[2].mxu1 }
 0x342   : > { %vm4161_vm0 = vcmp.ge.f32.partialorder %v7067_v47, 0.0  ;;  %v4169_v53 = vmul.f32 0.01, %v7067_v47  ;;  %vm4163_vm1 = vcmp.ge.f32.partialorder %v7071_v48, 0.0  ;;  %v4171_v54 = vmul.f32 0.01, %v7071_v48 }
 0x343   : > { %vm4162_vm2 = vcmp.ge.f32.partialorder %v7068_v49, 0.0  ;;  %v4170_v55 = vmul.f32 0.01, %v7068_v49  ;;  %vm4164_vm3 = vcmp.ge.f32.partialorder %v7072_v50, 0.0  ;;  %v4172_v56 = vmul.f32 0.01, %v7072_v50 }
 0x344   : > { %v7069_v57 = vadd.f32 %v3812_v51, %v816_v41  ;;  %v7073_v58 = vadd.f32 %v4156_v52, %v824_v42  ;;  %v3814_v59 = vpop.f32.mrb[3].mxu0  ;;  %v4158_v60 = vpop.f32.mrb[3].mxu1  ;;  %v4177_v61 = vsel %vm4161_vm0, %v7067_v47, %v4169_v53  ;;  %v4179_v62 = vsel %vm4163_vm1, %v7071_v48, %v4171_v54 }
 0x345   : > { %v7070_v63 = vadd.f32 %v3814_v59, %v820_v43  ;;  %v7074_v0 = vadd.f32 %v4158_v60, %v828_v44  ;;  %v4178_v5 = vsel %vm4162_vm2, %v7068_v49, %v4170_v55  ;;  %v4180_v6 = vsel %vm4164_vm3, %v7072_v50, %v4172_v56 }
 0x346   : > { %vm4165_vm4 = vcmp.ge.f32.partialorder %v7069_v57, 0.0  ;;  %v4173_v1 = vmul.f32 0.01, %v7069_v57  ;;  %vm4167_vm5 = vcmp.ge.f32.partialorder %v7073_v58, 0.0  ;;  %v4175_v2 = vmul.f32 0.01, %v7073_v58 }
 0x347   : > { %vm4166_vm6 = vcmp.ge.f32.partialorder %v7070_v63, 0.0  ;;  %v4174_v3 = vmul.f32 0.01, %v7070_v63  ;;  %vm4168_vm7 = vcmp.ge.f32.partialorder %v7074_v0, 0.0  ;;  %v4176_v4 = vmul.f32 0.01, %v7074_v0 }
 0x348   : > { %v4181_v7 = vsel %vm4165_vm4, %v7069_v57, %v4173_v1  ;;  %v4183_v8 = vsel %vm4167_vm5, %v7073_v58, %v4175_v2 }
 0x349   : > { %v4185_v9 = vpack.c.bf16 %v4181_v7, %v4177_v61  ;;  %v4187_v10 = vpack.c.bf16 %v4183_v8, %v4179_v62  ;;  %v4182_v11 = vsel %vm4166_vm6, %v7070_v63, %v4174_v3  ;;  %v4184_v12 = vsel %vm4168_vm7, %v7074_v0, %v4176_v4 }
 0x34a   : > { %v4186_v13 = vpack.c.bf16 %v4182_v11, %v4178_v5  ;;  %v4188_v16 = vpack.c.bf16 %v4184_v12, %v4180_v6 }
 0x34b   : > { %4189 = vst [vmem:[#allocation2] sm:$0xff] %v4185_v9  ;;  %4191 = vst [vmem:[#allocation2 + $0x10] sm:$0xff] %v4187_v10 }
 0x34c   : > { %4190 = vst [vmem:[#allocation2 + $0x8] sm:$0xff] %v4186_v13  ;;  %4192 = vst [vmem:[#allocation2 + $0x18] sm:$0xff] %v4188_v16 }
 0x34d PF: > { %v4197_v17 = vld [vmem:[%s8364_s28] sm:$0xff]  ;;  %v4198_v22 = vld [vmem:[%s8364_s28 + $0x8] sm:$0xff]  ;;  %p8833_p3 = scmp.ne.s32.totalorder %s8824_s25, 0 }
 0x34e   : > { %v4201_v20 = vld [vmem:[%s8364_s28 + $0x20] sm:$0xff]  ;;  %v4202_v23 = vld [vmem:[%s8364_s28 + $0x28] sm:$0xff] }
 0x34f   : > { %v6805_v15 = vcombine.high %v4197_v17, %v4201_v20  ;;  %v6804_v24 = vcombine.low %v4197_v17, %v4201_v20  ;;  %v4205_v27 = vld [vmem:[%s8364_s28 + $0x40] sm:$0xff]  ;;  %v6807_v19 = vcombine.high %v4198_v22, %v4202_v23  ;;  %v6806_v28 = vcombine.low %v4198_v22, %v4202_v23  ;;  %v4206_v32 = vld [vmem:[%s8364_s28 + $0x48] sm:$0xff] }
 0x350   : > { %v4209_v18 = vld [vmem:[%s8364_s28 + $0x60] sm:$0xff]  ;;  %v4210_v21 = vld [vmem:[%s8364_s28 + $0x68] sm:$0xff] }
 0x351   : > { %v6813_v29 = vcombine.high %v4205_v27, %v4209_v18  ;;  %v4213_v14 = vld [vmem:[%s8364_s28 + $0x80] sm:$0xff]  ;;  %5733 = vmatprep.subr.bf16.mxu0 %v6805_v15  ;;  %v6815_v33 = vcombine.high %v4206_v32, %v4210_v21  ;;  %v4214_v35 = vld [vmem:[%s8364_s28 + $0x88] sm:$0xff]  ;;  %5819 = vmatprep.subr.bf16.mxu1 %v6807_v19  ;;  %v6812_v37 = vcombine.low %v4205_v27, %v4209_v18 }
 0x352   : > { %v4217_v34 = vld [vmem:[%s8364_s28 + $0xa0] sm:$0xff]  ;;  %v4218_v36 = vld [vmem:[%s8364_s28 + $0xa8] sm:$0xff]  ;;  %5734 = vmatpush1.bf16.msra.mxu0 %v6804_v24  ;;  %5820 = vmatpush1.bf16.msra.mxu1 %v6806_v28  ;;  %v6814_v30 = vcombine.low %v4206_v32, %v4210_v21 }
 0x353   : > { %5735 = vmatprep.subr.bf16.mxu0 %v6813_v29  ;;  %v6821_v31 = vcombine.high %v4213_v14, %v4217_v34  ;;  %5821 = vmatprep.subr.bf16.mxu1 %v6815_v33  ;;  %v6823_v38 = vcombine.high %v4214_v35, %v4218_v36  ;;  %v4221_v39 = vld [vmem:[%s8364_s28 + $0xc0] sm:$0xff]  ;;  %v4222_v41 = vld [vmem:[%s8364_s28 + $0xc8] sm:$0xff]  ;;  %v6820_v43 = vcombine.low %v4213_v14, %v4217_v34 }
 0x354   : > { %v4225_v40 = vld [vmem:[%s8364_s28 + $0xe0] sm:$0xff]  ;;  %v4226_v42 = vld [vmem:[%s8364_s28 + $0xe8] sm:$0xff]  ;;  %v6822_v44 = vcombine.low %v4214_v35, %v4218_v36 }
 0x355   : > { %v6829_v45 = vcombine.high %v4221_v39, %v4225_v40  ;;  %v6831_v46 = vcombine.high %v4222_v41, %v4226_v42  ;;  %v4229_v47 = vld [vmem:[%s8364_s28 + $0x100] sm:$0xff]  ;;  %v4230_v25 = vld [vmem:[%s8364_s28 + $0x108] sm:$0xff]  ;;  %v6828_v49 = vcombine.low %v4221_v39, %v4225_v40  ;;  %v6830_v50 = vcombine.low %v4222_v41, %v4226_v42 }
 0x356   : > { %5736 = vmatpush1.bf16.msra.mxu0 %v6812_v37  ;;  %5822 = vmatpush1.bf16.msra.mxu1 %v6814_v30  ;;  %v4233_v48 = vld [vmem:[%s8364_s28 + $0x120] sm:$0xff]  ;;  %v4234_v26 = vld [vmem:[%s8364_s28 + $0x128] sm:$0xff] }
 0x357   : > { %5737 = vmatprep.subr.bf16.mxu0 %v6821_v31  ;;  %5823 = vmatprep.subr.bf16.mxu1 %v6823_v38  ;;  %v6837_v51 = vcombine.high %v4229_v47, %v4233_v48  ;;  %v6839_v52 = vcombine.high %v4230_v25, %v4234_v26  ;;  %v4237_v53 = vld [vmem:[%s8364_s28 + $0x140] sm:$0xff]  ;;  %v4238_v55 = vld [vmem:[%s8364_s28 + $0x148] sm:$0xff]  ;;  %v6836_v57 = vcombine.low %v4229_v47, %v4233_v48 }
 0x358   : > { %v4241_v54 = vld [vmem:[%s8364_s28 + $0x160] sm:$0xff]  ;;  %v4242_v56 = vld [vmem:[%s8364_s28 + $0x168] sm:$0xff]  ;;  %v6838_v58 = vcombine.low %v4230_v25, %v4234_v26 }
 0x359   : > { %v6845_v59 = vcombine.high %v4237_v53, %v4241_v54  ;;  %v6847_v60 = vcombine.high %v4238_v55, %v4242_v56  ;;  %v4245_v61 = vld [vmem:[%s8364_s28 + $0x180] sm:$0xff]  ;;  %v4246_v63 = vld [vmem:[%s8364_s28 + $0x188] sm:$0xff]  ;;  %v6844_v1 = vcombine.low %v4237_v53, %v4241_v54  ;;  %v6846_v2 = vcombine.low %v4238_v55, %v4242_v56 }
 0x35a   : > { %5738 = vmatpush1.bf16.msra.mxu0 %v6820_v43  ;;  %5824 = vmatpush1.bf16.msra.mxu1 %v6822_v44  ;;  %v4249_v62 = vld [vmem:[%s8364_s28 + $0x1a0] sm:$0xff]  ;;  %v4250_v0 = vld [vmem:[%s8364_s28 + $0x1a8] sm:$0xff] }
 0x35b   : > { %5739 = vmatprep.subr.bf16.mxu0 %v6829_v45  ;;  %5825 = vmatprep.subr.bf16.mxu1 %v6831_v46  ;;  %v6853_v3 = vcombine.high %v4245_v61, %v4249_v62  ;;  %v8507_v4 = vld [vmem:[#allocation2 + $0x8] sm:$0xff]  ;;  %v6855_v5 = vcombine.high %v4246_v63, %v4250_v0  ;;  %v6852_v10 = vcombine.low %v4245_v61, %v4249_v62 }
 0x35c   : > { %v4253_v6 = vld [vmem:[%s8364_s28 + $0x1c0] sm:$0xff]  ;;  %5765 = vmatprep.mubr.bf16.mxu0 %v8507_v4  ;;  %v4254_v8 = vld [vmem:[%s8364_s28 + $0x1c8] sm:$0xff]  ;;  %5851 = vmatprep.mubr.bf16.mxu1 %v8507_v4  ;;  %v6854_v11 = vcombine.low %v4246_v63, %v4250_v0 }
 0x35d   : > { %v4257_v7 = vld [vmem:[%s8364_s28 + $0x1e0] sm:$0xff]  ;;  %v4258_v9 = vld [vmem:[%s8364_s28 + $0x1e8] sm:$0xff] }
 0x35e   : > { %5740 = vmatpush1.bf16.msra.mxu0 %v6828_v49  ;;  %5826 = vmatpush1.bf16.msra.mxu1 %v6830_v50  ;;  %v6861_v12 = vcombine.high %v4253_v6, %v4257_v7  ;;  %v6863_v13 = vcombine.high %v4254_v8, %v4258_v9  ;;  %v4261_v16 = vld [vmem:[%s8364_s28 + $0x200] sm:$0xff]  ;;  %v4262_v20 = vld [vmem:[%s8364_s28 + $0x208] sm:$0xff]  ;;  %v6860_v15 = vcombine.low %v4253_v6, %v4257_v7 }
 0x35f   : > { %5741 = vmatprep.subr.bf16.mxu0 %v6837_v51  ;;  %5827 = vmatprep.subr.bf16.mxu1 %v6839_v52  ;;  %v4265_v17 = vld [vmem:[%s8364_s28 + $0x220] sm:$0xff]  ;;  %v4266_v22 = vld [vmem:[%s8364_s28 + $0x228] sm:$0xff]  ;;  %v6862_v23 = vcombine.low %v4254_v8, %v4258_v9 }
 0x360   : > { %v6869_v24 = vcombine.high %v4261_v16, %v4265_v17  ;;  %v6871_v27 = vcombine.high %v4262_v20, %v4266_v22  ;;  %v4269_v18 = vld [vmem:[%s8364_s28 + $0x240] sm:$0xff]  ;;  %v4270_v28 = vld [vmem:[%s8364_s28 + $0x248] sm:$0xff]  ;;  %v6868_v32 = vcombine.low %v4261_v16, %v4265_v17  ;;  %v6870_v21 = vcombine.low %v4262_v20, %v4266_v22 }
 0x361   : > { %v4273_v19 = vld [vmem:[%s8364_s28 + $0x260] sm:$0xff]  ;;  %v4274_v29 = vld [vmem:[%s8364_s28 + $0x268] sm:$0xff] }
 0x362   : > { %5742 = vmatpush1.bf16.msra.mxu0 %v6836_v57  ;;  %5828 = vmatpush1.bf16.msra.mxu1 %v6838_v58  ;;  %v6877_v14 = vcombine.high %v4269_v18, %v4273_v19  ;;  %v6879_v33 = vcombine.high %v4270_v28, %v4274_v29  ;;  %v4277_v34 = vld [vmem:[%s8364_s28 + $0x280] sm:$0xff]  ;;  %v4278_v36 = vld [vmem:[%s8364_s28 + $0x288] sm:$0xff]  ;;  %v6876_v30 = vcombine.low %v4269_v18, %v4273_v19 }
 0x363   : > { %5743 = vmatprep.subr.bf16.mxu0 %v6845_v59  ;;  %5829 = vmatprep.subr.bf16.mxu1 %v6847_v60  ;;  %v4281_v35 = vld [vmem:[%s8364_s28 + $0x2a0] sm:$0xff]  ;;  %v4282_v37 = vld [vmem:[%s8364_s28 + $0x2a8] sm:$0xff]  ;;  %v6878_v31 = vcombine.low %v4270_v28, %v4274_v29 }
 0x364   : > { %v6885_v38 = vcombine.high %v4277_v34, %v4281_v35  ;;  %v6887_v39 = vcombine.high %v4278_v36, %v4282_v37  ;;  %v4285_v40 = vld [vmem:[%s8364_s28 + $0x2c0] sm:$0xff]  ;;  %v4286_v42 = vld [vmem:[%s8364_s28 + $0x2c8] sm:$0xff]  ;;  %v6884_v44 = vcombine.low %v4277_v34, %v4281_v35  ;;  %v6886_v45 = vcombine.low %v4278_v36, %v4282_v37 }
 0x365   : > { %v4289_v41 = vld [vmem:[%s8364_s28 + $0x2e0] sm:$0xff]  ;;  %v4290_v43 = vld [vmem:[%s8364_s28 + $0x2e8] sm:$0xff] }
 0x366   : > { %5744 = vmatpush1.bf16.msra.mxu0 %v6844_v1  ;;  %5830 = vmatpush1.bf16.msra.mxu1 %v6846_v2  ;;  %v6893_v46 = vcombine.high %v4285_v40, %v4289_v41  ;;  %v6895_v47 = vcombine.high %v4286_v42, %v4290_v43  ;;  %v4293_v48 = vld [vmem:[%s8364_s28 + $0x300] sm:$0xff]  ;;  %v4294_v26 = vld [vmem:[%s8364_s28 + $0x308] sm:$0xff]  ;;  %v6892_v50 = vcombine.low %v4285_v40, %v4289_v41 }
 0x367   : > { %5745 = vmatprep.subr.bf16.mxu0 %v6853_v3  ;;  %5831 = vmatprep.subr.bf16.mxu1 %v6855_v5  ;;  %v4297_v25 = vld [vmem:[%s8364_s28 + $0x320] sm:$0xff]  ;;  %v4298_v49 = vld [vmem:[%s8364_s28 + $0x328] sm:$0xff]  ;;  %v6894_v51 = vcombine.low %v4286_v42, %v4290_v43 }
 0x368   : > { %v6901_v52 = vcombine.high %v4293_v48, %v4297_v25  ;;  %v6903_v53 = vcombine.high %v4294_v26, %v4298_v49  ;;  %v4301_v54 = vld [vmem:[%s8364_s28 + $0x340] sm:$0xff]  ;;  %v4302_v56 = vld [vmem:[%s8364_s28 + $0x348] sm:$0xff]  ;;  %v6900_v58 = vcombine.low %v4293_v48, %v4297_v25  ;;  %v6902_v59 = vcombine.low %v4294_v26, %v4298_v49 }
 0x369   : > { %v4305_v55 = vld [vmem:[%s8364_s28 + $0x360] sm:$0xff]  ;;  %v4306_v57 = vld [vmem:[%s8364_s28 + $0x368] sm:$0xff] }
 0x36a   : > { %5746 = vmatpush1.bf16.msra.mxu0 %v6852_v10  ;;  %5832 = vmatpush1.bf16.msra.mxu1 %v6854_v11  ;;  %v6909_v60 = vcombine.high %v4301_v54, %v4305_v55  ;;  %v6911_v61 = vcombine.high %v4302_v56, %v4306_v57  ;;  %v4309_v62 = vld [vmem:[%s8364_s28 + $0x380] sm:$0xff]  ;;  %v4310_v0 = vld [vmem:[%s8364_s28 + $0x388] sm:$0xff]  ;;  %v6908_v2 = vcombine.low %v4301_v54, %v4305_v55 }
 0x36b   : > { %5747 = vmatprep.subr.bf16.mxu0 %v6861_v12  ;;  %5833 = vmatprep.subr.bf16.mxu1 %v6863_v13  ;;  %v4313_v63 = vld [vmem:[%s8364_s28 + $0x3a0] sm:$0xff]  ;;  %v4314_v1 = vld [vmem:[%s8364_s28 + $0x3a8] sm:$0xff]  ;;  %v6910_v3 = vcombine.low %v4302_v56, %v4306_v57 }
 0x36c   : > { %v6917_v5 = vcombine.high %v4309_v62, %v4313_v63  ;;  %v6919_v6 = vcombine.high %v4310_v0, %v4314_v1  ;;  %v4317_v7 = vld [vmem:[%s8364_s28 + $0x3c0] sm:$0xff]  ;;  %v4318_v9 = vld [vmem:[%s8364_s28 + $0x3c8] sm:$0xff]  ;;  %v6916_v11 = vcombine.low %v4309_v62, %v4313_v63  ;;  %v6918_v12 = vcombine.low %v4310_v0, %v4314_v1 }
 0x36d   : > { %v4321_v8 = vld [vmem:[%s8364_s28 + $0x3e0] sm:$0xff]  ;;  %v4322_v10 = vld [vmem:[%s8364_s28 + $0x3e8] sm:$0xff] }
 0x36e   : > { %5748 = vmatpush1.bf16.msra.mxu0 %v6860_v15  ;;  %5834 = vmatpush1.bf16.msra.mxu1 %v6862_v23  ;;  %v6925_v13 = vcombine.high %v4317_v7, %v4321_v8  ;;  %v6927_v16 = vcombine.high %v4318_v9, %v4322_v10  ;;  %v4325_v17 = vld [vmem:[%s8364_s28 + $0x400] sm:$0xff]  ;;  %v4326_v22 = vld [vmem:[%s8364_s28 + $0x408] sm:$0xff]  ;;  %v6924_v23 = vcombine.low %v4317_v7, %v4321_v8 }
 0x36f   : > { %5749 = vmatprep.subr.bf16.mxu0 %v6869_v24  ;;  %5835 = vmatprep.subr.bf16.mxu1 %v6871_v27  ;;  %v4329_v20 = vld [vmem:[%s8364_s28 + $0x420] sm:$0xff]  ;;  %v4330_v15 = vld [vmem:[%s8364_s28 + $0x428] sm:$0xff]  ;;  %v6926_v24 = vcombine.low %v4318_v9, %v4322_v10 }
 0x370   : > { %v6933_v27 = vcombine.high %v4325_v17, %v4329_v20  ;;  %v6935_v18 = vcombine.high %v4326_v22, %v4330_v15  ;;  %v4333_v19 = vld [vmem:[%s8364_s28 + $0x440] sm:$0xff]  ;;  %v4334_v29 = vld [vmem:[%s8364_s28 + $0x448] sm:$0xff] }
 0x371   : > { %v4337_v28 = vld [vmem:[%s8364_s28 + $0x460] sm:$0xff] }
 0x372   : > { %5750 = vmatpush1.bf16.msra.mxu0 %v6868_v32  ;;  %5836 = vmatpush1.bf16.msra.mxu1 %v6870_v21  ;;  %v4338_v32 = vld [vmem:[%s8364_s28 + $0x468] sm:$0xff]  ;;  %v6932_v21 = vcombine.low %v4325_v17, %v4329_v20  ;;  %v6941_v34 = vcombine.high %v4333_v19, %v4337_v28  ;;  %v4341_v36 = vld [vmem:[%s8364_s28 + $0x480] sm:$0xff] }
 0x373   : > { %5751 = vmatprep.subr.bf16.mxu0 %v6877_v14  ;;  %5837 = vmatprep.subr.bf16.mxu1 %v6879_v33  ;;  %v8555_v14 = vld [vmem:[#allocation2] sm:$0xff]  ;;  %v6934_v33 = vcombine.low %v4326_v22, %v4330_v15  ;;  %v6943_v35 = vcombine.high %v4334_v29, %v4338_v32  ;;  %v6942_v40 = vcombine.low %v4334_v29, %v4338_v32 }
 0x374   : > { %v4345_v37 = vld [vmem:[%s8364_s28 + $0x4a0] sm:$0xff] }
 0x375   : > { %v6949_v41 = vcombine.high %v4341_v36, %v4345_v37  ;;  %v4349_v43 = vld [vmem:[%s8364_s28 + $0x4c0] sm:$0xff] }
 0x376   : > { %5752 = vmatpush1.bf16.msra.mxu0 %v6876_v30  ;;  %5838 = vmatpush1.bf16.msra.mxu1 %v6878_v31  ;;  %v4342_v30 = vld [vmem:[%s8364_s28 + $0x488] sm:$0xff]  ;;  %v4357_v49 = vld [vmem:[%s8364_s28 + $0x500] sm:$0xff] }
 0x377   : > { %5753 = vmatprep.subr.bf16.mxu0 %v6885_v38  ;;  %5839 = vmatprep.subr.bf16.mxu1 %v6887_v39  ;;  %v4346_v31 = vld [vmem:[%s8364_s28 + $0x4a8] sm:$0xff]  ;;  %v8562_v38 = vld [vmem:[#allocation2 + $0x18] sm:$0xff]  ;;  %v6940_v39 = vcombine.low %v4333_v19, %v4337_v28  ;;  %v4365_v57 = vld [vmem:[%s8364_s28 + $0x540] sm:$0xff] }
 0x378   : > { %v6951_v42 = vcombine.high %v4342_v30, %v4346_v31  ;;  %v6950_v48 = vcombine.low %v4342_v30, %v4346_v31  ;;  %v4373_v1 = vld [vmem:[%s8364_s28 + $0x580] sm:$0xff] }
 0x379   : > { %v4381_v10 = vld [vmem:[%s8364_s28 + $0x5c0] sm:$0xff] }
 0x37a   : > { %5754 = vmatpush1.bf16.msra.mxu0 %v6884_v44  ;;  %5840 = vmatpush1.bf16.msra.mxu1 %v6886_v45  ;;  %v4353_v44 = vld [vmem:[%s8364_s28 + $0x4e0] sm:$0xff]  ;;  %v4350_v45 = vld [vmem:[%s8364_s28 + $0x4c8] sm:$0xff] }
 0x37b   : > { %5755 = vmatprep.subr.bf16.mxu0 %v6893_v46  ;;  %5841 = vmatprep.subr.bf16.mxu1 %v6895_v47  ;;  %v4354_v46 = vld [vmem:[%s8364_s28 + $0x4e8] sm:$0xff]  ;;  %v6948_v47 = vcombine.low %v4341_v36, %v4345_v37  ;;  %v6957_v25 = vcombine.high %v4349_v43, %v4353_v44  ;;  %v4389_v15 = vld [vmem:[%s8364_s28 + $0x600] sm:$0xff] }
 0x37c   : > { %v6959_v26 = vcombine.high %v4350_v45, %v4354_v46  ;;  %v6958_v54 = vcombine.low %v4350_v45, %v4354_v46  ;;  %v4397_v32 = vld [vmem:[%s8364_s28 + $0x640] sm:$0xff] }
 0x37d   : > { %v4405_v31 = vld [vmem:[%s8364_s28 + $0x680] sm:$0xff] }
 0x37e   : > { %5756 = vmatpush1.bf16.msra.mxu0 %v6892_v50  ;;  %5842 = vmatpush1.bf16.msra.mxu1 %v6894_v51  ;;  %v4361_v50 = vld [vmem:[%s8364_s28 + $0x520] sm:$0xff]  ;;  %v4358_v51 = vld [vmem:[%s8364_s28 + $0x508] sm:$0xff] }
 0x37f   : > { %5757 = vmatprep.subr.bf16.mxu0 %v6901_v52  ;;  %5843 = vmatprep.subr.bf16.mxu1 %v6903_v53  ;;  %v4362_v52 = vld [vmem:[%s8364_s28 + $0x528] sm:$0xff]  ;;  %v6956_v53 = vcombine.low %v4349_v43, %v4353_v44  ;;  %v6965_v55 = vcombine.high %v4357_v49, %v4361_v50  ;;  %v4413_v46 = vld [vmem:[%s8364_s28 + $0x6c0] sm:$0xff] }
 0x380   : > { %v6967_v56 = vcombine.high %v4358_v51, %v4362_v52  ;;  %v6966_v62 = vcombine.low %v4358_v51, %v4362_v52  ;;  %v4421_v52 = vld [vmem:[%s8364_s28 + $0x700] sm:$0xff] }
 0x382   : > { %5758 = vmatpush1.bf16.msra.mxu0 %v6900_v58  ;;  %5844 = vmatpush1.bf16.msra.mxu1 %v6902_v59  ;;  %v4369_v58 = vld [vmem:[%s8364_s28 + $0x560] sm:$0xff]  ;;  %v4366_v59 = vld [vmem:[%s8364_s28 + $0x548] sm:$0xff] }
 0x383   : > { %5759 = vmatprep.subr.bf16.mxu0 %v6909_v60  ;;  %5845 = vmatprep.subr.bf16.mxu1 %v6911_v61  ;;  %v4370_v60 = vld [vmem:[%s8364_s28 + $0x568] sm:$0xff]  ;;  %v6964_v61 = vcombine.low %v4357_v49, %v4361_v50  ;;  %v6973_v63 = vcombine.high %v4365_v57, %v4369_v58 }
 0x384   : > { %v6975_v0 = vcombine.high %v4366_v59, %v4370_v60  ;;  %v6974_v7 = vcombine.low %v4366_v59, %v4370_v60  ;;  %v4429_v60 = vld [vmem:[%s8364_s28 + $0x740] sm:$0xff] }
 0x386   : > { %5760 = vmatpush1.bf16.msra.mxu0 %v6908_v2  ;;  %5846 = vmatpush1.bf16.msra.mxu1 %v6910_v3  ;;  %v4377_v2 = vld [vmem:[%s8364_s28 + $0x5a0] sm:$0xff]  ;;  %v4374_v3 = vld [vmem:[%s8364_s28 + $0x588] sm:$0xff] }
 0x387   : > { %5761 = vmatprep.subr.bf16.mxu0 %v6917_v5  ;;  %5847 = vmatprep.subr.bf16.mxu1 %v6919_v6  ;;  %v4378_v5 = vld [vmem:[%s8364_s28 + $0x5a8] sm:$0xff]  ;;  %v6972_v6 = vcombine.low %v4365_v57, %v4369_v58  ;;  %v6981_v8 = vcombine.high %v4373_v1, %v4377_v2 }
 0x388   : > { %v6983_v9 = vcombine.high %v4374_v3, %v4378_v5  ;;  %v6982_v17 = vcombine.low %v4374_v3, %v4378_v5  ;;  %v4437_v5 = vld [vmem:[%s8364_s28 + $0x780] sm:$0xff] }
 0x38a   : > { %5762 = vmatpush1.bf16.msra.mxu0 %v6916_v11  ;;  %5848 = vmatpush1.bf16.msra.mxu1 %v6918_v12  ;;  %v4385_v11 = vld [vmem:[%s8364_s28 + $0x5e0] sm:$0xff]  ;;  %v4382_v12 = vld [vmem:[%s8364_s28 + $0x5c8] sm:$0xff] }
 0x38b   : > { %5763 = vmatprep.subr.bf16.mxu0 %v6925_v13  ;;  %5849 = vmatprep.subr.bf16.mxu1 %v6927_v16  ;;  %v4386_v13 = vld [vmem:[%s8364_s28 + $0x5e8] sm:$0xff]  ;;  %v6980_v16 = vcombine.low %v4373_v1, %v4377_v2  ;;  %v6989_v20 = vcombine.high %v4381_v10, %v4385_v11 }
 0x38c   : > { %v6991_v22 = vcombine.high %v4382_v12, %v4386_v13  ;;  %v6990_v19 = vcombine.low %v4382_v12, %v4386_v13  ;;  %v4445_v13 = vld [vmem:[%s8364_s28 + $0x7c0] sm:$0xff] }
 0x38e   : > { %5764 = vmatpush1.bf16.msra.mxu0 %v6924_v23  ;;  %5850 = vmatpush1.bf16.msra.mxu1 %v6926_v24  ;;  %v4393_v23 = vld [vmem:[%s8364_s28 + $0x620] sm:$0xff]  ;;  %v4390_v24 = vld [vmem:[%s8364_s28 + $0x608] sm:$0xff] }
 0x38f   : > { %5776 = vmatprep.subr.bf16.mxu0 %v6933_v27  ;;  %5862 = vmatprep.subr.bf16.mxu1 %v6935_v18  ;;  %v4394_v27 = vld [vmem:[%s8364_s28 + $0x628] sm:$0xff]  ;;  %v6988_v18 = vcombine.low %v4381_v10, %v4385_v11  ;;  %v6997_v28 = vcombine.high %v4389_v15, %v4393_v23 }
 0x390   : > { %v6999_v29 = vcombine.high %v4390_v24, %v4394_v27  ;;  %v6998_v36 = vcombine.low %v4390_v24, %v4394_v27  ;;  %v4199_v27 = vld [vmem:[%s8364_s28 + $0x10] sm:$0xff] }
 0x391   : > { %5766 = vmatmul.mubr.bf16.vlgmr.msra.gmra.mrb[0].mxu0 %v8555_v14  ;;  %5852 = vmatmul.mubr.bf16.vlgmr.msra.gmra.mrb[0].mxu1 %v8555_v14 }
 0x392   : > { %5777 = vmatpush1.bf16.msra.mxu0 %v6932_v21  ;;  %5863 = vmatpush1.bf16.msra.mxu1 %v6934_v33  ;;  %v4401_v21 = vld [vmem:[%s8364_s28 + $0x660] sm:$0xff]  ;;  %v4398_v33 = vld [vmem:[%s8364_s28 + $0x648] sm:$0xff] }
 0x393   : > { %5778 = vmatprep.subr.bf16.mxu0 %v6941_v34  ;;  %5864 = vmatprep.subr.bf16.mxu1 %v6943_v35  ;;  %v4402_v34 = vld [vmem:[%s8364_s28 + $0x668] sm:$0xff]  ;;  %v6996_v35 = vcombine.low %v4389_v15, %v4393_v23  ;;  %v7005_v37 = vcombine.high %v4397_v32, %v4401_v21 }
 0x394   : > { %5808 = vmatprep.mubr.bf16.mxu0 %v8562_v38  ;;  %5894 = vmatprep.mubr.bf16.mxu1 %v8562_v38  ;;  %v7007_v30 = vcombine.high %v4398_v33, %v4402_v34  ;;  %v7006_v43 = vcombine.low %v4398_v33, %v4402_v34  ;;  %v4207_v34 = vld [vmem:[%s8364_s28 + $0x50] sm:$0xff] }
 0x396   : > { %5779 = vmatpush1.bf16.msra.mxu0 %v6940_v39  ;;  %5865 = vmatpush1.bf16.msra.mxu1 %v6942_v40  ;;  %v4409_v39 = vld [vmem:[%s8364_s28 + $0x6a0] sm:$0xff]  ;;  %v4406_v40 = vld [vmem:[%s8364_s28 + $0x688] sm:$0xff] }
 0x397   : > { %5780 = vmatprep.subr.bf16.mxu0 %v6949_v41  ;;  %5866 = vmatprep.subr.bf16.mxu1 %v6951_v42  ;;  %v4410_v41 = vld [vmem:[%s8364_s28 + $0x6a8] sm:$0xff]  ;;  %v7004_v42 = vcombine.low %v4397_v32, %v4401_v21  ;;  %v7013_v44 = vcombine.high %v4405_v31, %v4409_v39 }
 0x398   : > { %v7015_v45 = vcombine.high %v4406_v40, %v4410_v41  ;;  %v7014_v49 = vcombine.low %v4406_v40, %v4410_v41 }
 0x39a   : > { %5781 = vmatpush1.bf16.msra.mxu0 %v6948_v47  ;;  %5867 = vmatpush1.bf16.msra.mxu1 %v6950_v48  ;;  %v4417_v47 = vld [vmem:[%s8364_s28 + $0x6e0] sm:$0xff]  ;;  %v4414_v48 = vld [vmem:[%s8364_s28 + $0x6c8] sm:$0xff] }
 0x39b   : > { %5782 = vmatprep.subr.bf16.mxu0 %v6957_v25  ;;  %5868 = vmatprep.subr.bf16.mxu1 %v6959_v26  ;;  %v4418_v25 = vld [vmem:[%s8364_s28 + $0x6e8] sm:$0xff]  ;;  %v7012_v26 = vcombine.low %v4405_v31, %v4409_v39  ;;  %v7021_v50 = vcombine.high %v4413_v46, %v4417_v47 }
 0x39c   : > { %v7023_v51 = vcombine.high %v4414_v48, %v4418_v25  ;;  %v7022_v57 = vcombine.low %v4414_v48, %v4418_v25 }
 0x39e   : > { %5783 = vmatpush1.bf16.msra.mxu0 %v6956_v53  ;;  %5869 = vmatpush1.bf16.msra.mxu1 %v6958_v54  ;;  %v4425_v53 = vld [vmem:[%s8364_s28 + $0x720] sm:$0xff]  ;;  %v4422_v54 = vld [vmem:[%s8364_s28 + $0x708] sm:$0xff] }
 0x39f   : > { %5784 = vmatprep.subr.bf16.mxu0 %v6965_v55  ;;  %5870 = vmatprep.subr.bf16.mxu1 %v6967_v56  ;;  %v4426_v55 = vld [vmem:[%s8364_s28 + $0x728] sm:$0xff]  ;;  %v7020_v56 = vcombine.low %v4413_v46, %v4417_v47  ;;  %v7029_v58 = vcombine.high %v4421_v52, %v4425_v53 }
 0x3a0   : > { %v7031_v59 = vcombine.high %v4422_v54, %v4426_v55  ;;  %v7030_v1 = vcombine.low %v4422_v54, %v4426_v55 }
 0x3a2   : > { %5785 = vmatpush1.bf16.msra.mxu0 %v6964_v61  ;;  %5871 = vmatpush1.bf16.msra.mxu1 %v6966_v62  ;;  %v4433_v61 = vld [vmem:[%s8364_s28 + $0x760] sm:$0xff]  ;;  %v4430_v62 = vld [vmem:[%s8364_s28 + $0x748] sm:$0xff] }
 0x3a3   : > { %5786 = vmatprep.subr.bf16.mxu0 %v6973_v63  ;;  %5872 = vmatprep.subr.bf16.mxu1 %v6975_v0  ;;  %v4434_v63 = vld [vmem:[%s8364_s28 + $0x768] sm:$0xff]  ;;  %v7028_v0 = vcombine.low %v4421_v52, %v4425_v53  ;;  %v7037_v2 = vcombine.high %v4429_v60, %v4433_v61 }
 0x3a4   : > { %v7039_v3 = vcombine.high %v4430_v62, %v4434_v63  ;;  %v7038_v10 = vcombine.low %v4430_v62, %v4434_v63  ;;  %v4239_v63 = vld [vmem:[%s8364_s28 + $0x150] sm:$0xff] }
 0x3a6   : > { %5787 = vmatpush1.bf16.msra.mxu0 %v6972_v6  ;;  %5873 = vmatpush1.bf16.msra.mxu1 %v6974_v7  ;;  %v4441_v6 = vld [vmem:[%s8364_s28 + $0x7a0] sm:$0xff]  ;;  %v4438_v7 = vld [vmem:[%s8364_s28 + $0x788] sm:$0xff] }
 0x3a7   : > { %5788 = vmatprep.subr.bf16.mxu0 %v6981_v8  ;;  %5874 = vmatprep.subr.bf16.mxu1 %v6983_v9  ;;  %v4442_v8 = vld [vmem:[%s8364_s28 + $0x7a8] sm:$0xff]  ;;  %v7036_v9 = vcombine.low %v4429_v60, %v4433_v61  ;;  %v7045_v11 = vcombine.high %v4437_v5, %v4441_v6 }
 0x3a8   : > { %v7047_v12 = vcombine.high %v4438_v7, %v4442_v8  ;;  %v7046_v15 = vcombine.low %v4438_v7, %v4442_v8  ;;  %v4247_v8 = vld [vmem:[%s8364_s28 + $0x190] sm:$0xff] }
 0x3aa   : > { %5789 = vmatpush1.bf16.msra.mxu0 %v6980_v16  ;;  %5875 = vmatpush1.bf16.msra.mxu1 %v6982_v17  ;;  %v4449_v16 = vld [vmem:[%s8364_s28 + $0x7e0] sm:$0xff]  ;;  %v4446_v17 = vld [vmem:[%s8364_s28 + $0x7c8] sm:$0xff] }
 0x3ab   : > { %5790 = vmatprep.subr.bf16.mxu0 %v6989_v20  ;;  %5876 = vmatprep.subr.bf16.mxu1 %v6991_v22  ;;  %v4450_v20 = vld [vmem:[%s8364_s28 + $0x7e8] sm:$0xff]  ;;  %v7044_v22 = vcombine.low %v4437_v5, %v4441_v6  ;;  %v7053_v23 = vcombine.high %v4445_v13, %v4449_v16 }
 0x3ac   : > { %v7055_v24 = vcombine.high %v4446_v17, %v4450_v20  ;;  %v7054_v32 = vcombine.low %v4446_v17, %v4450_v20  ;;  %v4255_v20 = vld [vmem:[%s8364_s28 + $0x1d0] sm:$0xff] }
 0x3ae   : > { %5791 = vmatpush1.bf16.msra.mxu0 %v6988_v18  ;;  %5877 = vmatpush1.bf16.msra.mxu1 %v6990_v19  ;;  %v4203_v18 = vld [vmem:[%s8364_s28 + $0x30] sm:$0xff]  ;;  %v4200_v19 = vld [vmem:[%s8364_s28 + $0x18] sm:$0xff] }
 0x3af   : > { %5792 = vmatprep.subr.bf16.mxu0 %v6997_v28  ;;  %5878 = vmatprep.subr.bf16.mxu1 %v6999_v29  ;;  %v4204_v28 = vld [vmem:[%s8364_s28 + $0x38] sm:$0xff]  ;;  %v7052_v29 = vcombine.low %v4445_v13, %v4449_v16  ;;  %v6809_v21 = vcombine.high %v4199_v27, %v4203_v18  ;;  %v6808_v31 = vcombine.low %v4199_v27, %v4203_v18 }
 0x3b0   : > { %v6811_v33 = vcombine.high %v4200_v19, %v4204_v28  ;;  %v6810_v39 = vcombine.low %v4200_v19, %v4204_v28  ;;  %v4263_v28 = vld [vmem:[%s8364_s28 + $0x210] sm:$0xff] }
 0x3b2   : > { %5793 = vmatpush1.bf16.msra.mxu0 %v6996_v35  ;;  %5879 = vmatpush1.bf16.msra.mxu1 %v6998_v36  ;;  %v4211_v35 = vld [vmem:[%s8364_s28 + $0x70] sm:$0xff]  ;;  %v4208_v36 = vld [vmem:[%s8364_s28 + $0x58] sm:$0xff] }
 0x3b3   : > { %5794 = vmatprep.subr.bf16.mxu0 %v7005_v37  ;;  %5880 = vmatprep.subr.bf16.mxu1 %v7007_v30  ;;  %v4212_v37 = vld [vmem:[%s8364_s28 + $0x78] sm:$0xff]  ;;  %v8627_v30 = vld [vmem:[#allocation2 + $0x10] sm:$0xff]  ;;  %v6817_v40 = vcombine.high %v4207_v34, %v4211_v35  ;;  %v6816_v46 = vcombine.low %v4207_v34, %v4211_v35 }
 0x3b4   : > { %v6819_v41 = vcombine.high %v4208_v36, %v4212_v37  ;;  %v6818_v47 = vcombine.low %v4208_v36, %v4212_v37  ;;  %v4271_v37 = vld [vmem:[%s8364_s28 + $0x250] sm:$0xff] }
 0x3b6   : > { %5795 = vmatpush1.bf16.msra.mxu0 %v7004_v42  ;;  %5881 = vmatpush1.bf16.msra.mxu1 %v7006_v43  ;;  %v4215_v42 = vld [vmem:[%s8364_s28 + $0x90] sm:$0xff] }
 0x3b7   : > { %5796 = vmatprep.subr.bf16.mxu0 %v7013_v44  ;;  %5882 = vmatprep.subr.bf16.mxu1 %v7015_v45  ;;  %v4219_v43 = vld [vmem:[%s8364_s28 + $0xb0] sm:$0xff]  ;;  %v4216_v44 = vld [vmem:[%s8364_s28 + $0x98] sm:$0xff] }
 0x3b8   : > { %v4220_v45 = vld [vmem:[%s8364_s28 + $0xb8] sm:$0xff]  ;;  %v6825_v48 = vcombine.high %v4215_v42, %v4219_v43  ;;  %v6824_v52 = vcombine.low %v4215_v42, %v4219_v43 }
 0x3b9   : > { %v6827_v25 = vcombine.high %v4216_v44, %v4220_v45  ;;  %v6826_v53 = vcombine.low %v4216_v44, %v4220_v45  ;;  %v4279_v45 = vld [vmem:[%s8364_s28 + $0x290] sm:$0xff] }
 0x3ba   : > { %5797 = vmatpush1.bf16.msra.mxu0 %v7012_v26  ;;  %5883 = vmatpush1.bf16.msra.mxu1 %v7014_v49  ;;  %v4223_v26 = vld [vmem:[%s8364_s28 + $0xd0] sm:$0xff] }
 0x3bb   : > { %5798 = vmatprep.subr.bf16.mxu0 %v7021_v50  ;;  %5884 = vmatprep.subr.bf16.mxu1 %v7023_v51  ;;  %v4227_v49 = vld [vmem:[%s8364_s28 + $0xf0] sm:$0xff]  ;;  %v4224_v50 = vld [vmem:[%s8364_s28 + $0xd8] sm:$0xff] }
 0x3bc   : > { %v4228_v51 = vld [vmem:[%s8364_s28 + $0xf8] sm:$0xff]  ;;  %v6833_v54 = vcombine.high %v4223_v26, %v4227_v49  ;;  %v6832_v60 = vcombine.low %v4223_v26, %v4227_v49 }
 0x3bd   : > { %v6835_v55 = vcombine.high %v4224_v50, %v4228_v51 }
 0x3be   : > { %5799 = vmatpush1.bf16.msra.mxu0 %v7020_v56  ;;  %5885 = vmatpush1.bf16.msra.mxu1 %v7022_v57  ;;  %v4231_v56 = vld [vmem:[%s8364_s28 + $0x110] sm:$0xff] }
 0x3bf   : > { %5800 = vmatprep.subr.bf16.mxu0 %v7029_v58  ;;  %5886 = vmatprep.subr.bf16.mxu1 %v7031_v59  ;;  %v4235_v57 = vld [vmem:[%s8364_s28 + $0x130] sm:$0xff]  ;;  %v4232_v58 = vld [vmem:[%s8364_s28 + $0x118] sm:$0xff] }
 0x3c0   : > { %v4236_v59 = vld [vmem:[%s8364_s28 + $0x138] sm:$0xff]  ;;  %v6841_v61 = vcombine.high %v4231_v56, %v4235_v57 }
 0x3c1   : > { %v6843_v62 = vcombine.high %v4232_v58, %v4236_v59  ;;  %v6842_v5 = vcombine.low %v4232_v58, %v4236_v59  ;;  %v4295_v59 = vld [vmem:[%s8364_s28 + $0x310] sm:$0xff] }
 0x3c2   : > { %5801 = vmatpush1.bf16.msra.mxu0 %v7028_v0  ;;  %5887 = vmatpush1.bf16.msra.mxu1 %v7030_v1  ;;  %v4243_v0 = vld [vmem:[%s8364_s28 + $0x170] sm:$0xff]  ;;  %v4240_v1 = vld [vmem:[%s8364_s28 + $0x158] sm:$0xff] }
 0x3c3   : > { %5802 = vmatprep.subr.bf16.mxu0 %v7037_v2  ;;  %5888 = vmatprep.subr.bf16.mxu1 %v7039_v3  ;;  %v4244_v2 = vld [vmem:[%s8364_s28 + $0x178] sm:$0xff]  ;;  %v6840_v3 = vcombine.low %v4231_v56, %v4235_v57  ;;  %v6849_v6 = vcombine.high %v4239_v63, %v4243_v0 }
 0x3c4   : > { %v6851_v7 = vcombine.high %v4240_v1, %v4244_v2  ;;  %v6850_v13 = vcombine.low %v4240_v1, %v4244_v2  ;;  %v4303_v2 = vld [vmem:[%s8364_s28 + $0x350] sm:$0xff] }
 0x3c6   : > { %5803 = vmatpush1.bf16.msra.mxu0 %v7036_v9  ;;  %5889 = vmatpush1.bf16.msra.mxu1 %v7038_v10  ;;  %v4251_v9 = vld [vmem:[%s8364_s28 + $0x1b0] sm:$0xff]  ;;  %v4248_v10 = vld [vmem:[%s8364_s28 + $0x198] sm:$0xff] }
 0x3c7   : > { %5804 = vmatprep.subr.bf16.mxu0 %v7045_v11  ;;  %5890 = vmatprep.subr.bf16.mxu1 %v7047_v12  ;;  %v4252_v11 = vld [vmem:[%s8364_s28 + $0x1b8] sm:$0xff]  ;;  %v6848_v12 = vcombine.low %v4239_v63, %v4243_v0  ;;  %v6857_v16 = vcombine.high %v4247_v8, %v4251_v9 }
 0x3c8   : > { %v6859_v17 = vcombine.high %v4248_v10, %v4252_v11  ;;  %v6858_v27 = vcombine.low %v4248_v10, %v4252_v11  ;;  %v4311_v11 = vld [vmem:[%s8364_s28 + $0x390] sm:$0xff] }
 0x3ca   : > { %5805 = vmatpush1.bf16.msra.mxu0 %v7044_v22  ;;  %5891 = vmatpush1.bf16.msra.mxu1 %v7046_v15  ;;  %v4259_v22 = vld [vmem:[%s8364_s28 + $0x1f0] sm:$0xff]  ;;  %v4256_v15 = vld [vmem:[%s8364_s28 + $0x1d8] sm:$0xff] }
 0x3cb   : > { %5806 = vmatprep.subr.bf16.mxu0 %v7053_v23  ;;  %5892 = vmatprep.subr.bf16.mxu1 %v7055_v24  ;;  %v4260_v23 = vld [vmem:[%s8364_s28 + $0x1f8] sm:$0xff]  ;;  %v6856_v24 = vcombine.low %v4247_v8, %v4251_v9  ;;  %v6865_v18 = vcombine.high %v4255_v20, %v4259_v22 }
 0x3cc   : > { %v6867_v19 = vcombine.high %v4256_v15, %v4260_v23  ;;  %v6866_v34 = vcombine.low %v4256_v15, %v4260_v23  ;;  %v4319_v23 = vld [vmem:[%s8364_s28 + $0x3d0] sm:$0xff] }
 0x3ce   : > { %5807 = vmatpush1.bf16.msra.mxu0 %v7052_v29  ;;  %5893 = vmatpush1.bf16.msra.mxu1 %v7054_v32  ;;  %v4267_v29 = vld [vmem:[%s8364_s28 + $0x230] sm:$0xff]  ;;  %v4264_v32 = vld [vmem:[%s8364_s28 + $0x218] sm:$0xff] }
 0x3cf   : > { %5905 = vmatprep.subr.bf16.mxu0 %v6809_v21  ;;  %5991 = vmatprep.subr.bf16.mxu1 %v6811_v33  ;;  %v4268_v21 = vld [vmem:[%s8364_s28 + $0x238] sm:$0xff]  ;;  %v6864_v33 = vcombine.low %v4255_v20, %v4259_v22  ;;  %v6873_v35 = vcombine.high %v4263_v28, %v4267_v29 }
 0x3d0   : > { %v6875_v36 = vcombine.high %v4264_v32, %v4268_v21  ;;  %v6874_v42 = vcombine.low %v4264_v32, %v4268_v21  ;;  %v4327_v21 = vld [vmem:[%s8364_s28 + $0x410] sm:$0xff] }
 0x3d1   : > { %5809 = vmatmul.mubr.bf16.vlgmr.msra.gmra.mrb[0].mxu0 %v8627_v30  ;;  %5895 = vmatmul.mubr.bf16.vlgmr.msra.gmra.mrb[0].mxu1 %v8627_v30 }
 0x3d2   : > { %5906 = vmatpush1.bf16.msra.mxu0 %v6808_v31  ;;  %5992 = vmatpush1.bf16.msra.mxu1 %v6810_v39  ;;  %v4275_v31 = vld [vmem:[%s8364_s28 + $0x270] sm:$0xff]  ;;  %v4272_v39 = vld [vmem:[%s8364_s28 + $0x258] sm:$0xff] }
 0x3d3   : > { %5907 = vmatprep.subr.bf16.mxu0 %v6817_v40  ;;  %5993 = vmatprep.subr.bf16.mxu1 %v6819_v41  ;;  %v4276_v40 = vld [vmem:[%s8364_s28 + $0x278] sm:$0xff]  ;;  %v6872_v41 = vcombine.low %v4263_v28, %v4267_v29  ;;  %v6881_v43 = vcombine.high %v4271_v37, %v4275_v31 }
 0x3d4   : > { %5937 = vmatprep.mubr.bf16.mxu0 %v8507_v4  ;;  %6023 = vmatprep.mubr.bf16.mxu1 %v8507_v4  ;;  %v6834_v4 = vcombine.low %v4224_v50, %v4228_v51  ;;  %v6883_v44 = vcombine.high %v4272_v39, %v4276_v40  ;;  %v6882_v26 = vcombine.low %v4272_v39, %v4276_v40  ;;  %v4287_v51 = vld [vmem:[%s8364_s28 + $0x2d0] sm:$0xff] }
 0x3d5   : > { %v4335_v40 = vld [vmem:[%s8364_s28 + $0x450] sm:$0xff] }
 0x3d6   : > { %5908 = vmatpush1.bf16.msra.mxu0 %v6816_v46  ;;  %5994 = vmatpush1.bf16.msra.mxu1 %v6818_v47  ;;  %v4283_v46 = vld [vmem:[%s8364_s28 + $0x2b0] sm:$0xff]  ;;  %v4280_v47 = vld [vmem:[%s8364_s28 + $0x298] sm:$0xff] }
 0x3d7   : > { %5909 = vmatprep.subr.bf16.mxu0 %v6825_v48  ;;  %5995 = vmatprep.subr.bf16.mxu1 %v6827_v25  ;;  %v4284_v48 = vld [vmem:[%s8364_s28 + $0x2b8] sm:$0xff]  ;;  %v6880_v25 = vcombine.low %v4271_v37, %v4275_v31  ;;  %v6889_v49 = vcombine.high %v4279_v45, %v4283_v46 }
 0x3d8   : > { %v6891_v50 = vcombine.high %v4280_v47, %v4284_v48  ;;  %v6890_v56 = vcombine.low %v4280_v47, %v4284_v48  ;;  %v4343_v48 = vld [vmem:[%s8364_s28 + $0x490] sm:$0xff] }
 0x3da   : > { %5910 = vmatpush1.bf16.msra.mxu0 %v6824_v52  ;;  %5996 = vmatpush1.bf16.msra.mxu1 %v6826_v53  ;;  %v4291_v52 = vld [vmem:[%s8364_s28 + $0x2f0] sm:$0xff]  ;;  %v4288_v53 = vld [vmem:[%s8364_s28 + $0x2d8] sm:$0xff] }
 0x3db   : > { %5911 = vmatprep.subr.bf16.mxu0 %v6833_v54  ;;  %5997 = vmatprep.subr.bf16.mxu1 %v6835_v55  ;;  %v4292_v54 = vld [vmem:[%s8364_s28 + $0x2f8] sm:$0xff]  ;;  %v6888_v55 = vcombine.low %v4279_v45, %v4283_v46  ;;  %v6897_v57 = vcombine.high %v4287_v51, %v4291_v52 }
 0x3dc   : > { %v6899_v58 = vcombine.high %v4288_v53, %v4292_v54  ;;  %v6898_v63 = vcombine.low %v4288_v53, %v4292_v54  ;;  %v4351_v54 = vld [vmem:[%s8364_s28 + $0x4d0] sm:$0xff] }
 0x3de   : > { %5912 = vmatpush1.bf16.msra.mxu0 %v6832_v60  ;;  %5998 = vmatpush1.bf16.msra.mxu1 %v6834_v4  ;;  %v4299_v60 = vld [vmem:[%s8364_s28 + $0x330] sm:$0xff]  ;;  %v4296_v4 = vld [vmem:[%s8364_s28 + $0x318] sm:$0xff] }
 0x3df   : > { %5913 = vmatprep.subr.bf16.mxu0 %v6841_v61  ;;  %5999 = vmatprep.subr.bf16.mxu1 %v6843_v62  ;;  %v4300_v61 = vld [vmem:[%s8364_s28 + $0x338] sm:$0xff]  ;;  %v6896_v62 = vcombine.low %v4287_v51, %v4291_v52  ;;  %v6905_v0 = vcombine.high %v4295_v59, %v4299_v60 }
 0x3e0   : > { %v6907_v1 = vcombine.high %v4296_v4, %v4300_v61  ;;  %v6906_v8 = vcombine.low %v4296_v4, %v4300_v61  ;;  %v4359_v4 = vld [vmem:[%s8364_s28 + $0x510] sm:$0xff] }
 0x3e1   : > { %v4363_v61 = vld [vmem:[%s8364_s28 + $0x530] sm:$0xff] }
 0x3e2   : > { %5914 = vmatpush1.bf16.msra.mxu0 %v6840_v3  ;;  %6000 = vmatpush1.bf16.msra.mxu1 %v6842_v5  ;;  %v4307_v3 = vld [vmem:[%s8364_s28 + $0x370] sm:$0xff]  ;;  %v4304_v5 = vld [vmem:[%s8364_s28 + $0x358] sm:$0xff] }
 0x3e3   : > { %5915 = vmatprep.subr.bf16.mxu0 %v6849_v6  ;;  %6001 = vmatprep.subr.bf16.mxu1 %v6851_v7  ;;  %v4308_v6 = vld [vmem:[%s8364_s28 + $0x378] sm:$0xff]  ;;  %v6904_v7 = vcombine.low %v4295_v59, %v4299_v60  ;;  %v6913_v9 = vcombine.high %v4303_v2, %v4307_v3 }
 0x3e4   : > { %v6915_v10 = vcombine.high %v4304_v5, %v4308_v6  ;;  %v6914_v20 = vcombine.low %v4304_v5, %v4308_v6  ;;  %v4371_v5 = vld [vmem:[%s8364_s28 + $0x570] sm:$0xff]  ;;  %v4368_v6 = vld [vmem:[%s8364_s28 + $0x558] sm:$0xff] }
 0x3e6   : > { %5916 = vmatpush1.bf16.msra.mxu0 %v6848_v12  ;;  %6002 = vmatpush1.bf16.msra.mxu1 %v6850_v13  ;;  %v4315_v12 = vld [vmem:[%s8364_s28 + $0x3b0] sm:$0xff]  ;;  %v4312_v13 = vld [vmem:[%s8364_s28 + $0x398] sm:$0xff] }
 0x3e7   : > { %5917 = vmatprep.subr.bf16.mxu0 %v6857_v16  ;;  %6003 = vmatprep.subr.bf16.mxu1 %v6859_v17  ;;  %v4316_v16 = vld [vmem:[%s8364_s28 + $0x3b8] sm:$0xff]  ;;  %v6912_v17 = vcombine.low %v4303_v2, %v4307_v3  ;;  %v6921_v22 = vcombine.high %v4311_v11, %v4315_v12  ;;  %v4367_v3 = vld [vmem:[%s8364_s28 + $0x550] sm:$0xff] }
 0x3e8   : > { %v6923_v15 = vcombine.high %v4312_v13, %v4316_v16  ;;  %v6922_v28 = vcombine.low %v4312_v13, %v4316_v16  ;;  %v4379_v13 = vld [vmem:[%s8364_s28 + $0x5b0] sm:$0xff]  ;;  %v4376_v16 = vld [vmem:[%s8364_s28 + $0x598] sm:$0xff] }
 0x3ea   : > { %5918 = vmatpush1.bf16.msra.mxu0 %v6856_v24  ;;  %6004 = vmatpush1.bf16.msra.mxu1 %v6858_v27  ;;  %v4323_v24 = vld [vmem:[%s8364_s28 + $0x3f0] sm:$0xff]  ;;  %v4320_v27 = vld [vmem:[%s8364_s28 + $0x3d8] sm:$0xff] }
 0x3eb   : > { %5919 = vmatprep.subr.bf16.mxu0 %v6865_v18  ;;  %6005 = vmatprep.subr.bf16.mxu1 %v6867_v19  ;;  %v4324_v18 = vld [vmem:[%s8364_s28 + $0x3f8] sm:$0xff]  ;;  %v6920_v19 = vcombine.low %v4311_v11, %v4315_v12  ;;  %v6929_v29 = vcombine.high %v4319_v23, %v4323_v24  ;;  %v4375_v12 = vld [vmem:[%s8364_s28 + $0x590] sm:$0xff] }
 0x3ec   : > { %v6931_v32 = vcombine.high %v4320_v27, %v4324_v18  ;;  %v6930_v37 = vcombine.low %v4320_v27, %v4324_v18  ;;  %v4387_v27 = vld [vmem:[%s8364_s28 + $0x5f0] sm:$0xff]  ;;  %v4384_v18 = vld [vmem:[%s8364_s28 + $0x5d8] sm:$0xff] }
 0x3ee   : > { %5920 = vmatpush1.bf16.msra.mxu0 %v6864_v33  ;;  %6006 = vmatpush1.bf16.msra.mxu1 %v6866_v34  ;;  %v4331_v33 = vld [vmem:[%s8364_s28 + $0x430] sm:$0xff]  ;;  %v4328_v34 = vld [vmem:[%s8364_s28 + $0x418] sm:$0xff] }
 0x3ef   : > { %5921 = vmatprep.subr.bf16.mxu0 %v6873_v35  ;;  %6007 = vmatprep.subr.bf16.mxu1 %v6875_v36  ;;  %v4332_v35 = vld [vmem:[%s8364_s28 + $0x438] sm:$0xff]  ;;  %v6928_v36 = vcombine.low %v4319_v23, %v4323_v24  ;;  %v6937_v31 = vcombine.high %v4327_v21, %v4331_v33  ;;  %v4383_v24 = vld [vmem:[%s8364_s28 + $0x5d0] sm:$0xff] }
 0x3f0   : > { %v6939_v39 = vcombine.high %v4328_v34, %v4332_v35  ;;  %v6938_v45 = vcombine.low %v4328_v34, %v4332_v35  ;;  %v4395_v34 = vld [vmem:[%s8364_s28 + $0x630] sm:$0xff]  ;;  %v4392_v35 = vld [vmem:[%s8364_s28 + $0x618] sm:$0xff] }
 0x3f2   : > { %5922 = vmatpush1.bf16.msra.mxu0 %v6872_v41  ;;  %6008 = vmatpush1.bf16.msra.mxu1 %v6874_v42  ;;  %v4339_v41 = vld [vmem:[%s8364_s28 + $0x470] sm:$0xff]  ;;  %v4336_v42 = vld [vmem:[%s8364_s28 + $0x458] sm:$0xff] }
 0x3f3   : > { %5923 = vmatprep.subr.bf16.mxu0 %v6881_v43  ;;  %6009 = vmatprep.subr.bf16.mxu1 %v6883_v44  ;;  %v4340_v43 = vld [vmem:[%s8364_s28 + $0x478] sm:$0xff]  ;;  %v6936_v44 = vcombine.low %v4327_v21, %v4331_v33  ;;  %v6945_v46 = vcombine.high %v4335_v40, %v4339_v41  ;;  %v4391_v33 = vld [vmem:[%s8364_s28 + $0x610] sm:$0xff] }
 0x3f4   : > { %v6947_v47 = vcombine.high %v4336_v42, %v4340_v43  ;;  %v6946_v51 = vcombine.low %v4336_v42, %v4340_v43  ;;  %v4403_v42 = vld [vmem:[%s8364_s28 + $0x670] sm:$0xff]  ;;  %v4400_v43 = vld [vmem:[%s8364_s28 + $0x658] sm:$0xff] }
 0x3f6   : > { %5924 = vmatpush1.bf16.msra.mxu0 %v6880_v25  ;;  %6010 = vmatpush1.bf16.msra.mxu1 %v6882_v26  ;;  %v4347_v25 = vld [vmem:[%s8364_s28 + $0x4b0] sm:$0xff]  ;;  %v4344_v26 = vld [vmem:[%s8364_s28 + $0x498] sm:$0xff] }
 0x3f7   : > { %5925 = vmatprep.subr.bf16.mxu0 %v6889_v49  ;;  %6011 = vmatprep.subr.bf16.mxu1 %v6891_v50  ;;  %v4348_v49 = vld [vmem:[%s8364_s28 + $0x4b8] sm:$0xff]  ;;  %v6944_v50 = vcombine.low %v4335_v40, %v4339_v41  ;;  %v6953_v52 = vcombine.high %v4343_v48, %v4347_v25  ;;  %v4399_v41 = vld [vmem:[%s8364_s28 + $0x650] sm:$0xff] }
 0x3f8   : > { %v6955_v53 = vcombine.high %v4344_v26, %v4348_v49 }
 0x3fa   : > { %5926 = vmatpush1.bf16.msra.mxu0 %v6888_v55  ;;  %6012 = vmatpush1.bf16.msra.mxu1 %v6890_v56  ;;  %v4355_v55 = vld [vmem:[%s8364_s28 + $0x4f0] sm:$0xff]  ;;  %v4352_v56 = vld [vmem:[%s8364_s28 + $0x4d8] sm:$0xff] }
 0x3fb   : > { %5927 = vmatprep.subr.bf16.mxu0 %v6897_v57  ;;  %6013 = vmatprep.subr.bf16.mxu1 %v6899_v58  ;;  %v4356_v57 = vld [vmem:[%s8364_s28 + $0x4f8] sm:$0xff]  ;;  %v6954_v58 = vcombine.low %v4344_v26, %v4348_v49  ;;  %v6961_v59 = vcombine.high %v4351_v54, %v4355_v55  ;;  %v4411_v26 = vld [vmem:[%s8364_s28 + $0x6b0] sm:$0xff] }
 0x3fc   : > { %v6963_v60 = vcombine.high %v4352_v56, %v4356_v57  ;;  %v4408_v49 = vld [vmem:[%s8364_s28 + $0x698] sm:$0xff] }
 0x3fe   : > { %5928 = vmatpush1.bf16.msra.mxu0 %v6896_v62  ;;  %6014 = vmatpush1.bf16.msra.mxu1 %v6898_v63  ;;  %v4360_v62 = vld [vmem:[%s8364_s28 + $0x518] sm:$0xff] }
 0x3ff   : > { %5929 = vmatprep.subr.bf16.mxu0 %v6905_v0  ;;  %6015 = vmatprep.subr.bf16.mxu1 %v6907_v1  ;;  %v4364_v63 = vld [vmem:[%s8364_s28 + $0x538] sm:$0xff]  ;;  %v6960_v0 = vcombine.low %v4351_v54, %v4355_v55  ;;  %v6969_v1 = vcombine.high %v4359_v4, %v4363_v61  ;;  %v4415_v55 = vld [vmem:[%s8364_s28 + $0x6d0] sm:$0xff] }
 0x400   : > { %v6971_v2 = vcombine.high %v4360_v62, %v4364_v63 }
 0x402   : > { %5930 = vmatpush1.bf16.msra.mxu0 %v6904_v7  ;;  %6016 = vmatpush1.bf16.msra.mxu1 %v6906_v8  ;;  %v4372_v7 = vld [vmem:[%s8364_s28 + $0x578] sm:$0xff]  ;;  %v6968_v8 = vcombine.low %v4359_v4, %v4363_v61  ;;  %v4423_v61 = vld [vmem:[%s8364_s28 + $0x710] sm:$0xff] }
 0x403   : > { %5931 = vmatprep.subr.bf16.mxu0 %v6913_v9  ;;  %6017 = vmatprep.subr.bf16.mxu1 %v6915_v10  ;;  %v6970_v9 = vcombine.low %v4360_v62, %v4364_v63  ;;  %v6977_v10 = vcombine.high %v4367_v3, %v4371_v5  ;;  %v6979_v11 = vcombine.high %v4368_v6, %v4372_v7  ;;  %v4427_v62 = vld [vmem:[%s8364_s28 + $0x730] sm:$0xff]  ;;  %v4424_v63 = vld [vmem:[%s8364_s28 + $0x718] sm:$0xff] }
 0x406   : > { %5932 = vmatpush1.bf16.msra.mxu0 %v6912_v17  ;;  %6018 = vmatpush1.bf16.msra.mxu1 %v6914_v20  ;;  %v4380_v17 = vld [vmem:[%s8364_s28 + $0x5b8] sm:$0xff]  ;;  %v6976_v20 = vcombine.low %v4367_v3, %v4371_v5  ;;  %v4431_v5 = vld [vmem:[%s8364_s28 + $0x750] sm:$0xff] }
 0x407   : > { %5933 = vmatprep.subr.bf16.mxu0 %v6921_v22  ;;  %6019 = vmatprep.subr.bf16.mxu1 %v6923_v15  ;;  %v6978_v22 = vcombine.low %v4368_v6, %v4372_v7  ;;  %v6985_v15 = vcombine.high %v4375_v12, %v4379_v13  ;;  %v6987_v23 = vcombine.high %v4376_v16, %v4380_v17  ;;  %v4435_v6 = vld [vmem:[%s8364_s28 + $0x770] sm:$0xff]  ;;  %v4432_v7 = vld [vmem:[%s8364_s28 + $0x758] sm:$0xff] }
 0x40a   : > { %5934 = vmatpush1.bf16.msra.mxu0 %v6920_v19  ;;  %6020 = vmatpush1.bf16.msra.mxu1 %v6922_v28  ;;  %v4388_v19 = vld [vmem:[%s8364_s28 + $0x5f8] sm:$0xff]  ;;  %v6984_v28 = vcombine.low %v4375_v12, %v4379_v13  ;;  %v4439_v13 = vld [vmem:[%s8364_s28 + $0x790] sm:$0xff] }
 0x40b   : > { %5935 = vmatprep.subr.bf16.mxu0 %v6929_v29  ;;  %6021 = vmatprep.subr.bf16.mxu1 %v6931_v32  ;;  %v6986_v29 = vcombine.low %v4376_v16, %v4380_v17  ;;  %v6993_v32 = vcombine.high %v4383_v24, %v4387_v27  ;;  %v6995_v21 = vcombine.high %v4384_v18, %v4388_v19  ;;  %v4443_v16 = vld [vmem:[%s8364_s28 + $0x7b0] sm:$0xff]  ;;  %v4440_v17 = vld [vmem:[%s8364_s28 + $0x798] sm:$0xff] }
 0x40e   : > { %5936 = vmatpush1.bf16.msra.mxu0 %v6928_v36  ;;  %6022 = vmatpush1.bf16.msra.mxu1 %v6930_v37  ;;  %v4396_v36 = vld [vmem:[%s8364_s28 + $0x638] sm:$0xff]  ;;  %v6992_v37 = vcombine.low %v4383_v24, %v4387_v27  ;;  %v4447_v27 = vld [vmem:[%s8364_s28 + $0x7d0] sm:$0xff] }
 0x40f   : > { %5948 = vmatprep.subr.bf16.mxu0 %v6937_v31  ;;  %6034 = vmatprep.subr.bf16.mxu1 %v6939_v39  ;;  %v6994_v31 = vcombine.low %v4384_v18, %v4388_v19  ;;  %v7001_v39 = vcombine.high %v4391_v33, %v4395_v34  ;;  %v7003_v40 = vcombine.high %v4392_v35, %v4396_v36  ;;  %v4451_v18 = vld [vmem:[%s8364_s28 + $0x7f0] sm:$0xff]  ;;  %v4448_v19 = vld [vmem:[%s8364_s28 + $0x7d8] sm:$0xff] }
 0x411   : > { %5938 = vmatmul.mubr.bf16.vlgmr.msra.gmra.mrb[4].mxu0 %v8555_v14  ;;  %6024 = vmatmul.mubr.bf16.vlgmr.msra.gmra.mrb[4].mxu1 %v8555_v14  ;;  %v6952_v14 = vcombine.low %v4343_v48, %v4347_v25  ;;  %v4407_v25 = vld [vmem:[%s8364_s28 + $0x690] sm:$0xff] }
 0x412   : > { %5949 = vmatpush1.bf16.msra.mxu0 %v6936_v44  ;;  %6035 = vmatpush1.bf16.msra.mxu1 %v6938_v45  ;;  %v4404_v44 = vld [vmem:[%s8364_s28 + $0x678] sm:$0xff]  ;;  %v7000_v45 = vcombine.low %v4391_v33, %v4395_v34  ;;  %v7056_v34 = vcombine.low %v4447_v27, %v4451_v18 }
 0x413   : > { %5950 = vmatprep.subr.bf16.mxu0 %v6945_v46  ;;  %6036 = vmatprep.subr.bf16.mxu1 %v6947_v47  ;;  %v7002_v46 = vcombine.low %v4392_v35, %v4396_v36  ;;  %v7009_v47 = vcombine.high %v4399_v41, %v4403_v42  ;;  %v7011_v48 = vcombine.high %v4400_v43, %v4404_v44 }
 0x414   : > { %5980 = vmatprep.mubr.bf16.mxu0 %v8562_v38  ;;  %6066 = vmatprep.mubr.bf16.mxu1 %v8562_v38  ;;  %v6962_v38 = vcombine.low %v4352_v56, %v4356_v57  ;;  %v4419_v56 = vld [vmem:[%s8364_s28 + $0x6f0] sm:$0xff]  ;;  %v4416_v57 = vld [vmem:[%s8364_s28 + $0x6d8] sm:$0xff] }
 0x416   : > { %5951 = vmatpush1.bf16.msra.mxu0 %v6944_v50  ;;  %6037 = vmatpush1.bf16.msra.mxu1 %v6946_v51  ;;  %v4412_v50 = vld [vmem:[%s8364_s28 + $0x6b8] sm:$0xff]  ;;  %v7008_v51 = vcombine.low %v4399_v41, %v4403_v42 }
 0x417   : > { %5952 = vmatprep.subr.bf16.mxu0 %v6953_v52  ;;  %6038 = vmatprep.subr.bf16.mxu1 %v6955_v53  ;;  %v7010_v52 = vcombine.low %v4400_v43, %v4404_v44  ;;  %v7017_v53 = vcombine.high %v4407_v25, %v4411_v26  ;;  %v7019_v54 = vcombine.high %v4408_v49, %v4412_v50 }
 0x41a   : > { %5953 = vmatpush1.bf16.msra.mxu0 %v6952_v14  ;;  %6039 = vmatpush1.bf16.msra.mxu1 %v6954_v58  ;;  %v4420_v14 = vld [vmem:[%s8364_s28 + $0x6f8] sm:$0xff]  ;;  %v7016_v58 = vcombine.low %v4407_v25, %v4411_v26 }
 0x41b   : > { %5954 = vmatprep.subr.bf16.mxu0 %v6961_v59  ;;  %6040 = vmatprep.subr.bf16.mxu1 %v6963_v60  ;;  %v7018_v59 = vcombine.low %v4408_v49, %v4412_v50  ;;  %v7025_v60 = vcombine.high %v4415_v55, %v4419_v56  ;;  %v7027_v4 = vcombine.high %v4416_v57, %v4420_v14 }
 0x41e   : > { %5955 = vmatpush1.bf16.msra.mxu0 %v6960_v0  ;;  %6041 = vmatpush1.bf16.msra.mxu1 %v6962_v38  ;;  %v4428_v0 = vld [vmem:[%s8364_s28 + $0x738] sm:$0xff]  ;;  %v7024_v38 = vcombine.low %v4415_v55, %v4419_v56 }
 0x41f   : > { %5956 = vmatprep.subr.bf16.mxu0 %v6969_v1  ;;  %6042 = vmatprep.subr.bf16.mxu1 %v6971_v2  ;;  %v7026_v1 = vcombine.low %v4416_v57, %v4420_v14  ;;  %v7033_v2 = vcombine.high %v4423_v61, %v4427_v62  ;;  %v7035_v3 = vcombine.high %v4424_v63, %v4428_v0 }
 0x422   : > { %5957 = vmatpush1.bf16.msra.mxu0 %v6968_v8  ;;  %6043 = vmatpush1.bf16.msra.mxu1 %v6970_v9  ;;  %v4436_v8 = vld [vmem:[%s8364_s28 + $0x778] sm:$0xff]  ;;  %v7032_v9 = vcombine.low %v4423_v61, %v4427_v62 }
 0x423   : > { %5958 = vmatprep.subr.bf16.mxu0 %v6977_v10  ;;  %6044 = vmatprep.subr.bf16.mxu1 %v6979_v11  ;;  %v7034_v10 = vcombine.low %v4424_v63, %v4428_v0  ;;  %v7041_v11 = vcombine.high %v4431_v5, %v4435_v6  ;;  %v7043_v12 = vcombine.high %v4432_v7, %v4436_v8 }
 0x426   : > { %5959 = vmatpush1.bf16.msra.mxu0 %v6976_v20  ;;  %6045 = vmatpush1.bf16.msra.mxu1 %v6978_v22  ;;  %v4444_v20 = vld [vmem:[%s8364_s28 + $0x7b8] sm:$0xff]  ;;  %v7040_v22 = vcombine.low %v4431_v5, %v4435_v6 }
 0x427   : > { %5960 = vmatprep.subr.bf16.mxu0 %v6985_v15  ;;  %6046 = vmatprep.subr.bf16.mxu1 %v6987_v23  ;;  %v7042_v15 = vcombine.low %v4432_v7, %v4436_v8  ;;  %v7049_v23 = vcombine.high %v4439_v13, %v4443_v16  ;;  %v7051_v24 = vcombine.high %v4440_v17, %v4444_v20 }
 0x42a   : > { %5961 = vmatpush1.bf16.msra.mxu0 %v6984_v28  ;;  %6047 = vmatpush1.bf16.msra.mxu1 %v6986_v29  ;;  %v4452_v28 = vld [vmem:[%s8364_s28 + $0x7f8] sm:$0xff]  ;;  %v7048_v29 = vcombine.low %v4439_v13, %v4443_v16  ;;  %s7066_s28 = sshll.u32 (%p8833_p3), %s8132_s18, 6 }
 0x42b   : > { %5962 = vmatprep.subr.bf16.mxu0 %v6993_v32  ;;  %6048 = vmatprep.subr.bf16.mxu1 %v6995_v21  ;;  %v7050_v32 = vcombine.low %v4440_v17, %v4444_v20  ;;  %v7057_v21 = vcombine.high %v4447_v27, %v4451_v18  ;;  %v7059_v33 = vcombine.high %v4448_v19, %v4452_v28  ;;  %s6105_s29 = scalar_lea.vmem (%p8833_p3), %s8819_s4, %s7066_s28 }
 0x42c   : > { %v7058_v35 = vcombine.low %v4448_v19, %v4452_v28 }
 0x42e   : > { %5963 = vmatpush1.bf16.msra.mxu0 %v6992_v37  ;;  %6049 = vmatpush1.bf16.msra.mxu1 %v6994_v31 }
 0x42f   : > { %5964 = vmatprep.subr.bf16.mxu0 %v7001_v39  ;;  %6050 = vmatprep.subr.bf16.mxu1 %v7003_v40 }
 0x432   : > { %5965 = vmatpush1.bf16.msra.mxu0 %v7000_v45  ;;  %6051 = vmatpush1.bf16.msra.mxu1 %v7002_v46 }
 0x433   : > { %5966 = vmatprep.subr.bf16.mxu0 %v7009_v47  ;;  %6052 = vmatprep.subr.bf16.mxu1 %v7011_v48 }
 0x436   : > { %5967 = vmatpush1.bf16.msra.mxu0 %v7008_v51  ;;  %6053 = vmatpush1.bf16.msra.mxu1 %v7010_v52 }
 0x437   : > { %5968 = vmatprep.subr.bf16.mxu0 %v7017_v53  ;;  %6054 = vmatprep.subr.bf16.mxu1 %v7019_v54 }
 0x43a   : > { %5969 = vmatpush1.bf16.msra.mxu0 %v7016_v58  ;;  %6055 = vmatpush1.bf16.msra.mxu1 %v7018_v59 }
 0x43b   : > { %5970 = vmatprep.subr.bf16.mxu0 %v7025_v60  ;;  %6056 = vmatprep.subr.bf16.mxu1 %v7027_v4 }
 0x43e   : > { %5971 = vmatpush1.bf16.msra.mxu0 %v7024_v38  ;;  %6057 = vmatpush1.bf16.msra.mxu1 %v7026_v1 }
 0x43f   : > { %5972 = vmatprep.subr.bf16.mxu0 %v7033_v2  ;;  %6058 = vmatprep.subr.bf16.mxu1 %v7035_v3 }
 0x442   : > { %5973 = vmatpush1.bf16.msra.mxu0 %v7032_v9  ;;  %6059 = vmatpush1.bf16.msra.mxu1 %v7034_v10 }
 0x443   : > { %5974 = vmatprep.subr.bf16.mxu0 %v7041_v11  ;;  %6060 = vmatprep.subr.bf16.mxu1 %v7043_v12 }
 0x446   : > { %5975 = vmatpush1.bf16.msra.mxu0 %v7040_v22  ;;  %6061 = vmatpush1.bf16.msra.mxu1 %v7042_v15 }
 0x447   : > { %5976 = vmatprep.subr.bf16.mxu0 %v7049_v23  ;;  %6062 = vmatprep.subr.bf16.mxu1 %v7051_v24 }
 0x44a   : > { %5977 = vmatpush1.bf16.msra.mxu0 %v7048_v29  ;;  %6063 = vmatpush1.bf16.msra.mxu1 %v7050_v32 }
 0x44b   : > { %5978 = vmatprep.subr.bf16.mxu0 %v7057_v21  ;;  %6064 = vmatprep.subr.bf16.mxu1 %v7059_v33 }
 0x44e   : > { %5979 = vmatpush1.bf16.msra.mxu0 %v7056_v34  ;;  %6065 = vmatpush1.bf16.msra.mxu1 %v7058_v35 }
 0x451   : > { %5981 = vmatmul.mubr.bf16.vlgmr.msra.gmra.mrb[4].mxu0 %v8627_v30  ;;  %6067 = vmatmul.mubr.bf16.vlgmr.msra.gmra.mrb[4].mxu1 %v8627_v30 }
 0x4a4   : > { %v5810_v36 = vpop.f32.mrb[0].mxu0  ;;  %v5896_v37 = vpop.f32.mrb[0].mxu1 }
 0x4a5   : > { %6077 = vst [vmem:[%s8370_s7] sm:$0xff] %v5810_v36  ;;  %v5812_v31 = vpop.f32.mrb[1].mxu0  ;;  %6079 = vst [vmem:[%s8370_s7 + $0x10] sm:$0xff] %v5896_v37  ;;  %v5898_v39 = vpop.f32.mrb[1].mxu1 }
 0x4a6   : > { %6078 = vst [vmem:[%s8370_s7 + $0x8] sm:$0xff] %v5812_v31  ;;  %v5814_v40 = vpop.f32.mrb[2].mxu0  ;;  %6080 = vst [vmem:[%s8370_s7 + $0x18] sm:$0xff] %v5898_v39  ;;  %v5900_v41 = vpop.f32.mrb[2].mxu1 }
 0x4a7   : > { %6085 = vst [vmem:[%s8370_s7 + $0x40] sm:$0xff] %v5814_v40  ;;  %v5816_v42 = vpop.f32.mrb[3].mxu0  ;;  %6087 = vst [vmem:[%s8370_s7 + $0x50] sm:$0xff] %v5900_v41  ;;  %v5902_v30 = vpop.f32.mrb[3].mxu1 }
 0x4a8   : > { %6086 = vst [vmem:[%s8370_s7 + $0x48] sm:$0xff] %v5816_v42  ;;  %6088 = vst [vmem:[%s8370_s7 + $0x58] sm:$0xff] %v5902_v30 }
 0x4ac   : > { %v6118_v49 = vld [vmem:[%s8370_s7] sm:$0xff] (%p8833_p3)  ;;  %v6122_v51 = vld [vmem:[%s8370_s7 + $0x10] sm:$0xff] (%p8833_p3) }
 0x4ad   : > { %v6120_v50 = vld [vmem:[%s8370_s7 + $0x8] sm:$0xff] (%p8833_p3)  ;;  %v6124_v52 = vld [vmem:[%s8370_s7 + $0x18] sm:$0xff] (%p8833_p3)  ;;  %6119 = vst [vmem:[%s6105_s29] sm:$0xff] (%p8833_p3), %v6118_v49  ;;  %6123 = vst [vmem:[%s6105_s29 + $0x10] sm:$0xff] (%p8833_p3), %v6122_v51 }
 0x4ae   : > { %6121 = vst [vmem:[%s6105_s29 + $0x8] sm:$0xff] (%p8833_p3), %v6120_v50  ;;  %6125 = vst [vmem:[%s6105_s29 + $0x18] sm:$0xff] (%p8833_p3), %v6124_v52  ;;  %v6134_v57 = vld [vmem:[%s8370_s7 + $0x40] sm:$0xff] (%p8833_p3)  ;;  %v6138_v58 = vld [vmem:[%s8370_s7 + $0x50] sm:$0xff] (%p8833_p3) }
 0x4af   : > { %6135 = vst [vmem:[%s6105_s29 + $0x100] sm:$0xff] (%p8833_p3), %v6134_v57  ;;  %v6136_v14 = vld [vmem:[%s8370_s7 + $0x48] sm:$0xff] (%p8833_p3)  ;;  %v6140_v59 = vld [vmem:[%s8370_s7 + $0x58] sm:$0xff] (%p8833_p3)  ;;  %6139 = vst [vmem:[%s6105_s29 + $0x110] sm:$0xff] (%p8833_p3), %v6138_v58 }
 0x4b0   : > { %6137 = vst [vmem:[%s6105_s29 + $0x108] sm:$0xff] (%p8833_p3), %v6136_v14  ;;  %6141 = vst [vmem:[%s6105_s29 + $0x118] sm:$0xff] (%p8833_p3), %v6140_v59 }
 0x522   : > { %6099 = sbr.rel (!%p8833_p3) target bundleno = 1329 (0x531), region = 56 }
 0x524   : > { %v5982_v43 = vpop.f32.mrb[4].mxu0  ;;  %v6068_v44 = vpop.f32.mrb[4].mxu1 }
 0x525   : > { %6081 = vst [vmem:[%s8370_s7 + $0x20] sm:$0xff] %v5982_v43  ;;  %v5984_v45 = vpop.f32.mrb[5].mxu0  ;;  %6083 = vst [vmem:[%s8370_s7 + $0x30] sm:$0xff] %v6068_v44  ;;  %v6070_v46 = vpop.f32.mrb[5].mxu1 }
 0x526   : > { %6082 = vst [vmem:[%s8370_s7 + $0x28] sm:$0xff] %v5984_v45  ;;  %v5986_v47 = vpop.f32.mrb[6].mxu0  ;;  %6084 = vst [vmem:[%s8370_s7 + $0x38] sm:$0xff] %v6070_v46  ;;  %v6072_v48 = vpop.f32.mrb[6].mxu1 }
 0x527   : > { %6089 = vst [vmem:[%s8370_s7 + $0x60] sm:$0xff] %v5986_v47  ;;  %v5988_v25 = vpop.f32.mrb[7].mxu0  ;;  %6091 = vst [vmem:[%s8370_s7 + $0x70] sm:$0xff] %v6072_v48  ;;  %v6074_v26 = vpop.f32.mrb[7].mxu1 }
 0x528   : > { %6090 = vst [vmem:[%s8370_s7 + $0x68] sm:$0xff] %v5988_v25  ;;  %6092 = vst [vmem:[%s8370_s7 + $0x78] sm:$0xff] %v6074_v26 }
 0x52c   : > { %v6126_v53 = vld [vmem:[%s8370_s7 + $0x20] sm:$0xff]  ;;  %v6130_v55 = vld [vmem:[%s8370_s7 + $0x30] sm:$0xff] }
 0x52d   : > { %v6128_v54 = vld [vmem:[%s8370_s7 + $0x28] sm:$0xff]  ;;  %6127 = vst [vmem:[%s6105_s29 + $0x20] sm:$0xff] %v6126_v53  ;;  %v6132_v56 = vld [vmem:[%s8370_s7 + $0x38] sm:$0xff]  ;;  %6131 = vst [vmem:[%s6105_s29 + $0x30] sm:$0xff] %v6130_v55 }
 0x52e   : > { %6129 = vst [vmem:[%s6105_s29 + $0x28] sm:$0xff] %v6128_v54  ;;  %6133 = vst [vmem:[%s6105_s29 + $0x38] sm:$0xff] %v6132_v56  ;;  %v6142_v60 = vld [vmem:[%s8370_s7 + $0x60] sm:$0xff]  ;;  %v6146_v61 = vld [vmem:[%s8370_s7 + $0x70] sm:$0xff] }
 0x52f   : > { %v6144_v4 = vld [vmem:[%s8370_s7 + $0x68] sm:$0xff]  ;;  %6143 = vst [vmem:[%s6105_s29 + $0x120] sm:$0xff] %v6142_v60  ;;  %6147 = vst [vmem:[%s6105_s29 + $0x130] sm:$0xff] %v6146_v61  ;;  %v6148_v62 = vld [vmem:[%s8370_s7 + $0x78] sm:$0xff] }
 0x530   : > { %6145 = vst [vmem:[%s6105_s29 + $0x128] sm:$0xff] %v6144_v4  ;;  %6149 = vst [vmem:[%s6105_s29 + $0x138] sm:$0xff] %v6148_v62 }
 0x531 PF: > { %s16_s20 = sadd.s32 1, %s8140_s20   ;;  %s8834_s15 = smov %s8124_s16 }
 0x532   : > { %p13_p2 = scmp.ge.s32.totalorder %s16_s20, 6   ;;  %s8835_s16 = smov %s8128_s17 }
 0x533   : > { %s8836_s17 = smov %s8322_s13  ;;  %s8837_s18 = smov %s8136_s19 }
 0x534   : > { %s8838_s19 = smov %s8840_s27  ;;  %15 = sbr.rel (!%p13_p2) target bundleno = 4 (0x4), region = 113 }
 0x53b   :  { %6165 = vsyncpa [#allocation4], 1 }
 0x53c   :  { %6167 = vsyncpa [#allocation4 + $0x1], 1 }
 0x53d   :  { %6168 = vsyncpa [#allocation6], 1 }

</bundles_post_ra>
